<compile_context>
chip_gen: v7x
topology: tpu7x:2x2x1
jax: 0.10.0
libtpu: 0.0.40
codegen_flags: <defaults>
</compile_context>

<pallas_src>
import functools

import jax
import jax.numpy as jnp
from jax.experimental import pallas as pl
from jax.experimental.pallas import tpu as pltpu


# ---------- fused (prev BN+ReLU) -> conv3x3 (im2col) -> BN-stats kernel -------
def _conv_bn_stats_kernel(x_ref, w_ref, sc_ref, sh_ref,
                          o_ref, sum_ref, ssq_ref,
                          xp_scr, lhs_scr, *, apply_act, compute_dtype):
    # x_ref  : (1, H, W, Cin)   raw (pre-BN) activation of the previous layer
    # w_ref  : (9*Cin, Cout)    conv weights, (dh, dw, cin) flattened
    # sc_ref : (1, Cin)         folded BN scale of previous layer (ones for layer 0)
    # sh_ref : (1, Cin)         folded BN shift of previous layer (zeros for layer 0)
    # o_ref  : (1, H, W, Cout)  pre-BN conv output
    # sum_ref/ssq_ref : (1, 1, Cout) per-batch-element channel sum / sum-of-squares
    # xp_scr : VMEM (H+2, W+2, Cin) zero-halo padded, activated input
    # lhs_scr: VMEM (H, W, 9*Cin)   im2col matrix
    H = o_ref.shape[1]
    W = o_ref.shape[2]
    Cin = x_ref.shape[3]

    x = x_ref[0].astype(jnp.float32)                              # (H, W, Cin)
    a = x * sc_ref[0][None, None, :] + sh_ref[0][None, None, :]   # folded prev BN
    if apply_act:                                                 # previous layer's ReLU
        a = jnp.maximum(a, 0.0)

    # Zero-halo padding in VMEM (no HBM-side jnp.pad).
    xp_scr[...] = jnp.zeros_like(xp_scr)
    xp_scr[1:H + 1, 1:W + 1, :] = a

    # im2col: (H, W, 9*Cin); tap order (dh, dw, cin) matches w.reshape(9*Cin, Cout).
    for dh in range(3):
        for dw in range(3):
            k = dh * 3 + dw
            lhs_scr[:, :, k * Cin:(k + 1) * Cin] = (
                xp_scr[dh:dh + H, dw:dw + W, :].astype(lhs_scr.dtype))

    acc = jax.lax.dot_general(                                    # ONE MXU matmul, K=9*Cin
        lhs_scr[...], w_ref[...].astype(compute_dtype),
        dimension_numbers=(((2,), (0,)), ((), ())),
        preferred_element_type=jnp.float32)                       # (H, W, Cout)

    o_ref[...] = acc[None].astype(o_ref.dtype)
    # BN statistics fused into the conv epilogue (no extra full-tensor HBM pass).
    sum_ref[...] = jnp.sum(acc, axis=(0, 1), keepdims=True)
    ssq_ref[...] = jnp.sum(acc * acc, axis=(0, 1), keepdims=True)


def conv3x3_bn_stats(x, w2d, scale_in, shift_in, *, apply_act,
                     compute_dtype=jnp.float32):
    """x: (N,H,W,Cin); w2d: (9*Cin, Cout). Returns (y, chan_sum, chan_sumsq)."""
    N, H, W, Cin = x.shape
    Cout = w2d.shape[-1]
    kernel = functools.partial(_conv_bn_stats_kernel, apply_act=apply_act,
                               compute_dtype=compute_dtype)
    y, s, ss = pl.pallas_call(
        kernel,
        out_shape=(
            jax.ShapeDtypeStruct((N, H, W, Cout), jnp.float32),
            jax.ShapeDtypeStruct((N, 1, Cout), jnp.float32),
            jax.ShapeDtypeStruct((N, 1, Cout), jnp.float32),
        ),
        grid=(N,),
        in_specs=[
            pl.BlockSpec((1, H, W, Cin), lambda n: (n, 0, 0, 0)),
            pl.BlockSpec((9 * Cin, Cout), lambda n: (0, 0)),
            pl.BlockSpec((1, Cin), lambda n: (0, 0)),
            pl.BlockSpec((1, Cin), lambda n: (0, 0)),
        ],
        out_specs=(
            pl.BlockSpec((1, H, W, Cout), lambda n: (n, 0, 0, 0)),
            pl.BlockSpec((1, 1, Cout), lambda n: (n, 0, 0)),
            pl.BlockSpec((1, 1, Cout), lambda n: (n, 0, 0)),
        ),
        scratch_shapes=[
            pltpu.VMEM((H + 2, W + 2, Cin), jnp.float32),
            pltpu.VMEM((H, W, 9 * Cin), compute_dtype),
        ],
        compiler_params=pltpu.CompilerParams(
            dimension_semantics=("parallel",),
            vmem_limit_bytes=32 * 1024 * 1024),
    )(x, w2d, scale_in.reshape(1, Cin), shift_in.reshape(1, Cin))
    return y, s[:, 0, :], ss[:, 0, :]


# --------------------- final folded BN + ReLU (lane-dense) --------------------
def _bn_relu_apply_kernel(y_ref, sc_ref, sh_ref, o_ref):
    # y_ref: (1, TH, W*C) lane-dense view; sc/sh: (1, W*C) channel-tiled.
    y = y_ref[...].astype(jnp.float32)
    out = y * sc_ref[0][None, None, :] + sh_ref[0][None, None, :]
    o_ref[...] = jnp.maximum(out, 0.0).astype(o_ref.dtype)


def bn_relu_apply(y, scale, shift):
    """y: (N,H,W,C); folded per-channel scale/shift -> max(y*scale+shift, 0)."""
    N, H, W, C = y.shape
    y2 = y.reshape(N, H, W * C)                       # lane-dense last axis (free reshape in HBM)
    sc = jnp.tile(scale.astype(jnp.float32), W).reshape(1, W * C)
    sh = jnp.tile(shift.astype(jnp.float32), W).reshape(1, W * C)
    TH = 8 if H % 8 == 0 else H                       # row strips: pipelining + megacore
    out = pl.pallas_call(
        _bn_relu_apply_kernel,
        out_shape=jax.ShapeDtypeStruct((N, H, W * C), y.dtype),
        grid=(N, H // TH),
        in_specs=[
            pl.BlockSpec((1, TH, W * C), lambda n, h: (n, h, 0)),
            pl.BlockSpec((1, W * C), lambda n, h: (0, 0)),
            pl.BlockSpec((1, W * C), lambda n, h: (0, 0)),
        ],
        out_specs=pl.BlockSpec((1, TH, W * C), lambda n, h: (n, h, 0)),
        compiler_params=pltpu.CompilerParams(
            dimension_semantics=("parallel", "parallel"),
            vmem_limit_bytes=32 * 1024 * 1024),
    )(y2, sc, sh)
    return out.reshape(N, H, W, C)


# --------------------------------- ConvBlock ----------------------------------
def init_conv_block_params(key, in_channel, out_channel, conv_num=2):
    assert conv_num > 0
    params = []
    cin = in_channel
    for _ in range(conv_num):
        key, k1, k2, k3, k4 = jax.random.split(key, 5)
        fan_in = float(cin * 3 * 3)
        bound = fan_in ** -0.5
        w = jax.random.uniform(k1, (3, 3, cin, out_channel), jnp.float32,
                               -bound, bound)
        b = jax.random.uniform(k2, (out_channel,), jnp.float32, -bound, bound)
        gamma = 1.0 + 0.1 * jax.random.normal(k3, (out_channel,), jnp.float32)
        beta = 0.1 * jax.random.normal(k4, (out_channel,), jnp.float32)
        params.append(dict(w=w, b=b, gamma=gamma, beta=beta))
        cin = out_channel
    return params


def conv_block_forward(x_nchw, params, eps=1e-5, compute_dtype=jnp.float32):
    """Equivalent of ConvBlock.forward (train-mode BN); x_nchw: (N, Cin, H, W)."""
    x = jnp.transpose(x_nchw, (0, 2, 3, 1))                  # NCHW -> NHWC
    N, H, W, _ = x.shape
    n_elems = float(N * H * W)

    a = x                                                    # raw (pre-BN) activation
    scale = jnp.ones((x.shape[-1],), jnp.float32)            # identity for layer 0
    shift = jnp.zeros((x.shape[-1],), jnp.float32)
    apply_act = False
    for p in params:
        cin, cout = p["w"].shape[2], p["w"].shape[3]
        w2d = p["w"].reshape(9 * cin, cout)
        # NOTE: conv bias intentionally dropped — train-mode BN subtracts the
        # batch mean, so a per-channel bias cancels exactly (reference keeps it).
        y, s, ss = conv3x3_bn_stats(a, w2d, scale, shift,
                                    apply_act=apply_act,
                                    compute_dtype=compute_dtype)
        mean = jnp.sum(s, axis=0) / n_elems                  # tiny (Cout,) reductions
        var = jnp.maximum(jnp.sum(ss, axis=0) / n_elems - mean * mean, 0.0)
        inv = jax.lax.rsqrt(var + eps)
        scale = p["gamma"] * inv                             # folded BN scale/shift
        shift = p["beta"] - mean * scale
        a = y
        apply_act = True
        # TODO(synk): BatchNorm running_mean/var buffer updates (training-time
        # side effect) are not replicated; they do not affect the output.

    out = bn_relu_apply(a, scale, shift)                     # last layer's BN + ReLU
    return jnp.transpose(out, (0, 3, 1, 2))                  # NHWC -> NCHW


# --------------------------------- reference ----------------------------------
def _reference_forward(x_nchw, params, eps=1e-5):
    x = jnp.transpose(x_nchw, (0, 2, 3, 1))
    for p in params:
        y = jax.lax.conv_general_dilated(
            x, p["w"], window_strides=(1, 1), padding=((1, 1), (1, 1)),
            dimension_numbers=("NHWC", "HWIO", "NHWC"))
        y = y + p["b"][None, None, None, :]
        mean = jnp.mean(y, axis=(0, 1, 2), keepdims=True)
        var = jnp.mean((y - mean) ** 2, axis=(0, 1, 2), keepdims=True)
        y = (y - mean) * jax.lax.rsqrt(var + eps)
        y = y * p["gamma"][None, None, None, :] + p["beta"][None, None, None, :]
        x = jnp.maximum(y, 0.0)
    return jnp.transpose(x, (0, 3, 1, 2))


if __name__ == "__main__":
    key = jax.random.PRNGKey(0)
    kx, kp = jax.random.split(key)

    N, Cin, Cout, H, W = 2, 4, 8, 16, 16
    x = jax.random.normal(kx, (N, Cin, H, W), jnp.float32)
    params = init_conv_block_params(kp, Cin, Cout, conv_num=2)

    out = jax.jit(conv_block_forward)(x, params)
    out = jax.block_until_ready(out)

    ref = jax.block_until_ready(_reference_forward(x, params))
    assert out.shape == (N, Cout, H, W), out.shape
    err = float(jnp.max(jnp.abs(out - ref)))
    assert jnp.allclose(out, ref, atol=1e-3, rtol=1e-3), err

    print("KERNEL_OK")
</pallas_src>

<mosaic_0001>
module attributes {stable_mosaic.version = 11 : i64} {
  func.func @_conv_bn_stats_kernel(%arg0: i32, %arg1: memref<1x16x16x4xf32, #tpu.memory_space<vmem>>, %arg2: memref<36x8xf32, #tpu.memory_space<vmem>>, %arg3: memref<1x4xf32, #tpu.memory_space<vmem>>, %arg4: memref<1x4xf32, #tpu.memory_space<vmem>>, %arg5: memref<1x16x16x8xf32, #tpu.memory_space<vmem>>, %arg6: memref<1x1x8xf32, #tpu.memory_space<vmem>>, %arg7: memref<1x1x8xf32, #tpu.memory_space<vmem>>, %arg8: memref<18x18x4xf32, #tpu.memory_space<vmem>>, %arg9: memref<16x16x36xf32, #tpu.memory_space<vmem>>) attributes {dimension_semantics = [#tpu.dimension_semantics<parallel>], iteration_bounds = array<i64: 2>, scalar_prefetch = 0 : i64, scratch_operands = 2 : i64, tpu.core_type = #tpu.core_type<tc>, window_params = [{transform_indices = @transform_0, window_bounds = array<i64: 1, 16, 16, 4>}, {pipeline_mode = #tpu.pipeline_mode<synchronous>, transform_indices = @transform_1, window_bounds = array<i64: 36, 8>}, {pipeline_mode = #tpu.pipeline_mode<synchronous>, transform_indices = @transform_2, window_bounds = array<i64: 1, 4>}, {pipeline_mode = #tpu.pipeline_mode<synchronous>, transform_indices = @transform_3, window_bounds = array<i64: 1, 4>}, {transform_indices = @transform_4, window_bounds = array<i64: 1, 16, 16, 8>}, {transform_indices = @transform_5, window_bounds = array<i64: 1, 1, 8>}, {transform_indices = @transform_6, window_bounds = array<i64: 1, 1, 8>}]} {
    %c0 = arith.constant 0 : index
    %c0_0 = arith.constant 0 : index
    %c0_1 = arith.constant 0 : index
    %c0_2 = arith.constant 0 : index
    %0 = vector.load %arg1[%c0, %c0_0, %c0_1, %c0_2] : memref<1x16x16x4xf32, #tpu.memory_space<vmem>>, vector<1x16x16x4xf32>
    %1 = vector.shape_cast %0 : vector<1x16x16x4xf32> to vector<16x16x4xf32>
    %c0_3 = arith.constant 0 : index
    %c0_4 = arith.constant 0 : index
    %2 = vector.load %arg3[%c0_3, %c0_4] : memref<1x4xf32, #tpu.memory_space<vmem>>, vector<1x4xf32>
    %3 = vector.shape_cast %2 : vector<1x4xf32> to vector<4xf32>
    %4 = vector.shape_cast %3 : vector<4xf32> to vector<1x1x4xf32>
    %5 = vector.broadcast %4 : vector<1x1x4xf32> to vector<16x16x4xf32>
    %6 = arith.mulf %1, %5 : vector<16x16x4xf32>
    %c0_5 = arith.constant 0 : index
    %c0_6 = arith.constant 0 : index
    %7 = vector.load %arg4[%c0_5, %c0_6] : memref<1x4xf32, #tpu.memory_space<vmem>>, vector<1x4xf32>
    %8 = vector.shape_cast %7 : vector<1x4xf32> to vector<4xf32>
    %9 = vector.shape_cast %8 : vector<4xf32> to vector<1x1x4xf32>
    %10 = vector.broadcast %9 : vector<1x1x4xf32> to vector<16x16x4xf32>
    %11 = arith.addf %6, %10 : vector<16x16x4xf32>
    %cst = arith.constant 0.000000e+00 : f32
    %12 = vector.broadcast %cst : f32 to vector<18x18x4xf32>
    %c0_7 = arith.constant 0 : index
    %c0_8 = arith.constant 0 : index
    %c0_9 = arith.constant 0 : index
    %13 = vector.load %arg8[%c0_7, %c0_8, %c0_9] : memref<18x18x4xf32, #tpu.memory_space<vmem>>, vector<18x18x4xf32>
    tpu.vector_store %arg8[%c0_7, %c0_8, %c0_9], %12 {strides = array<i32>} : memref<18x18x4xf32, #tpu.memory_space<vmem>>, vector<18x18x4xf32>,
    %c1 = arith.constant 1 : index
    %c1_10 = arith.constant 1 : index
    %c0_11 = arith.constant 0 : index
    %14 = vector.load %arg8[%c1, %c1_10, %c0_11] : memref<18x18x4xf32, #tpu.memory_space<vmem>>, vector<16x16x4xf32>
    tpu.vector_store %arg8[%c1, %c1_10, %c0_11], %11 {strides = array<i32>} : memref<18x18x4xf32, #tpu.memory_space<vmem>>, vector<16x16x4xf32>,
    %c0_12 = arith.constant 0 : index
    %c0_13 = arith.constant 0 : index
    %c0_14 = arith.constant 0 : index
    %15 = vector.load %arg8[%c0_12, %c0_13, %c0_14] : memref<18x18x4xf32, #tpu.memory_space<vmem>>, vector<16x16x4xf32>
    %c0_15 = arith.constant 0 : index
    %c0_16 = arith.constant 0 : index
    %c0_17 = arith.constant 0 : index
    %16 = vector.load %arg9[%c0_15, %c0_16, %c0_17] : memref<16x16x36xf32, #tpu.memory_space<vmem>>, vector<16x16x4xf32>
    tpu.vector_store %arg9[%c0_15, %c0_16, %c0_17], %15 {strides = array<i32>} : memref<16x16x36xf32, #tpu.memory_space<vmem>>, vector<16x16x4xf32>,
    %c0_18 = arith.constant 0 : index
    %c1_19 = arith.constant 1 : index
    %c0_20 = arith.constant 0 : index
    %17 = vector.load %arg8[%c0_18, %c1_19, %c0_20] : memref<18x18x4xf32, #tpu.memory_space<vmem>>, vector<16x16x4xf32>
    %c0_21 = arith.constant 0 : index
    %c0_22 = arith.constant 0 : index
    %c4 = arith.constant 4 : index
    %18 = vector.load %arg9[%c0_21, %c0_22, %c4] : memref<16x16x36xf32, #tpu.memory_space<vmem>>, vector<16x16x4xf32>
    tpu.vector_store %arg9[%c0_21, %c0_22, %c4], %17 {strides = array<i32>} : memref<16x16x36xf32, #tpu.memory_space<vmem>>, vector<16x16x4xf32>,
    %c0_23 = arith.constant 0 : index
    %c2 = arith.constant 2 : index
    %c0_24 = arith.constant 0 : index
    %19 = vector.load %arg8[%c0_23, %c2, %c0_24] : memref<18x18x4xf32, #tpu.memory_space<vmem>>, vector<16x16x4xf32>
    %c0_25 = arith.constant 0 : index
    %c0_26 = arith.constant 0 : index
    %c8 = arith.constant 8 : index
    %20 = vector.load %arg9[%c0_25, %c0_26, %c8] : memref<16x16x36xf32, #tpu.memory_space<vmem>>, vector<16x16x4xf32>
    tpu.vector_store %arg9[%c0_25, %c0_26, %c8], %19 {strides = array<i32>} : memref<16x16x36xf32, #tpu.memory_space<vmem>>, vector<16x16x4xf32>,
    %c1_27 = arith.constant 1 : index
    %c0_28 = arith.constant 0 : index
    %c0_29 = arith.constant 0 : index
    %21 = vector.load %arg8[%c1_27, %c0_28, %c0_29] : memref<18x18x4xf32, #tpu.memory_space<vmem>>, vector<16x16x4xf32>
    %c0_30 = arith.constant 0 : index
    %c0_31 = arith.constant 0 : index
    %c12 = arith.constant 12 : index
    %22 = vector.load %arg9[%c0_30, %c0_31, %c12] : memref<16x16x36xf32, #tpu.memory_space<vmem>>, vector<16x16x4xf32>
    tpu.vector_store %arg9[%c0_30, %c0_31, %c12], %21 {strides = array<i32>} : memref<16x16x36xf32, #tpu.memory_space<vmem>>, vector<16x16x4xf32>,
    %c1_32 = arith.constant 1 : index
    %c1_33 = arith.constant 1 : index
    %c0_34 = arith.constant 0 : index
    %23 = vector.load %arg8[%c1_32, %c1_33, %c0_34] : memref<18x18x4xf32, #tpu.memory_space<vmem>>, vector<16x16x4xf32>
    %c0_35 = arith.constant 0 : index
    %c0_36 = arith.constant 0 : index
    %c16 = arith.constant 16 : index
    %24 = vector.load %arg9[%c0_35, %c0_36, %c16] : memref<16x16x36xf32, #tpu.memory_space<vmem>>, vector<16x16x4xf32>
    tpu.vector_store %arg9[%c0_35, %c0_36, %c16], %23 {strides = array<i32>} : memref<16x16x36xf32, #tpu.memory_space<vmem>>, vector<16x16x4xf32>,
    %c1_37 = arith.constant 1 : index
    %c2_38 = arith.constant 2 : index
    %c0_39 = arith.constant 0 : index
    %25 = vector.load %arg8[%c1_37, %c2_38, %c0_39] : memref<18x18x4xf32, #tpu.memory_space<vmem>>, vector<16x16x4xf32>
    %c0_40 = arith.constant 0 : index
    %c0_41 = arith.constant 0 : index
    %c20 = arith.constant 20 : index
    %26 = vector.load %arg9[%c0_40, %c0_41, %c20] : memref<16x16x36xf32, #tpu.memory_space<vmem>>, vector<16x16x4xf32>
    tpu.vector_store %arg9[%c0_40, %c0_41, %c20], %25 {strides = array<i32>} : memref<16x16x36xf32, #tpu.memory_space<vmem>>, vector<16x16x4xf32>,
    %c2_42 = arith.constant 2 : index
    %c0_43 = arith.constant 0 : index
    %c0_44 = arith.constant 0 : index
    %27 = vector.load %arg8[%c2_42, %c0_43, %c0_44] : memref<18x18x4xf32, #tpu.memory_space<vmem>>, vector<16x16x4xf32>
    %c0_45 = arith.constant 0 : index
    %c0_46 = arith.constant 0 : index
    %c24 = arith.constant 24 : index
    %28 = vector.load %arg9[%c0_45, %c0_46, %c24] : memref<16x16x36xf32, #tpu.memory_space<vmem>>, vector<16x16x4xf32>
    tpu.vector_store %arg9[%c0_45, %c0_46, %c24], %27 {strides = array<i32>} : memref<16x16x36xf32, #tpu.memory_space<vmem>>, vector<16x16x4xf32>,
    %c2_47 = arith.constant 2 : index
    %c1_48 = arith.constant 1 : index
    %c0_49 = arith.constant 0 : index
    %29 = vector.load %arg8[%c2_47, %c1_48, %c0_49] : memref<18x18x4xf32, #tpu.memory_space<vmem>>, vector<16x16x4xf32>
    %c0_50 = arith.constant 0 : index
    %c0_51 = arith.constant 0 : index
    %c28 = arith.constant 28 : index
    %30 = vector.load %arg9[%c0_50, %c0_51, %c28] : memref<16x16x36xf32, #tpu.memory_space<vmem>>, vector<16x16x4xf32>
    tpu.vector_store %arg9[%c0_50, %c0_51, %c28], %29 {strides = array<i32>} : memref<16x16x36xf32, #tpu.memory_space<vmem>>, vector<16x16x4xf32>,
    %c2_52 = arith.constant 2 : index
    %c2_53 = arith.constant 2 : index
    %c0_54 = arith.constant 0 : index
    %31 = vector.load %arg8[%c2_52, %c2_53, %c0_54] : memref<18x18x4xf32, #tpu.memory_space<vmem>>, vector<16x16x4xf32>
    %c0_55 = arith.constant 0 : index
    %c0_56 = arith.constant 0 : index
    %c32 = arith.constant 32 : index
    %32 = vector.load %arg9[%c0_55, %c0_56, %c32] : memref<16x16x36xf32, #tpu.memory_space<vmem>>, vector<16x16x4xf32>
    tpu.vector_store %arg9[%c0_55, %c0_56, %c32], %31 {strides = array<i32>} : memref<16x16x36xf32, #tpu.memory_space<vmem>>, vector<16x16x4xf32>,
    %c0_57 = arith.constant 0 : index
    %c0_58 = arith.constant 0 : index
    %c0_59 = arith.constant 0 : index
    %33 = vector.load %arg9[%c0_57, %c0_58, %c0_59] : memref<16x16x36xf32, #tpu.memory_space<vmem>>, vector<16x16x36xf32>
    %c0_60 = arith.constant 0 : index
    %c0_61 = arith.constant 0 : index
    %34 = vector.load %arg2[%c0_60, %c0_61] : memref<36x8xf32, #tpu.memory_space<vmem>>, vector<36x8xf32>
    %cst_62 = arith.constant dense<0.000000e+00> : vector<16x16x8xf32>
    %35 = tpu.matmul %33, %34, %cst_62 {dimension_numbers = #tpu.dot_dimension_numbers<[2], [0], [0, 1], [1], [0, 0, 0, 1, 1, 1], [], []>} : vector<16x16x36xf32>, vector<36x8xf32>, vector<16x16x8xf32> -> vector<16x16x8xf32>
    %36 = vector.shape_cast %35 : vector<16x16x8xf32> to vector<1x16x16x8xf32>
    %c0_63 = arith.constant 0 : index
    %c0_64 = arith.constant 0 : index
    %c0_65 = arith.constant 0 : index
    %c0_66 = arith.constant 0 : index
    %37 = vector.load %arg5[%c0_63, %c0_64, %c0_65, %c0_66] : memref<1x16x16x8xf32, #tpu.memory_space<vmem>>, vector<1x16x16x8xf32>
    tpu.vector_store %arg5[%c0_63, %c0_64, %c0_65, %c0_66], %36 {strides = array<i32>} : memref<1x16x16x8xf32, #tpu.memory_space<vmem>>, vector<1x16x16x8xf32>,
    %cst_67 = arith.constant dense<0.000000e+00> : vector<8xf32>
    %38 = vector.multi_reduction <add>, %35, %cst_67 [0, 1] : vector<16x16x8xf32> to vector<8xf32>
    %39 = vector.shape_cast %38 : vector<8xf32> to vector<1x1x8xf32>
    %c0_68 = arith.constant 0 : index
    %c0_69 = arith.constant 0 : index
    %c0_70 = arith.constant 0 : index
    %40 = vector.load %arg6[%c0_68, %c0_69, %c0_70] : memref<1x1x8xf32, #tpu.memory_space<vmem>>, vector<1x1x8xf32>
    tpu.vector_store %arg6[%c0_68, %c0_69, %c0_70], %39 {strides = array<i32>} : memref<1x1x8xf32, #tpu.memory_space<vmem>>, vector<1x1x8xf32>,
    %41 = arith.mulf %35, %35 : vector<16x16x8xf32>
    %cst_71 = arith.constant dense<0.000000e+00> : vector<8xf32>
    %42 = vector.multi_reduction <add>, %41, %cst_71 [0, 1] : vector<16x16x8xf32> to vector<8xf32>
    %43 = vector.shape_cast %42 : vector<8xf32> to vector<1x1x8xf32>
    %c0_72 = arith.constant 0 : index
    %c0_73 = arith.constant 0 : index
    %c0_74 = arith.constant 0 : index
    %44 = vector.load %arg7[%c0_72, %c0_73, %c0_74] : memref<1x1x8xf32, #tpu.memory_space<vmem>>, vector<1x1x8xf32>
    tpu.vector_store %arg7[%c0_72, %c0_73, %c0_74], %43 {strides = array<i32>} : memref<1x1x8xf32, #tpu.memory_space<vmem>>, vector<1x1x8xf32>,
    return
  }
  func.func @transform_0(%arg0: i32) -> (i32, i32, i32, i32) {
    %c0_i32 = arith.constant 0 : i32
    %c0_i32_0 = arith.constant 0 : i32
    %c0_i32_1 = arith.constant 0 : i32
    %c0_i32_2 = arith.constant 0 : i32
    return %arg0, %c0_i32, %c0_i32_0, %c0_i32_1 : i32, i32, i32, i32
  }
  func.func @transform_1(%arg0: i32) -> (i32, i32) {
    %c0_i32 = arith.constant 0 : i32
    %c0_i32_0 = arith.constant 0 : i32
    %c0_i32_1 = arith.constant 0 : i32
    return %c0_i32, %c0_i32_0 : i32, i32
  }
  func.func @transform_2(%arg0: i32) -> (i32, i32) {
    %c0_i32 = arith.constant 0 : i32
    %c0_i32_0 = arith.constant 0 : i32
    %c0_i32_1 = arith.constant 0 : i32
    return %c0_i32, %c0_i32_0 : i32, i32
  }
  func.func @transform_3(%arg0: i32) -> (i32, i32) {
    %c0_i32 = arith.constant 0 : i32
    %c0_i32_0 = arith.constant 0 : i32
    %c0_i32_1 = arith.constant 0 : i32
    return %c0_i32, %c0_i32_0 : i32, i32
  }
  func.func @transform_4(%arg0: i32) -> (i32, i32, i32, i32) {
    %c0_i32 = arith.constant 0 : i32
    %c0_i32_0 = arith.constant 0 : i32
    %c0_i32_1 = arith.constant 0 : i32
    %c0_i32_2 = arith.constant 0 : i32
    return %arg0, %c0_i32, %c0_i32_0, %c0_i32_1 : i32, i32, i32, i32
  }
  func.func @transform_5(%arg0: i32) -> (i32, i32, i32) {
    %c0_i32 = arith.constant 0 : i32
    %c0_i32_0 = arith.constant 0 : i32
    %c0_i32_1 = arith.constant 0 : i32
    return %arg0, %c0_i32, %c0_i32_0 : i32, i32, i32
  }
  func.func @transform_6(%arg0: i32) -> (i32, i32, i32) {
    %c0_i32 = arith.constant 0 : i32
    %c0_i32_0 = arith.constant 0 : i32
    %c0_i32_1 = arith.constant 0 : i32
    return %arg0, %c0_i32, %c0_i32_0 : i32, i32, i32
  }
}

module attributes {stable_mosaic.version = 11 : i64} {
  func.func @_conv_bn_stats_kernel(%arg0: i32, %arg1: memref<1x16x16x8xf32, #tpu.memory_space<vmem>>, %arg2: memref<72x8xf32, #tpu.memory_space<vmem>>, %arg3: memref<1x8xf32, #tpu.memory_space<vmem>>, %arg4: memref<1x8xf32, #tpu.memory_space<vmem>>, %arg5: memref<1x16x16x8xf32, #tpu.memory_space<vmem>>, %arg6: memref<1x1x8xf32, #tpu.memory_space<vmem>>, %arg7: memref<1x1x8xf32, #tpu.memory_space<vmem>>, %arg8: memref<18x18x8xf32, #tpu.memory_space<vmem>>, %arg9: memref<16x16x72xf32, #tpu.memory_space<vmem>>) attributes {dimension_semantics = [#tpu.dimension_semantics<parallel>], iteration_bounds = array<i64: 2>, scalar_prefetch = 0 : i64, scratch_operands = 2 : i64, tpu.core_type = #tpu.core_type<tc>, window_params = [{transform_indices = @transform_0, window_bounds = array<i64: 1, 16, 16, 8>}, {pipeline_mode = #tpu.pipeline_mode<synchronous>, transform_indices = @transform_1, window_bounds = array<i64: 72, 8>}, {pipeline_mode = #tpu.pipeline_mode<synchronous>, transform_indices = @transform_2, window_bounds = array<i64: 1, 8>}, {pipeline_mode = #tpu.pipeline_mode<synchronous>, transform_indices = @transform_3, window_bounds = array<i64: 1, 8>}, {transform_indices = @transform_4, window_bounds = array<i64: 1, 16, 16, 8>}, {transform_indices = @transform_5, window_bounds = array<i64: 1, 1, 8>}, {transform_indices = @transform_6, window_bounds = array<i64: 1, 1, 8>}]} {
    %c0 = arith.constant 0 : index
    %c0_0 = arith.constant 0 : index
    %c0_1 = arith.constant 0 : index
    %c0_2 = arith.constant 0 : index
    %0 = vector.load %arg1[%c0, %c0_0, %c0_1, %c0_2] : memref<1x16x16x8xf32, #tpu.memory_space<vmem>>, vector<1x16x16x8xf32>
    %1 = vector.shape_cast %0 : vector<1x16x16x8xf32> to vector<16x16x8xf32>
    %c0_3 = arith.constant 0 : index
    %c0_4 = arith.constant 0 : index
    %2 = vector.load %arg3[%c0_3, %c0_4] : memref<1x8xf32, #tpu.memory_space<vmem>>, vector<1x8xf32>
    %3 = vector.shape_cast %2 : vector<1x8xf32> to vector<8xf32>
    %4 = vector.shape_cast %3 : vector<8xf32> to vector<1x1x8xf32>
    %5 = vector.broadcast %4 : vector<1x1x8xf32> to vector<16x16x8xf32>
    %6 = arith.mulf %1, %5 : vector<16x16x8xf32>
    %c0_5 = arith.constant 0 : index
    %c0_6 = arith.constant 0 : index
    %7 = vector.load %arg4[%c0_5, %c0_6] : memref<1x8xf32, #tpu.memory_space<vmem>>, vector<1x8xf32>
    %8 = vector.shape_cast %7 : vector<1x8xf32> to vector<8xf32>
    %9 = vector.shape_cast %8 : vector<8xf32> to vector<1x1x8xf32>
    %10 = vector.broadcast %9 : vector<1x1x8xf32> to vector<16x16x8xf32>
    %11 = arith.addf %6, %10 : vector<16x16x8xf32>
    %cst = arith.constant 0.000000e+00 : f32
    %12 = vector.broadcast %cst : f32 to vector<16x16x8xf32>
    %13 = arith.maximumf %11, %12 : vector<16x16x8xf32>
    %cst_7 = arith.constant 0.000000e+00 : f32
    %14 = vector.broadcast %cst_7 : f32 to vector<18x18x8xf32>
    %c0_8 = arith.constant 0 : index
    %c0_9 = arith.constant 0 : index
    %c0_10 = arith.constant 0 : index
    %15 = vector.load %arg8[%c0_8, %c0_9, %c0_10] : memref<18x18x8xf32, #tpu.memory_space<vmem>>, vector<18x18x8xf32>
    tpu.vector_store %arg8[%c0_8, %c0_9, %c0_10], %14 {strides = array<i32>} : memref<18x18x8xf32, #tpu.memory_space<vmem>>, vector<18x18x8xf32>,
    %c1 = arith.constant 1 : index
    %c1_11 = arith.constant 1 : index
    %c0_12 = arith.constant 0 : index
    %16 = vector.load %arg8[%c1, %c1_11, %c0_12] : memref<18x18x8xf32, #tpu.memory_space<vmem>>, vector<16x16x8xf32>
    tpu.vector_store %arg8[%c1, %c1_11, %c0_12], %13 {strides = array<i32>} : memref<18x18x8xf32, #tpu.memory_space<vmem>>, vector<16x16x8xf32>,
    %c0_13 = arith.constant 0 : index
    %c0_14 = arith.constant 0 : index
    %c0_15 = arith.constant 0 : index
    %17 = vector.load %arg8[%c0_13, %c0_14, %c0_15] : memref<18x18x8xf32, #tpu.memory_space<vmem>>, vector<16x16x8xf32>
    %c0_16 = arith.constant 0 : index
    %c0_17 = arith.constant 0 : index
    %c0_18 = arith.constant 0 : index
    %18 = vector.load %arg9[%c0_16, %c0_17, %c0_18] : memref<16x16x72xf32, #tpu.memory_space<vmem>>, vector<16x16x8xf32>
    tpu.vector_store %arg9[%c0_16, %c0_17, %c0_18], %17 {strides = array<i32>} : memref<16x16x72xf32, #tpu.memory_space<vmem>>, vector<16x16x8xf32>,
    %c0_19 = arith.constant 0 : index
    %c1_20 = arith.constant 1 : index
    %c0_21 = arith.constant 0 : index
    %19 = vector.load %arg8[%c0_19, %c1_20, %c0_21] : memref<18x18x8xf32, #tpu.memory_space<vmem>>, vector<16x16x8xf32>
    %c0_22 = arith.constant 0 : index
    %c0_23 = arith.constant 0 : index
    %c8 = arith.constant 8 : index
    %20 = vector.load %arg9[%c0_22, %c0_23, %c8] : memref<16x16x72xf32, #tpu.memory_space<vmem>>, vector<16x16x8xf32>
    tpu.vector_store %arg9[%c0_22, %c0_23, %c8], %19 {strides = array<i32>} : memref<16x16x72xf32, #tpu.memory_space<vmem>>, vector<16x16x8xf32>,
    %c0_24 = arith.constant 0 : index
    %c2 = arith.constant 2 : index
    %c0_25 = arith.constant 0 : index
    %21 = vector.load %arg8[%c0_24, %c2, %c0_25] : memref<18x18x8xf32, #tpu.memory_space<vmem>>, vector<16x16x8xf32>
    %c0_26 = arith.constant 0 : index
    %c0_27 = arith.constant 0 : index
    %c16 = arith.constant 16 : index
    %22 = vector.load %arg9[%c0_26, %c0_27, %c16] : memref<16x16x72xf32, #tpu.memory_space<vmem>>, vector<16x16x8xf32>
    tpu.vector_store %arg9[%c0_26, %c0_27, %c16], %21 {strides = array<i32>} : memref<16x16x72xf32, #tpu.memory_space<vmem>>, vector<16x16x8xf32>,
    %c1_28 = arith.constant 1 : index
    %c0_29 = arith.constant 0 : index
    %c0_30 = arith.constant 0 : index
    %23 = vector.load %arg8[%c1_28, %c0_29, %c0_30] : memref<18x18x8xf32, #tpu.memory_space<vmem>>, vector<16x16x8xf32>
    %c0_31 = arith.constant 0 : index
    %c0_32 = arith.constant 0 : index
    %c24 = arith.constant 24 : index
    %24 = vector.load %arg9[%c0_31, %c0_32, %c24] : memref<16x16x72xf32, #tpu.memory_space<vmem>>, vector<16x16x8xf32>
    tpu.vector_store %arg9[%c0_31, %c0_32, %c24], %23 {strides = array<i32>} : memref<16x16x72xf32, #tpu.memory_space<vmem>>, vector<16x16x8xf32>,
    %c1_33 = arith.constant 1 : index
    %c1_34 = arith.constant 1 : index
    %c0_35 = arith.constant 0 : index
    %25 = vector.load %arg8[%c1_33, %c1_34, %c0_35] : memref<18x18x8xf32, #tpu.memory_space<vmem>>, vector<16x16x8xf32>
    %c0_36 = arith.constant 0 : index
    %c0_37 = arith.constant 0 : index
    %c32 = arith.constant 32 : index
    %26 = vector.load %arg9[%c0_36, %c0_37, %c32] : memref<16x16x72xf32, #tpu.memory_space<vmem>>, vector<16x16x8xf32>
    tpu.vector_store %arg9[%c0_36, %c0_37, %c32], %25 {strides = array<i32>} : memref<16x16x72xf32, #tpu.memory_space<vmem>>, vector<16x16x8xf32>,
    %c1_38 = arith.constant 1 : index
    %c2_39 = arith.constant 2 : index
    %c0_40 = arith.constant 0 : index
    %27 = vector.load %arg8[%c1_38, %c2_39, %c0_40] : memref<18x18x8xf32, #tpu.memory_space<vmem>>, vector<16x16x8xf32>
    %c0_41 = arith.constant 0 : index
    %c0_42 = arith.constant 0 : index
    %c40 = arith.constant 40 : index
    %28 = vector.load %arg9[%c0_41, %c0_42, %c40] : memref<16x16x72xf32, #tpu.memory_space<vmem>>, vector<16x16x8xf32>
    tpu.vector_store %arg9[%c0_41, %c0_42, %c40], %27 {strides = array<i32>} : memref<16x16x72xf32, #tpu.memory_space<vmem>>, vector<16x16x8xf32>,
    %c2_43 = arith.constant 2 : index
    %c0_44 = arith.constant 0 : index
    %c0_45 = arith.constant 0 : index
    %29 = vector.load %arg8[%c2_43, %c0_44, %c0_45] : memref<18x18x8xf32, #tpu.memory_space<vmem>>, vector<16x16x8xf32>
    %c0_46 = arith.constant 0 : index
    %c0_47 = arith.constant 0 : index
    %c48 = arith.constant 48 : index
    %30 = vector.load %arg9[%c0_46, %c0_47, %c48] : memref<16x16x72xf32, #tpu.memory_space<vmem>>, vector<16x16x8xf32>
    tpu.vector_store %arg9[%c0_46, %c0_47, %c48], %29 {strides = array<i32>} : memref<16x16x72xf32, #tpu.memory_space<vmem>>, vector<16x16x8xf32>,
    %c2_48 = arith.constant 2 : index
    %c1_49 = arith.constant 1 : index
    %c0_50 = arith.constant 0 : index
    %31 = vector.load %arg8[%c2_48, %c1_49, %c0_50] : memref<18x18x8xf32, #tpu.memory_space<vmem>>, vector<16x16x8xf32>
    %c0_51 = arith.constant 0 : index
    %c0_52 = arith.constant 0 : index
    %c56 = arith.constant 56 : index
    %32 = vector.load %arg9[%c0_51, %c0_52, %c56] : memref<16x16x72xf32, #tpu.memory_space<vmem>>, vector<16x16x8xf32>
    tpu.vector_store %arg9[%c0_51, %c0_52, %c56], %31 {strides = array<i32>} : memref<16x16x72xf32, #tpu.memory_space<vmem>>, vector<16x16x8xf32>,
    %c2_53 = arith.constant 2 : index
    %c2_54 = arith.constant 2 : index
    %c0_55 = arith.constant 0 : index
    %33 = vector.load %arg8[%c2_53, %c2_54, %c0_55] : memref<18x18x8xf32, #tpu.memory_space<vmem>>, vector<16x16x8xf32>
    %c0_56 = arith.constant 0 : index
    %c0_57 = arith.constant 0 : index
    %c64 = arith.constant 64 : index
    %34 = vector.load %arg9[%c0_56, %c0_57, %c64] : memref<16x16x72xf32, #tpu.memory_space<vmem>>, vector<16x16x8xf32>
    tpu.vector_store %arg9[%c0_56, %c0_57, %c64], %33 {strides = array<i32>} : memref<16x16x72xf32, #tpu.memory_space<vmem>>, vector<16x16x8xf32>,
    %c0_58 = arith.constant 0 : index
    %c0_59 = arith.constant 0 : index
    %c0_60 = arith.constant 0 : index
    %35 = vector.load %arg9[%c0_58, %c0_59, %c0_60] : memref<16x16x72xf32, #tpu.memory_space<vmem>>, vector<16x16x72xf32>
    %c0_61 = arith.constant 0 : index
    %c0_62 = arith.constant 0 : index
    %36 = vector.load %arg2[%c0_61, %c0_62] : memref<72x8xf32, #tpu.memory_space<vmem>>, vector<72x8xf32>
    %cst_63 = arith.constant dense<0.000000e+00> : vector<16x16x8xf32>
    %37 = tpu.matmul %35, %36, %cst_63 {dimension_numbers = #tpu.dot_dimension_numbers<[2], [0], [0, 1], [1], [0, 0, 0, 1, 1, 1], [], []>} : vector<16x16x72xf32>, vector<72x8xf32>, vector<16x16x8xf32> -> vector<16x16x8xf32>
    %38 = vector.shape_cast %37 : vector<16x16x8xf32> to vector<1x16x16x8xf32>
    %c0_64 = arith.constant 0 : index
    %c0_65 = arith.constant 0 : index
    %c0_66 = arith.constant 0 : index
    %c0_67 = arith.constant 0 : index
    %39 = vector.load %arg5[%c0_64, %c0_65, %c0_66, %c0_67] : memref<1x16x16x8xf32, #tpu.memory_space<vmem>>, vector<1x16x16x8xf32>
    tpu.vector_store %arg5[%c0_64, %c0_65, %c0_66, %c0_67], %38 {strides = array<i32>} : memref<1x16x16x8xf32, #tpu.memory_space<vmem>>, vector<1x16x16x8xf32>,
    %cst_68 = arith.constant dense<0.000000e+00> : vector<8xf32>
    %40 = vector.multi_reduction <add>, %37, %cst_68 [0, 1] : vector<16x16x8xf32> to vector<8xf32>
    %41 = vector.shape_cast %40 : vector<8xf32> to vector<1x1x8xf32>
    %c0_69 = arith.constant 0 : index
    %c0_70 = arith.constant 0 : index
    %c0_71 = arith.constant 0 : index
    %42 = vector.load %arg6[%c0_69, %c0_70, %c0_71] : memref<1x1x8xf32, #tpu.memory_space<vmem>>, vector<1x1x8xf32>
    tpu.vector_store %arg6[%c0_69, %c0_70, %c0_71], %41 {strides = array<i32>} : memref<1x1x8xf32, #tpu.memory_space<vmem>>, vector<1x1x8xf32>,
    %43 = arith.mulf %37, %37 : vector<16x16x8xf32>
    %cst_72 = arith.constant dense<0.000000e+00> : vector<8xf32>
    %44 = vector.multi_reduction <add>, %43, %cst_72 [0, 1] : vector<16x16x8xf32> to vector<8xf32>
    %45 = vector.shape_cast %44 : vector<8xf32> to vector<1x1x8xf32>
    %c0_73 = arith.constant 0 : index
    %c0_74 = arith.constant 0 : index
    %c0_75 = arith.constant 0 : index
    %46 = vector.load %arg7[%c0_73, %c0_74, %c0_75] : memref<1x1x8xf32, #tpu.memory_space<vmem>>, vector<1x1x8xf32>
    tpu.vector_store %arg7[%c0_73, %c0_74, %c0_75], %45 {strides = array<i32>} : memref<1x1x8xf32, #tpu.memory_space<vmem>>, vector<1x1x8xf32>,
    return
  }
  func.func @transform_0(%arg0: i32) -> (i32, i32, i32, i32) {
    %c0_i32 = arith.constant 0 : i32
    %c0_i32_0 = arith.constant 0 : i32
    %c0_i32_1 = arith.constant 0 : i32
    %c0_i32_2 = arith.constant 0 : i32
    return %arg0, %c0_i32, %c0_i32_0, %c0_i32_1 : i32, i32, i32, i32
  }
  func.func @transform_1(%arg0: i32) -> (i32, i32) {
    %c0_i32 = arith.constant 0 : i32
    %c0_i32_0 = arith.constant 0 : i32
    %c0_i32_1 = arith.constant 0 : i32
    return %c0_i32, %c0_i32_0 : i32, i32
  }
  func.func @transform_2(%arg0: i32) -> (i32, i32) {
    %c0_i32 = arith.constant 0 : i32
    %c0_i32_0 = arith.constant 0 : i32
    %c0_i32_1 = arith.constant 0 : i32
    return %c0_i32, %c0_i32_0 : i32, i32
  }
  func.func @transform_3(%arg0: i32) -> (i32, i32) {
    %c0_i32 = arith.constant 0 : i32
    %c0_i32_0 = arith.constant 0 : i32
    %c0_i32_1 = arith.constant 0 : i32
    return %c0_i32, %c0_i32_0 : i32, i32
  }
  func.func @transform_4(%arg0: i32) -> (i32, i32, i32, i32) {
    %c0_i32 = arith.constant 0 : i32
    %c0_i32_0 = arith.constant 0 : i32
    %c0_i32_1 = arith.constant 0 : i32
    %c0_i32_2 = arith.constant 0 : i32
    return %arg0, %c0_i32, %c0_i32_0, %c0_i32_1 : i32, i32, i32, i32
  }
  func.func @transform_5(%arg0: i32) -> (i32, i32, i32) {
    %c0_i32 = arith.constant 0 : i32
    %c0_i32_0 = arith.constant 0 : i32
    %c0_i32_1 = arith.constant 0 : i32
    return %arg0, %c0_i32, %c0_i32_0 : i32, i32, i32
  }
  func.func @transform_6(%arg0: i32) -> (i32, i32, i32) {
    %c0_i32 = arith.constant 0 : i32
    %c0_i32_0 = arith.constant 0 : i32
    %c0_i32_1 = arith.constant 0 : i32
    return %arg0, %c0_i32, %c0_i32_0 : i32, i32, i32
  }
}

module attributes {stable_mosaic.version = 11 : i64} {
  func.func @_bn_relu_apply_kernel(%arg0: i32, %arg1: i32, %arg2: memref<1x8x128xf32, #tpu.memory_space<vmem>>, %arg3: memref<1x128xf32, #tpu.memory_space<vmem>>, %arg4: memref<1x128xf32, #tpu.memory_space<vmem>>, %arg5: memref<1x8x128xf32, #tpu.memory_space<vmem>>) attributes {dimension_semantics = [#tpu.dimension_semantics<parallel>, #tpu.dimension_semantics<parallel>], iteration_bounds = array<i64: 2, 2>, scalar_prefetch = 0 : i64, scratch_operands = 0 : i64, tpu.core_type = #tpu.core_type<tc>, window_params = [{transform_indices = @transform_0, window_bounds = array<i64: 1, 8, 128>}, {pipeline_mode = #tpu.pipeline_mode<synchronous>, transform_indices = @transform_1, window_bounds = array<i64: 1, 128>}, {pipeline_mode = #tpu.pipeline_mode<synchronous>, transform_indices = @transform_2, window_bounds = array<i64: 1, 128>}, {transform_indices = @transform_3, window_bounds = array<i64: 1, 8, 128>}]} {
    %c0 = arith.constant 0 : index
    %c0_0 = arith.constant 0 : index
    %c0_1 = arith.constant 0 : index
    %0 = vector.load %arg2[%c0, %c0_0, %c0_1] : memref<1x8x128xf32, #tpu.memory_space<vmem>>, vector<1x8x128xf32>
    %c0_2 = arith.constant 0 : index
    %c0_3 = arith.constant 0 : index
    %1 = vector.load %arg3[%c0_2, %c0_3] : memref<1x128xf32, #tpu.memory_space<vmem>>, vector<1x128xf32>
    %2 = vector.shape_cast %1 : vector<1x128xf32> to vector<128xf32>
    %3 = vector.shape_cast %2 : vector<128xf32> to vector<1x1x128xf32>
    %4 = vector.broadcast %3 : vector<1x1x128xf32> to vector<1x8x128xf32>
    %5 = arith.mulf %0, %4 : vector<1x8x128xf32>
    %c0_4 = arith.constant 0 : index
    %c0_5 = arith.constant 0 : index
    %6 = vector.load %arg4[%c0_4, %c0_5] : memref<1x128xf32, #tpu.memory_space<vmem>>, vector<1x128xf32>
    %7 = vector.shape_cast %6 : vector<1x128xf32> to vector<128xf32>
    %8 = vector.shape_cast %7 : vector<128xf32> to vector<1x1x128xf32>
    %9 = vector.broadcast %8 : vector<1x1x128xf32> to vector<1x8x128xf32>
    %10 = arith.addf %5, %9 : vector<1x8x128xf32>
    %cst = arith.constant 0.000000e+00 : f32
    %11 = vector.broadcast %cst : f32 to vector<1x8x128xf32>
    %12 = arith.maximumf %10, %11 : vector<1x8x128xf32>
    %c0_6 = arith.constant 0 : index
    %c0_7 = arith.constant 0 : index
    %c0_8 = arith.constant 0 : index
    %13 = vector.load %arg5[%c0_6, %c0_7, %c0_8] : memref<1x8x128xf32, #tpu.memory_space<vmem>>, vector<1x8x128xf32>
    tpu.vector_store %arg5[%c0_6, %c0_7, %c0_8], %12 {strides = array<i32>} : memref<1x8x128xf32, #tpu.memory_space<vmem>>, vector<1x8x128xf32>,
    return
  }
  func.func @transform_0(%arg0: i32, %arg1: i32) -> (i32, i32, i32) {
    %c0_i32 = arith.constant 0 : i32
    %c0_i32_0 = arith.constant 0 : i32
    return %arg0, %arg1, %c0_i32 : i32, i32, i32
  }
  func.func @transform_1(%arg0: i32, %arg1: i32) -> (i32, i32) {
    %c0_i32 = arith.constant 0 : i32
    %c0_i32_0 = arith.constant 0 : i32
    %c0_i32_1 = arith.constant 0 : i32
    return %c0_i32, %c0_i32_0 : i32, i32
  }
  func.func @transform_2(%arg0: i32, %arg1: i32) -> (i32, i32) {
    %c0_i32 = arith.constant 0 : i32
    %c0_i32_0 = arith.constant 0 : i32
    %c0_i32_1 = arith.constant 0 : i32
    return %c0_i32, %c0_i32_0 : i32, i32
  }
  func.func @transform_3(%arg0: i32, %arg1: i32) -> (i32, i32, i32) {
    %c0_i32 = arith.constant 0 : i32
    %c0_i32_0 = arith.constant 0 : i32
    return %arg0, %arg1, %c0_i32 : i32, i32, i32
  }
}

</mosaic_0001>

<bundles_post_ra>
// kernel: tile.18
= control target key start
LH: loop header
LB: loop body
LE: loop exit
PB: predicated region body
PF: predicated region fallthrough
CT: control target
= control target key end

     0   :  { %s28_s0 = inlined_call_operand.vmem [shape: f32[8], index: 0, kind: input, shape index: {}]   ;;  %s29_s1 = inlined_call_operand.vmem [shape: f32[16,8], index: 1, kind: output, shape index: {}]  }
   0x1   :  { %v4_v0 = vld [vmem:[%s28_s0] ss:$0 sm:$0xff] }
   0x2   :  { %5 = vst [vmem:[%s29_s1] sm:$0xff] %v4_v0  ;;  %8 = vst [vmem:[%s29_s1 + $0x8] sm:$0xff] %v4_v0 }

// kernel: tile.19
= control target key start
LH: loop header
LB: loop body
LE: loop exit
PB: predicated region body
PF: predicated region fallthrough
CT: control target
= control target key end

     0   :  { %s131_s10 = smov 120   ;;  %s132_s11 = smov 104   ;;  %vm3_vm0 = vcmask 64512   ;;  %vm9_vm1 = vcmask 1048512   ;;  %vm15_vm2 = vcmask 982912   ;;  %vm21_vm3 = vcmask 917312   ;;  %s207_s0 = inlined_call_operand.vmem [shape: f32[16,8], index: 0, kind: input, shape index: {}]   ;;  %s208_s1 = inlined_call_operand.vmem [shape: f32[1,128], index: 1, kind: output, shape index: {}]  }
   0x1   :  { %v101_v0 = vld [vmem:[%s207_s0 + $0xf] sm:$0x1]   ;;  %v103_v1 = vld [vmem:[%s207_s0 + $0xd] sm:$0x1]   ;;  %v102_v2 = vld [vmem:[%s207_s0 + $0xe] sm:$0x1]  }
   0x2   :  { %7 = vrot.lane.b32.xlu0 %v101_v0, %s131_s10  ;;  %19 = vrot.lane.b32.xlu1 %v103_v1, %s132_s11  ;;  %v104_v3 = vld [vmem:[%s207_s0 + $0xc] sm:$0x1]   ;;  %s133_s16 = smov 112   ;;  %s134_s17 = smov 96   ;;  %v105_v4 = vld [vmem:[%s207_s0 + $0xb] sm:$0x1]  }
   0x3   :  { %v106_v5 = vld [vmem:[%s207_s0 + $0xa] sm:$0x1]   ;;  %v2_v6 = vld [vmem:[%s207_s0] sm:$0x1]   ;;  %s135_s24 = smov 88   ;;  %s136_s25 = smov 80  }
   0x4   :  { %4 = vst.msk [vmem:[#allocation0] sm:$0x1] %vm3_vm0, %v2_v6   ;;  %v107_v7 = vld [vmem:[%s207_s0 + $0x9] sm:$0x1]   ;;  %v108_v8 = vld [vmem:[%s207_s0 + $0x8] sm:$0x1]  }
   0x5   :  { %s137_s30 = smov 72   ;;  %s138_s2 = smov 64   ;;  %v109_v9 = vld [vmem:[%s207_s0 + $0x7] sm:$0x1]   ;;  %v110_v10 = vld [vmem:[%s207_s0 + $0x6] sm:$0x1]  }
   0x6   :  { %13 = vrot.lane.b32.xlu0 %v102_v2, %s133_s16  ;;  %25 = vrot.lane.b32.xlu1 %v104_v3, %s134_s17  ;;  %s139_s7 = smov 56   ;;  %s140_s8 = smov 48   ;;  %v111_v11 = vld [vmem:[%s207_s0 + $0x5] sm:$0x1]   ;;  %v112_v12 = vld [vmem:[%s207_s0 + $0x4] sm:$0x1]  }
   0x7   :  { %s141_s13 = smov 40   ;;  %s142_s14 = smov 32   ;;  %v113_v13 = vld [vmem:[%s207_s0 + $0x3] sm:$0x1]   ;;  %v114_v14 = vld [vmem:[%s207_s0 + $0x2] sm:$0x1]  }
   0x8   :  { %s143_s19 = smov 24   ;;  %s144_s20 = smov 16   ;;  %v115_v15 = vld [vmem:[%s207_s0 + $0x1] sm:$0x1]   ;;  %vm27_vm4 = vcmask 851712   ;;  %vm33_vm5 = vcmask 786112  }
   0x9   :  { %s145_s0 = smov 8   ;;  %vm39_vm6 = vcmask 720512   ;;  %vm45_vm7 = vcmask 654912   ;;  %vm51_vm8 = vcmask 589312   ;;  %vm57_vm9 = vcmask 523712  }
   0xa   :  { %31 = vrot.lane.b32.xlu0 %v105_v4, %s135_s24  ;;  %37 = vrot.lane.b32.xlu1 %v106_v5, %s136_s25  ;;  %vm63_vm10 = vcmask 458112   ;;  %vm69_vm11 = vcmask 392512   ;;  %vm75_vm12 = vcmask 326912   ;;  %vm81_vm13 = vcmask 261312  }
   0xb   :  { %vm87_vm14 = vcmask 195712   ;;  %vm93_vm15 = vcmask 130112  }
   0xe   :  { %43 = vrot.lane.b32.xlu0 %v107_v7, %s137_s30  ;;  %49 = vrot.lane.b32.xlu1 %v108_v8, %s138_s2 }
  0x12   :  { %55 = vrot.lane.b32.xlu0 %v109_v9, %s139_s7  ;;  %61 = vrot.lane.b32.xlu1 %v110_v10, %s140_s8 }
  0x16   :  { %67 = vrot.lane.b32.xlu0 %v111_v11, %s141_s13  ;;  %73 = vrot.lane.b32.xlu1 %v112_v12, %s142_s14 }
  0x1a   :  { %79 = vrot.lane.b32.xlu0 %v113_v13, %s143_s19  ;;  %85 = vrot.lane.b32.xlu1 %v114_v14, %s144_s20 }
  0x1e   :  { %91 = vrot.lane.b32.xlu0 %v115_v15, %s145_s0 }
  0x74   :  { %v8_v16 = vpop.permute.xlu0 %7   ;;  %v20_v17 = vpop.permute.xlu1 %19  }
  0x75   :  { %10 = vst.msk [vmem:[#allocation0] sm:$0x1] %vm9_vm1, %v8_v16  }
  0x78   :  { %v14_v18 = vpop.permute.xlu0 %13   ;;  %v26_v19 = vpop.permute.xlu1 %25  }
  0x79   :  { %16 = vst.msk [vmem:[#allocation0] sm:$0x1] %vm15_vm2, %v14_v18  }
  0x7a   :  { %22 = vst.msk [vmem:[#allocation0] sm:$0x1] %vm21_vm3, %v20_v17  }
  0x7b   :  { %28 = vst.msk [vmem:[#allocation0] sm:$0x1] %vm27_vm4, %v26_v19  }
  0x7c   :  { %v32_v20 = vpop.permute.xlu0 %31   ;;  %v38_v21 = vpop.permute.xlu1 %37  }
  0x7d   :  { %34 = vst.msk [vmem:[#allocation0] sm:$0x1] %vm33_vm5, %v32_v20  }
  0x7e   :  { %40 = vst.msk [vmem:[#allocation0] sm:$0x1] %vm39_vm6, %v38_v21  }
  0x80   :  { %v44_v22 = vpop.permute.xlu0 %43   ;;  %v50_v23 = vpop.permute.xlu1 %49  }
  0x81   :  { %46 = vst.msk [vmem:[#allocation0] sm:$0x1] %vm45_vm7, %v44_v22  }
  0x82   :  { %52 = vst.msk [vmem:[#allocation0] sm:$0x1] %vm51_vm8, %v50_v23  }
  0x84   :  { %v56_v24 = vpop.permute.xlu0 %55   ;;  %v62_v25 = vpop.permute.xlu1 %61  }
  0x85   :  { %58 = vst.msk [vmem:[#allocation0] sm:$0x1] %vm57_vm9, %v56_v24  }
  0x86   :  { %64 = vst.msk [vmem:[#allocation0] sm:$0x1] %vm63_vm10, %v62_v25  }
  0x88   :  { %v68_v26 = vpop.permute.xlu0 %67   ;;  %v74_v27 = vpop.permute.xlu1 %73  }
  0x89   :  { %70 = vst.msk [vmem:[#allocation0] sm:$0x1] %vm69_vm11, %v68_v26  }
  0x8a   :  { %76 = vst.msk [vmem:[#allocation0] sm:$0x1] %vm75_vm12, %v74_v27  }
  0x8c   :  { %v80_v28 = vpop.permute.xlu0 %79   ;;  %v86_v29 = vpop.permute.xlu1 %85  }
  0x8d   :  { %82 = vst.msk [vmem:[#allocation0] sm:$0x1] %vm81_vm13, %v80_v28  }
  0x8e   :  { %88 = vst.msk [vmem:[#allocation0] sm:$0x1] %vm87_vm14, %v86_v29  }
  0x90   :  { %v92_v30 = vpop.permute.xlu0 %91  }
  0x91   :  { %94 = vst.msk [vmem:[#allocation0] sm:$0x1] %vm93_vm15, %v92_v30  }
  0x98   :  { %v98_v31 = vld [vmem:[#allocation0] sm:$0x1] }
  0x99   :  { %100 = vst [vmem:[%s208_s1] sm:$0x1] %v98_v31 }

// kernel: conv_block_forward.5
= control target key start
LH: loop header
LB: loop body
LE: loop exit
PB: predicated region body
PF: predicated region fallthrough
CT: control target
= control target key end

     0   :  { %s420_s12 = smov 0   ;;  %s422_s13 = smov 0   ;;  %s471_s0 = inlined_call_operand.vmem [shape: f32[2,16,128], index: 0, kind: input, shape index: {}]   ;;  %s472_s1 = inlined_call_operand.vmem [shape: f32[1,128], index: 1, kind: input, shape index: {}]   ;;  %s473_s2 = inlined_call_operand.vmem [shape: f32[1,128], index: 2, kind: input, shape index: {}]   ;;  %s474_s3 = inlined_call_operand.vmem [shape: f32[2,16,128], index: 3, kind: output, shape index: {}]  }
   0x1   :  { %s424_s14 = smov 0   ;;  %s426_s15 = smov 0  }
   0x2   :  { %s428_s16 = smov 0  }
   0x3 LB: > { %s22_s17 = sadd.s32 1, %s390_s14  ;;  %s25_s18 = sadd.s32 1, %s394_s15  ;;  %s398_s16 = sphi %s428_s16, %s13_s16   ;;  %s394_s15 = sphi %s426_s15, %s478_s15   ;;  %s390_s14 = sphi %s424_s14, %s477_s14   ;;  %s386_s13 = sphi %s422_s13, %s476_s13   ;;  %s382_s12 = sphi %s420_s12, %s475_s12  }
   0x4   : > { %p23_p0 = scmp.ge.s32.totalorder %s22_s17, 2  ;;  %p311_p1 = scmp.ge.s32.totalorder %s398_s16, 1 }
   0x5   : > { %p156_p2 = scmp.lt.s32.totalorder %s398_s16, 5 }
   0x6   : > { %s480_s17 = smov (%p23_p0, %s22_s17), 0  ;;  %s482_s18 = smov (!%p23_p0, %s25_s18), %s394_s15 }
   0x7   : > { %p157_p3 = pnand %p311_p1, %p156_p2  ;;  %p27_p4 = scmp.ge.s32.totalorder %s482_s18, 2 }
   0x8   : > { %p186_p5 = scmp.lt.s32.totalorder (!%p157_p3), %s386_s13, 1  ;;  %p188_p6 = scmp.lt.s32.totalorder (!%p157_p3), %s382_s12, 1  ;;  %v316_v0 = vld [vmem:[%s472_s1] ss:$0 sm:$0xff] (!%p157_p3) }
   0x9   : > { %s484_s18 = smov (%p27_p4, %s482_s18), 0  ;;  %160 = sbr.rel (%p157_p3) target bundleno = 29 (0x1d), region = 32 }
   0xa   : > { %v317_v2 = vld [vmem:[%s473_s2] ss:$0 sm:$0xff] (!%p157_p3) }
  0x10   : > { %s486_s13 = smov (!%p186_p5, %s386_s13), 1  ;;  %s488_s12 = smov (!%p188_p6, %s382_s12), 1 }
  0x11   : > { %s312_s19 = sshll.u32 %s486_s13, 1 }
  0x12   : > { %s191_s20 = sadd.s32 %s312_s19, %s488_s12 }
  0x13   : > { %s313_s21 = sshll.u32 %s191_s20, 3 }
  0x14   : > { %s193_s26 = scalar_lea.vmem %s471_s0, %s313_s21  ;;  %s201_s4 = scalar_lea.vmem %s474_s3, %s313_s21 }
  0x15   : > { %v202_v1 = vld [vmem:[%s193_s26] sm:$0xff] }
  0x16   : > { %v210_v3 = vmul.f32 %v316_v0, %v202_v1 }
  0x18   : > { %v218_v4 = vadd.f32 %v317_v2, %v210_v3 }
  0x1a   : > { %v219_v5 = vmax.f32 %v218_v4, 0.0 }
  0x1c   : > { %220 = vst [vmem:[%s201_s4] sm:$0xff] %v219_v5 }
  0x1d PF: > { %s13_s16 = sadd.s32 1, %s398_s16   ;;  %s475_s12 = smov %s390_s14 }
  0x1e   : > { %p10_p7 = scmp.ge.s32.totalorder %s13_s16, 6   ;;  %s476_s13 = smov %s394_s15 }
  0x1f   : > { %s477_s14 = smov %s480_s17  ;;  %s478_s15 = smov %s484_s18 }
  0x20   :  { %12 = sbr.rel (!%p10_p7) target bundleno = 3 (0x3), region = 62 }

// kernel: conv_block_forward.3
= control target key start
LH: loop header
LB: loop body
LE: loop exit
PB: predicated region body
PF: predicated region fallthrough
CT: control target
= control target key end

     0   :  { %s2979_s21 = smov 0   ;;  %s4191_s0 = inlined_call_operand.vmem [shape: f32[2,16,16,4], index: 0, kind: input, shape index: {}]   ;;  %s4192_s1 = inlined_call_operand.vmem [shape: f32[36,8], index: 1, kind: input, shape index: {}]   ;;  %s4193_s2 = inlined_call_operand.vmem [shape: f32[1,4], index: 2, kind: input, shape index: {}]   ;;  %s4194_s3 = inlined_call_operand.vmem [shape: f32[1,4], index: 3, kind: input, shape index: {}]   ;;  %s4195_s4 = inlined_call_operand.vmem [shape: f32[2,16,16,8], index: 4, kind: output, shape index: {0}]   ;;  %s4196_s5 = inlined_call_operand.vmem [shape: f32[2,1,8], index: 5, kind: output, shape index: {1}]   ;;  %s4197_s6 = inlined_call_operand.vmem [shape: f32[2,1,8], index: 6, kind: output, shape index: {2}]  }
   0x1 LB: > { %s2751_s22 = sadd.s32 4294967295, %s2933_s21   ;;  %p2755_p0 = scmp.ge.s32.totalorder %s2933_s21, 1  ;;  %s2933_s21 = sphi %s2979_s21, %s17_s21  }
   0x2   : > { %p217_p1 = scmp.lt.s32.totalorder %s2933_s21, 3 }
   0x4   : > { %p218_p2 = pnand %p2755_p0, %p217_p1 }
   0x5   : > { %vm379_vm0 = vcmask (!%p218_p2), 31744   ;;  %vm382_vm1 = vcmask (!%p218_p2), 25600   ;;  %p2989_p3 = scmp.lt.s32.totalorder (!%p218_p2), %s2751_s22, 1  ;;  %v2935_v0 = vmov (!%p218_p2), 0.0   ;;  %v3057_v1 = vld [vmem:[%s4193_s2] ss:$0 sm:$0xff] (!%p218_p2) }
   0x6   : > { %221 = sbr.rel (%p218_p2) target bundleno = 905 (0x389), region = 36  ;;  %380 = vst.msk [vmem:[#allocation2] sm:$0xff] (!%p218_p2), %vm379_vm0, %v2935_v0  ;;  %381 = vst.msk [vmem:[#allocation2 + $0x8] sm:$0xff] (!%p218_p2), %vm379_vm0, %v2935_v0  ;;  %v3069_v2 = vld [vmem:[%s4194_s3] ss:$0 sm:$0xff] (!%p218_p2)  ;;  %s2936_s8 = smov (!%p218_p2), 4  }
   0x7   : > { %384 = vst.msk [vmem:[#allocation2 + $0x18] sm:$0xff] (!%p218_p2), %vm379_vm0, %v2935_v0  ;;  %385 = vst.msk [vmem:[#allocation2 + $0x20] sm:$0xff] (!%p218_p2), %vm379_vm0, %v2935_v0  ;;  %s2937_s9 = smov (!%p218_p2), 8   ;;  %vm692_vm2 = vcmask (!%p218_p2), 64544   ;;  %s2938_s10 = smov (!%p218_p2), 12   ;;  %vm2211_vm3 = vcmask (!%p218_p2), 1043456  }
   0x8   : > { %387 = vst.msk [vmem:[#allocation2 + $0x30] sm:$0xff] (!%p218_p2), %vm379_vm0, %v2935_v0  ;;  %388 = vst.msk [vmem:[#allocation2 + $0x38] sm:$0xff] (!%p218_p2), %vm379_vm0, %v2935_v0  ;;  %s2939_s11 = smov (!%p218_p2), 16   ;;  %s2940_s12 = smov (!%p218_p2), 20   ;;  %vm885_vm4 = vcmask (!%p218_p2), 97344   ;;  %vm1078_vm5 = vcmask (!%p218_p2), 130144  }
   0x9   : > { %390 = vst.msk [vmem:[#allocation2 + $0x48] sm:$0xff] (!%p218_p2), %vm379_vm0, %v2935_v0  ;;  %391 = vst.msk [vmem:[#allocation2 + $0x50] sm:$0xff] (!%p218_p2), %vm379_vm0, %v2935_v0  ;;  %s2941_s13 = smov (!%p218_p2), 24   ;;  %s2942_s25 = smov (!%p218_p2), 28   ;;  %vm1271_vm6 = vcmask (!%p218_p2), 162944   ;;  %vm1464_vm7 = vcmask (!%p218_p2), 195744  }
   0xa   : > { %393 = vst.msk [vmem:[#allocation2 + $0x60] sm:$0xff] (!%p218_p2), %vm379_vm0, %v2935_v0  ;;  %394 = vst.msk [vmem:[#allocation2 + $0x68] sm:$0xff] (!%p218_p2), %vm379_vm0, %v2935_v0  ;;  %s2943_s26 = smov (!%p218_p2), 32   ;;  %vm1658_vm8 = vcmask (!%p218_p2), 228544   ;;  %vm1851_vm9 = vcmask (!%p218_p2), 261344   ;;  %vm2044_vm10 = vcmask (!%p218_p2), 294144  }
   0xb   : > { %396 = vst.msk [vmem:[#allocation2 + $0x78] sm:$0xff] (!%p218_p2), %vm379_vm0, %v2935_v0  ;;  %397 = vst.msk [vmem:[#allocation2 + $0x80] sm:$0xff] (!%p218_p2), %vm379_vm0, %v2935_v0  ;;  %vm2114_vm11 = vcmask (!%p218_p2), 293888   ;;  %vm2440_vm12 = vcmask (!%p218_p2), 64512   ;;  %vm2542_vm13 = vcmask (!%p218_p2), 57344  }
   0xc   : > { %399 = vst.msk [vmem:[#allocation2 + $0x90] sm:$0xff] (!%p218_p2), %vm379_vm0, %v2935_v0  ;;  %400 = vst.msk [vmem:[#allocation2 + $0x98] sm:$0xff] (!%p218_p2), %vm379_vm0, %v2935_v0 }
   0xd   : > { %402 = vst.msk [vmem:[#allocation2 + $0xa8] sm:$0xff] %vm379_vm0, %v2935_v0  ;;  %403 = vst.msk [vmem:[#allocation2 + $0xb0] sm:$0xff] %vm379_vm0, %v2935_v0  ;;  %s4200_s22 = smov (!%p2989_p3, %s2751_s22), 1  ;;  %v532_v12 = vld [vmem:[#allocation2 + $0x1] sm:$0xff] }
   0xe   : > { %405 = vst.msk [vmem:[#allocation2 + $0xc0] sm:$0xff] %vm379_vm0, %v2935_v0  ;;  %406 = vst.msk [vmem:[#allocation2 + $0xc8] sm:$0xff] %vm379_vm0, %v2935_v0  ;;  %s2797_s24 = sshll.u32 %s4200_s22, 8  ;;  %596 = vrot.lane.b32.xlu0 %v532_v12, %s2936_s8  ;;  %s268_s16 = scalar_lea.vmem %s4197_s6, %s4200_s22 }
   0xf   : > { %408 = vst.msk [vmem:[#allocation2 + $0xd8] sm:$0xff] %vm379_vm0, %v2935_v0  ;;  %409 = vst.msk [vmem:[#allocation2 + $0xe0] sm:$0xff] %vm379_vm0, %v2935_v0  ;;  %s3064_s29 = scalar_lea.vmem %s4191_s0, %s2797_s24 }
  0x10   : > { %411 = vst.msk [vmem:[#allocation2 + $0xf0] sm:$0xff] %vm379_vm0, %v2935_v0  ;;  %412 = vst.msk [vmem:[#allocation2 + $0xf8] sm:$0xff] %vm379_vm0, %v2935_v0  ;;  %v269_v3 = vld [vmem:[%s3064_s29] sm:$0xff]  ;;  %v271_v4 = vld [vmem:[%s3064_s29 + $0x10] sm:$0xff] }
  0x11   : > { %414 = vst.msk [vmem:[#allocation2 + $0x108] sm:$0xff] %vm379_vm0, %v2935_v0  ;;  %415 = vst.msk [vmem:[#allocation2 + $0x110] sm:$0xff] %vm379_vm0, %v2935_v0  ;;  %v270_v5 = vld [vmem:[%s3064_s29 + $0x8] sm:$0xff]  ;;  %v308_v6 = vmul.f32 %v3057_v1, %v269_v3  ;;  %v310_v7 = vmul.f32 %v3057_v1, %v271_v4  ;;  %v273_v9 = vld [vmem:[%s3064_s29 + $0x20] sm:$0xff] }
  0x12   : > { %417 = vst.msk [vmem:[#allocation2 + $0x120] sm:$0xff] %vm379_vm0, %v2935_v0  ;;  %418 = vst.msk [vmem:[#allocation2 + $0x128] sm:$0xff] %vm379_vm0, %v2935_v0  ;;  %v309_v8 = vmul.f32 %v3057_v1, %v270_v5  ;;  %v272_v10 = vld [vmem:[%s3064_s29 + $0x18] sm:$0xff]  ;;  %v275_v11 = vld [vmem:[%s3064_s29 + $0x30] sm:$0xff]  ;;  %v312_v14 = vmul.f32 %v3057_v1, %v273_v9 }
  0x13   : > { %420 = vst.msk [vmem:[#allocation2 + $0x138] sm:$0xff] %vm379_vm0, %v2935_v0  ;;  %421 = vst.msk [vmem:[#allocation2 + $0x140] sm:$0xff] %vm379_vm0, %v2935_v0  ;;  %v311_v15 = vmul.f32 %v3057_v1, %v272_v10  ;;  %v314_v16 = vmul.f32 %v3057_v1, %v275_v11  ;;  %v274_v17 = vld [vmem:[%s3064_s29 + $0x28] sm:$0xff]  ;;  %v347_v18 = vadd.f32 %v3069_v2, %v308_v6  ;;  %v277_v22 = vld [vmem:[%s3064_s29 + $0x40] sm:$0xff] }
  0x14   : > { %423 = vst.msk [vmem:[#allocation2 + $0x150] sm:$0xff] %vm379_vm0, %v2935_v0  ;;  %424 = vst.msk [vmem:[#allocation2 + $0x158] sm:$0xff] %vm379_vm0, %v2935_v0  ;;  %v349_v19 = vadd.f32 %v3069_v2, %v310_v7  ;;  %v348_v20 = vadd.f32 %v3069_v2, %v309_v8  ;;  %v313_v21 = vmul.f32 %v3057_v1, %v274_v17  ;;  %v276_v23 = vld [vmem:[%s3064_s29 + $0x38] sm:$0xff]  ;;  %v279_v24 = vld [vmem:[%s3064_s29 + $0x50] sm:$0xff] }
  0x15   : > { %426 = vst.msk [vmem:[#allocation2 + $0x168] sm:$0xff] %vm379_vm0, %v2935_v0  ;;  %427 = vst.msk [vmem:[#allocation2 + $0x170] sm:$0xff] %vm379_vm0, %v2935_v0  ;;  %v351_v25 = vadd.f32 %v3069_v2, %v312_v14  ;;  %v350_v26 = vadd.f32 %v3069_v2, %v311_v15  ;;  %v353_v27 = vadd.f32 %v3069_v2, %v314_v16  ;;  %v278_v29 = vld [vmem:[%s3064_s29 + $0x48] sm:$0xff]  ;;  %v281_v30 = vld [vmem:[%s3064_s29 + $0x60] sm:$0xff] }
  0x16   : > { %429 = vst.msk [vmem:[#allocation2 + $0x180] sm:$0xff] %vm379_vm0, %v2935_v0  ;;  %430 = vst.msk [vmem:[#allocation2 + $0x188] sm:$0xff] %vm379_vm0, %v2935_v0  ;;  %v316_v28 = vmul.f32 %v3057_v1, %v277_v22  ;;  %v280_v31 = vld [vmem:[%s3064_s29 + $0x58] sm:$0xff]  ;;  %v352_v32 = vadd.f32 %v3069_v2, %v313_v21  ;;  %v315_v33 = vmul.f32 %v3057_v1, %v276_v23  ;;  %v283_v36 = vld [vmem:[%s3064_s29 + $0x70] sm:$0xff] }
  0x17   : > { %432 = vst.msk [vmem:[#allocation2 + $0x198] sm:$0xff] %vm379_vm0, %v2935_v0  ;;  %433 = vst.msk [vmem:[#allocation2 + $0x1a0] sm:$0xff] %vm379_vm0, %v2935_v0  ;;  %v318_v34 = vmul.f32 %v3057_v1, %v279_v24  ;;  %v317_v35 = vmul.f32 %v3057_v1, %v278_v29  ;;  %v282_v37 = vld [vmem:[%s3064_s29 + $0x68] sm:$0xff]  ;;  %v285_v38 = vld [vmem:[%s3064_s29 + $0x80] sm:$0xff]  ;;  %v320_v40 = vmul.f32 %v3057_v1, %v281_v30 }
  0x18   : > { %383 = vst.msk [vmem:[#allocation2 + $0x10] sm:$0x3] %vm382_vm1, %v2935_v0  ;;  %386 = vst.msk [vmem:[#allocation2 + $0x28] sm:$0x3] %vm382_vm1, %v2935_v0  ;;  %v355_v39 = vadd.f32 %v3069_v2, %v316_v28  ;;  %v319_v41 = vmul.f32 %v3057_v1, %v280_v31  ;;  %v322_v42 = vmul.f32 %v3057_v1, %v283_v36  ;;  %v284_v43 = vld [vmem:[%s3064_s29 + $0x78] sm:$0xff]  ;;  %v287_v44 = vld [vmem:[%s3064_s29 + $0x90] sm:$0xff] }
  0x19   : > { %389 = vst.msk [vmem:[#allocation2 + $0x40] sm:$0x3] %vm382_vm1, %v2935_v0  ;;  %392 = vst.msk [vmem:[#allocation2 + $0x58] sm:$0x3] %vm382_vm1, %v2935_v0  ;;  %v286_v45 = vld [vmem:[%s3064_s29 + $0x88] sm:$0xff]  ;;  %v354_v46 = vadd.f32 %v3069_v2, %v315_v33  ;;  %v357_v47 = vadd.f32 %v3069_v2, %v318_v34  ;;  %v356_v48 = vadd.f32 %v3069_v2, %v317_v35  ;;  %v289_v50 = vld [vmem:[%s3064_s29 + $0xa0] sm:$0xff] }
  0x1a   : > { %395 = vst.msk [vmem:[#allocation2 + $0x70] sm:$0x3] %vm382_vm1, %v2935_v0  ;;  %398 = vst.msk [vmem:[#allocation2 + $0x88] sm:$0x3] %vm382_vm1, %v2935_v0  ;;  %v321_v49 = vmul.f32 %v3057_v1, %v282_v37  ;;  %v288_v51 = vld [vmem:[%s3064_s29 + $0x98] sm:$0xff]  ;;  %v291_v52 = vld [vmem:[%s3064_s29 + $0xb0] sm:$0xff]  ;;  %v359_v53 = vadd.f32 %v3069_v2, %v320_v40  ;;  %v358_v54 = vadd.f32 %v3069_v2, %v319_v41 }
  0x1b   : > { %401 = vst.msk [vmem:[#allocation2 + $0xa0] sm:$0x3] %vm382_vm1, %v2935_v0  ;;  %404 = vst.msk [vmem:[#allocation2 + $0xb8] sm:$0x3] %vm382_vm1, %v2935_v0  ;;  %v361_v55 = vadd.f32 %v3069_v2, %v322_v42  ;;  %v324_v56 = vmul.f32 %v3057_v1, %v285_v38  ;;  %v290_v57 = vld [vmem:[%s3064_s29 + $0xa8] sm:$0xff]  ;;  %v323_v59 = vmul.f32 %v3057_v1, %v284_v43  ;;  %v293_v62 = vld [vmem:[%s3064_s29 + $0xc0] sm:$0xff] }
  0x1c   : > { %407 = vst.msk [vmem:[#allocation2 + $0xd0] sm:$0x3] %vm382_vm1, %v2935_v0  ;;  %410 = vst.msk [vmem:[#allocation2 + $0xe8] sm:$0x3] %vm382_vm1, %v2935_v0  ;;  %v360_v58 = vadd.f32 %v3069_v2, %v321_v49  ;;  %v326_v60 = vmul.f32 %v3057_v1, %v287_v44  ;;  %v325_v61 = vmul.f32 %v3057_v1, %v286_v45  ;;  %v292_v63 = vld [vmem:[%s3064_s29 + $0xb8] sm:$0xff]  ;;  %v295_v6 = vld [vmem:[%s3064_s29 + $0xd0] sm:$0xff] }
  0x1d   : > { %413 = vst.msk [vmem:[#allocation2 + $0x100] sm:$0x3] %vm382_vm1, %v2935_v0  ;;  %416 = vst.msk [vmem:[#allocation2 + $0x118] sm:$0x3] %vm382_vm1, %v2935_v0  ;;  %v328_v3 = vmul.f32 %v3057_v1, %v289_v50  ;;  %v327_v4 = vmul.f32 %v3057_v1, %v288_v51  ;;  %v330_v5 = vmul.f32 %v3057_v1, %v291_v52  ;;  %v294_v7 = vld [vmem:[%s3064_s29 + $0xc8] sm:$0xff]  ;;  %v297_v8 = vld [vmem:[%s3064_s29 + $0xe0] sm:$0xff] }
  0x1e   : > { %419 = vst.msk [vmem:[#allocation2 + $0x130] sm:$0x3] %vm382_vm1, %v2935_v0  ;;  %422 = vst.msk [vmem:[#allocation2 + $0x148] sm:$0x3] %vm382_vm1, %v2935_v0  ;;  %v362_v9 = vadd.f32 %v3069_v2, %v323_v59  ;;  %v365_v10 = vadd.f32 %v3069_v2, %v326_v60  ;;  %v364_v11 = vadd.f32 %v3069_v2, %v325_v61  ;;  %v468_v14 = vld [vmem:[#allocation2] sm:$0xff]  ;;  %v469_v15 = vld [vmem:[#allocation2 + $0x8] sm:$0xff] }
  0x1f   : > { %425 = vst.msk [vmem:[#allocation2 + $0x160] sm:$0x3] %vm382_vm1, %v2935_v0  ;;  %428 = vst.msk [vmem:[#allocation2 + $0x178] sm:$0x3] %vm382_vm1, %v2935_v0  ;;  %v533_v13 = vld [vmem:[#allocation2 + $0x9] sm:$0xff]  ;;  %v329_v12 = vmul.f32 %v3057_v1, %v290_v57  ;;  %v332_v21 = vmul.f32 %v3057_v1, %v293_v62  ;;  %v331_v24 = vmul.f32 %v3057_v1, %v292_v63 }
  0x20   : > { %431 = vst.msk [vmem:[#allocation2 + $0x190] sm:$0x3] %vm382_vm1, %v2935_v0  ;;  %434 = vst.msk [vmem:[#allocation2 + $0x1a8] sm:$0x3] %vm382_vm1, %v2935_v0  ;;  %598 = vrot.lane.b32.xlu0 %v533_v13, %s2936_s8  ;;  %v363_v0 = vadd.f32 %v3069_v2, %v324_v56  ;;  %v296_v13 = vld [vmem:[%s3064_s29 + $0xd8] sm:$0xff]  ;;  %v298_v22 = vld [vmem:[%s3064_s29 + $0xe8] sm:$0xff]  ;;  %v333_v29 = vmul.f32 %v3057_v1, %v294_v7  ;;  %v336_v30 = vmul.f32 %v3057_v1, %v297_v8 }
  0x21   : > { %436 = vst.msk [vmem:[#allocation2 + $0x19] sm:$0xff] %vm379_vm0, %v347_v18  ;;  %438 = vst.msk [vmem:[#allocation2 + $0x31] sm:$0xff] %vm379_vm0, %v349_v19  ;;  %v367_v18 = vadd.f32 %v3069_v2, %v328_v3  ;;  %v366_v19 = vadd.f32 %v3069_v2, %v327_v4  ;;  %v368_v23 = vadd.f32 %v3069_v2, %v329_v12 }
  0x22   : > { %437 = vst.msk [vmem:[#allocation2 + $0x21] sm:$0xff] %vm379_vm0, %v348_v20  ;;  %440 = vst.msk [vmem:[#allocation2 + $0x49] sm:$0xff] %vm379_vm0, %v351_v25  ;;  %v369_v20 = vadd.f32 %v3069_v2, %v330_v5  ;;  %v334_v25 = vmul.f32 %v3057_v1, %v295_v6  ;;  %v371_v28 = vadd.f32 %v3069_v2, %v332_v21 }
  0x23   : > { %439 = vst.msk [vmem:[#allocation2 + $0x39] sm:$0xff] %vm379_vm0, %v350_v26  ;;  %442 = vst.msk [vmem:[#allocation2 + $0x61] sm:$0xff] %vm379_vm0, %v353_v27  ;;  %v335_v31 = vmul.f32 %v3057_v1, %v296_v13  ;;  %v337_v34 = vmul.f32 %v3057_v1, %v298_v22  ;;  %v372_v35 = vadd.f32 %v3069_v2, %v333_v29 }
  0x24   : > { %441 = vst.msk [vmem:[#allocation2 + $0x51] sm:$0xff] %vm379_vm0, %v352_v32  ;;  %444 = vst.msk [vmem:[#allocation2 + $0x79] sm:$0xff] %vm379_vm0, %v355_v39  ;;  %v370_v32 = vadd.f32 %v3069_v2, %v331_v24  ;;  %v373_v33 = vadd.f32 %v3069_v2, %v334_v25  ;;  %v375_v36 = vadd.f32 %v3069_v2, %v336_v30 }
  0x25   : > { %443 = vst.msk [vmem:[#allocation2 + $0x69] sm:$0xff] %vm379_vm0, %v354_v46  ;;  %446 = vst.msk [vmem:[#allocation2 + $0x91] sm:$0xff] %vm379_vm0, %v357_v47  ;;  %v374_v37 = vadd.f32 %v3069_v2, %v335_v31  ;;  %v376_v1 = vadd.f32 %v3069_v2, %v337_v34  ;;  %v725_v34 = vld [vmem:[#allocation2 + $0x2] sm:$0xff] }
  0x26   : > { %445 = vst.msk [vmem:[#allocation2 + $0x81] sm:$0xff] %vm379_vm0, %v356_v48  ;;  %448 = vst.msk [vmem:[#allocation2 + $0xa9] sm:$0xff] %vm379_vm0, %v359_v53 }
  0x27   : > { %447 = vst.msk [vmem:[#allocation2 + $0x99] sm:$0xff] %vm379_vm0, %v358_v54  ;;  %450 = vst.msk [vmem:[#allocation2 + $0xc1] sm:$0xff] %vm379_vm0, %v361_v55 }
  0x28   : > { %449 = vst.msk [vmem:[#allocation2 + $0xb1] sm:$0xff] %vm379_vm0, %v360_v58  ;;  %v3159_v16 = vld [vmem:[#allocation2 + $0x19] sm:$0xff]  ;;  %v3161_v17 = vld [vmem:[#allocation2 + $0x31] sm:$0xff]  ;;  %452 = vst.msk [vmem:[#allocation2 + $0xd9] sm:$0xff] %vm379_vm0, %v363_v0 }
  0x29   : > { %500 = vst.msk [vmem:[#allocation3] sm:$0xff] %vm379_vm0, %v468_v14  ;;  %501 = vst.msk [vmem:[#allocation3 + $0x8] sm:$0xff] %vm379_vm0, %v469_v15  ;;  %600 = vrot.lane.b32.xlu1 %v3159_v16, %s2936_s8  ;;  %604 = vrot.lane.b32.xlu0 %v3161_v17, %s2936_s8  ;;  %v3181_v26 = vld [vmem:[#allocation2 + $0x21] sm:$0xff]  ;;  %v3183_v27 = vld [vmem:[#allocation2 + $0x49] sm:$0xff] }
  0x2a   : > { %451 = vst.msk [vmem:[#allocation2 + $0xc9] sm:$0xff] %vm379_vm0, %v362_v9  ;;  %454 = vst.msk [vmem:[#allocation2 + $0xf1] sm:$0xff] %vm379_vm0, %v365_v10  ;;  %v3207_v38 = vld [vmem:[#allocation2 + $0x39] sm:$0xff]  ;;  %v3209_v39 = vld [vmem:[#allocation2 + $0x61] sm:$0xff] }
  0x2b   : > { %453 = vst.msk [vmem:[#allocation2 + $0xe1] sm:$0xff] %vm379_vm0, %v364_v11  ;;  %456 = vst.msk [vmem:[#allocation2 + $0x109] sm:$0xff] %vm379_vm0, %v367_v18  ;;  %v3219_v40 = vld [vmem:[#allocation2 + $0x51] sm:$0xff]  ;;  %v3221_v2 = vld [vmem:[#allocation2 + $0x79] sm:$0xff] }
  0x2c   : > { %455 = vst.msk [vmem:[#allocation2 + $0xf9] sm:$0xff] %vm379_vm0, %v366_v19  ;;  %458 = vst.msk [vmem:[#allocation2 + $0x121] sm:$0xff] %vm379_vm0, %v369_v20  ;;  %v3227_v41 = vld [vmem:[#allocation2 + $0x69] sm:$0xff]  ;;  %v3229_v42 = vld [vmem:[#allocation2 + $0x91] sm:$0xff] }
  0x2d   : > { %457 = vst.msk [vmem:[#allocation2 + $0x111] sm:$0xff] %vm379_vm0, %v368_v23  ;;  %460 = vst.msk [vmem:[#allocation2 + $0x139] sm:$0xff] %vm379_vm0, %v371_v28  ;;  %602 = vrot.lane.b32.xlu1 %v3181_v26, %s2936_s8  ;;  %608 = vrot.lane.b32.xlu0 %v3183_v27, %s2936_s8  ;;  %v3235_v43 = vld [vmem:[#allocation2 + $0x81] sm:$0xff]  ;;  %v546_v44 = vld [vmem:[#allocation2 + $0xa9] sm:$0xff] }
  0x2e   : > { %459 = vst.msk [vmem:[#allocation2 + $0x129] sm:$0xff] %vm379_vm0, %v370_v32  ;;  %462 = vst.msk [vmem:[#allocation2 + $0x151] sm:$0xff] %vm379_vm0, %v373_v33  ;;  %v3237_v45 = vld [vmem:[#allocation2 + $0x18] sm:$0xff]  ;;  %v3241_v46 = vld [vmem:[#allocation2 + $0x30] sm:$0xff] }
  0x2f   : > { %461 = vst.msk [vmem:[#allocation2 + $0x141] sm:$0xff] %vm379_vm0, %v372_v35  ;;  %464 = vst.msk [vmem:[#allocation2 + $0x169] sm:$0xff] %vm379_vm0, %v375_v36  ;;  %v3243_v47 = vld [vmem:[#allocation2 + $0x99] sm:$0xff]  ;;  %v3249_v49 = vld [vmem:[#allocation2 + $0x48] sm:$0xff] }
  0x30   : > { %463 = vst.msk [vmem:[#allocation2 + $0x159] sm:$0xff] %vm379_vm0, %v374_v37  ;;  %465 = vst.msk [vmem:[#allocation2 + $0x171] sm:$0xff] %vm379_vm0, %v376_v1  ;;  %v3247_v48 = vld [vmem:[#allocation2 + $0x20] sm:$0xff]  ;;  %v3258_v51 = vld [vmem:[#allocation2 + $0x38] sm:$0xff] }
  0x31   : > { %606 = vrot.lane.b32.xlu1 %v3207_v38, %s2936_s8  ;;  %612 = vrot.lane.b32.xlu0 %v3209_v39, %s2936_s8  ;;  %502 = vst.msk [vmem:[#allocation3 + $0x10] sm:$0xff] %vm379_vm0, %v3237_v45  ;;  %504 = vst.msk [vmem:[#allocation3 + $0x20] sm:$0xff] %vm379_vm0, %v3241_v46  ;;  %v548_v50 = vld [vmem:[#allocation2 + $0xc1] sm:$0xff]  ;;  %v3266_v53 = vld [vmem:[#allocation2 + $0x50] sm:$0xff] }
  0x32   : > { %503 = vst.msk [vmem:[#allocation3 + $0x18] sm:$0xff] %vm379_vm0, %v3247_v48  ;;  %506 = vst.msk [vmem:[#allocation3 + $0x30] sm:$0xff] %vm379_vm0, %v3249_v49  ;;  %v3260_v52 = vld [vmem:[#allocation2 + $0x60] sm:$0xff]  ;;  %v3268_v54 = vld [vmem:[#allocation2 + $0x78] sm:$0xff] }
  0x33   : > { %505 = vst.msk [vmem:[#allocation3 + $0x28] sm:$0xff] %vm379_vm0, %v3258_v51  ;;  %508 = vst.msk [vmem:[#allocation3 + $0x40] sm:$0xff] %vm379_vm0, %v3260_v52  ;;  %v3270_v55 = vld [vmem:[#allocation2 + $0x68] sm:$0xff]  ;;  %v3278_v56 = vld [vmem:[#allocation2 + $0x90] sm:$0xff] }
  0x34   : > { %507 = vst.msk [vmem:[#allocation3 + $0x38] sm:$0xff] %vm379_vm0, %v3266_v53  ;;  %510 = vst.msk [vmem:[#allocation3 + $0x50] sm:$0xff] %vm379_vm0, %v3268_v54  ;;  %v3280_v57 = vld [vmem:[#allocation2 + $0x80] sm:$0xff]  ;;  %v3282_v58 = vld [vmem:[#allocation2 + $0xa8] sm:$0xff] }
  0x35   : > { %610 = vrot.lane.b32.xlu1 %v3219_v40, %s2936_s8  ;;  %616 = vrot.lane.b32.xlu0 %v3221_v2, %s2936_s8  ;;  %509 = vst.msk [vmem:[#allocation3 + $0x48] sm:$0xff] %vm379_vm0, %v3270_v55  ;;  %v547_v59 = vld [vmem:[#allocation2 + $0xb1] sm:$0xff]  ;;  %v550_v60 = vld [vmem:[#allocation2 + $0xd9] sm:$0xff]  ;;  %512 = vst.msk [vmem:[#allocation3 + $0x60] sm:$0xff] %vm379_vm0, %v3278_v56 }
  0x36   : > { %511 = vst.msk [vmem:[#allocation3 + $0x58] sm:$0xff] %vm379_vm0, %v3280_v57  ;;  %514 = vst.msk [vmem:[#allocation3 + $0x70] sm:$0xff] %vm379_vm0, %v3282_v58  ;;  %v3290_v61 = vld [vmem:[#allocation2 + $0x98] sm:$0xff]  ;;  %v3292_v62 = vld [vmem:[#allocation2 + $0xc0] sm:$0xff] }
  0x37   : > { %v3294_v63 = vld [vmem:[#allocation2 + $0xb0] sm:$0xff]  ;;  %513 = vst.msk [vmem:[#allocation3 + $0x68] sm:$0xff] %vm379_vm0, %v3290_v61  ;;  %516 = vst.msk [vmem:[#allocation3 + $0x80] sm:$0xff] %vm379_vm0, %v3292_v62  ;;  %v3305_v0 = vld [vmem:[#allocation2 + $0xd8] sm:$0xff] }
  0x38   : > { %515 = vst.msk [vmem:[#allocation3 + $0x78] sm:$0xff] %vm379_vm0, %v3294_v63  ;;  %v3307_v3 = vld [vmem:[#allocation2 + $0xc8] sm:$0xff]  ;;  %v3309_v4 = vld [vmem:[#allocation2 + $0xf0] sm:$0xff]  ;;  %518 = vst.msk [vmem:[#allocation3 + $0x90] sm:$0xff] %vm379_vm0, %v3305_v0 }
  0x39   : > { %614 = vrot.lane.b32.xlu1 %v3227_v41, %s2936_s8  ;;  %620 = vrot.lane.b32.xlu0 %v3229_v42, %s2936_s8  ;;  %517 = vst.msk [vmem:[#allocation3 + $0x88] sm:$0xff] %vm379_vm0, %v3307_v3  ;;  %520 = vst.msk [vmem:[#allocation3 + $0xa0] sm:$0xff] %vm379_vm0, %v3309_v4  ;;  %v3317_v5 = vld [vmem:[#allocation2 + $0xe0] sm:$0xff]  ;;  %v3319_v6 = vld [vmem:[#allocation2 + $0x108] sm:$0xff] }
  0x3a   : > { %v3321_v7 = vld [vmem:[#allocation2 + $0xf8] sm:$0xff]  ;;  %519 = vst.msk [vmem:[#allocation3 + $0x98] sm:$0xff] %vm379_vm0, %v3317_v5  ;;  %522 = vst.msk [vmem:[#allocation3 + $0xb0] sm:$0xff] %vm379_vm0, %v3319_v6  ;;  %v3329_v8 = vld [vmem:[#allocation2 + $0x120] sm:$0xff] }
  0x3b   : > { %521 = vst.msk [vmem:[#allocation3 + $0xa8] sm:$0xff] %vm379_vm0, %v3321_v7  ;;  %524 = vst.msk [vmem:[#allocation3 + $0xc0] sm:$0xff] %vm379_vm0, %v3329_v8  ;;  %v3335_v9 = vld [vmem:[#allocation2 + $0x110] sm:$0xff]  ;;  %v494_v12 = vld [vmem:[#allocation2 + $0x138] sm:$0xff] }
  0x3c   : > { %v549_v10 = vld [vmem:[#allocation2 + $0xc9] sm:$0xff]  ;;  %v552_v11 = vld [vmem:[#allocation2 + $0xf1] sm:$0xff]  ;;  %523 = vst.msk [vmem:[#allocation3 + $0xb8] sm:$0xff] %vm379_vm0, %v3335_v9  ;;  %526 = vst.msk [vmem:[#allocation3 + $0xd0] sm:$0xff] %vm379_vm0, %v494_v12 }
  0x3d   : > { %618 = vrot.lane.b32.xlu1 %v3235_v43, %s2936_s8  ;;  %624 = vrot.lane.b32.xlu0 %v546_v44, %s2936_s8  ;;  %v3342_v13 = vld [vmem:[#allocation2 + $0x128] sm:$0xff]  ;;  %v496_v18 = vld [vmem:[#allocation2 + $0x150] sm:$0xff]  ;;  %v495_v19 = vld [vmem:[#allocation2 + $0x140] sm:$0xff] }
  0x3e   : > { %v551_v14 = vld [vmem:[#allocation2 + $0xe1] sm:$0xff]  ;;  %v554_v15 = vld [vmem:[#allocation2 + $0x109] sm:$0xff]  ;;  %525 = vst.msk [vmem:[#allocation3 + $0xc8] sm:$0xff] %vm379_vm0, %v3342_v13  ;;  %528 = vst.msk [vmem:[#allocation3 + $0xe0] sm:$0xff] %vm379_vm0, %v496_v18 }
  0x3f   : > { %v553_v20 = vld [vmem:[#allocation2 + $0xf9] sm:$0xff]  ;;  %v556_v21 = vld [vmem:[#allocation2 + $0x121] sm:$0xff]  ;;  %527 = vst.msk [vmem:[#allocation3 + $0xd8] sm:$0xff] %vm379_vm0, %v495_v19  ;;  %v555_v24 = vld [vmem:[#allocation2 + $0x111] sm:$0xff] }
  0x40   : > { %v498_v22 = vld [vmem:[#allocation2 + $0x168] sm:$0xff]  ;;  %v497_v23 = vld [vmem:[#allocation2 + $0x158] sm:$0xff]  ;;  %v499_v28 = vld [vmem:[#allocation2 + $0x170] sm:$0xff] }
  0x41   : > { %622 = vrot.lane.b32.xlu1 %v3243_v47, %s2936_s8  ;;  %628 = vrot.lane.b32.xlu0 %v548_v50, %s2936_s8  ;;  %530 = vst.msk [vmem:[#allocation3 + $0xf0] sm:$0xff] %vm379_vm0, %v498_v22  ;;  %v558_v25 = vld [vmem:[#allocation2 + $0x139] sm:$0xff]  ;;  %529 = vst.msk [vmem:[#allocation3 + $0xe8] sm:$0xff] %vm379_vm0, %v497_v23  ;;  %v557_v29 = vld [vmem:[#allocation2 + $0x129] sm:$0xff] }
  0x42   : > { %v560_v30 = vld [vmem:[#allocation2 + $0x151] sm:$0xff]  ;;  %531 = vst.msk [vmem:[#allocation3 + $0xf8] sm:$0xff] %vm379_vm0, %v499_v28  ;;  %v559_v31 = vld [vmem:[#allocation2 + $0x141] sm:$0xff]  ;;  %v562_v32 = vld [vmem:[#allocation2 + $0x169] sm:$0xff] }
  0x43   : > { %v561_v33 = vld [vmem:[#allocation2 + $0x159] sm:$0xff]  ;;  %v563_v35 = vld [vmem:[#allocation2 + $0x171] sm:$0xff]  ;;  %v3373_v44 = vld [vmem:[#allocation2 + $0x22] sm:$0xff] }
  0x44   : > { %v3363_v36 = vld [vmem:[#allocation2 + $0x1a] sm:$0xff]  ;;  %v726_v37 = vld [vmem:[#allocation2 + $0xa] sm:$0xff]  ;;  %v3368_v1 = vld [vmem:[#allocation2 + $0x32] sm:$0xff] }
  0x45   : > { %626 = vrot.lane.b32.xlu1 %v547_v59, %s2936_s8  ;;  %632 = vrot.lane.b32.xlu0 %v550_v60, %s2936_s8  ;;  %v3375_v50 = vld [vmem:[#allocation2 + $0x4a] sm:$0xff]  ;;  %v3381_v59 = vld [vmem:[#allocation2 + $0x3a] sm:$0xff]  ;;  %v3383_v60 = vld [vmem:[#allocation2 + $0x62] sm:$0xff] }
  0x46   : > { %v3397_v12 = vld [vmem:[#allocation2 + $0x6a] sm:$0xff]  ;;  %v3413_v19 = vld [vmem:[#allocation2 + $0x9a] sm:$0xff] }
  0x47   : > { %v3407_v18 = vld [vmem:[#allocation2 + $0xaa] sm:$0xff]  ;;  %v743_v22 = vld [vmem:[#allocation2 + $0xda] sm:$0xff] }
  0x48   : > { %v3426_v23 = vld [vmem:[#allocation2 + $0xca] sm:$0xff] }
  0x49   : > { %630 = vrot.lane.b32.xlu1 %v549_v10, %s2936_s8  ;;  %636 = vrot.lane.b32.xlu0 %v552_v11, %s2936_s8  ;;  %v3389_v10 = vld [vmem:[#allocation2 + $0x52] sm:$0xff]  ;;  %v3391_v11 = vld [vmem:[#allocation2 + $0x7a] sm:$0xff]  ;;  %v747_v28 = vld [vmem:[#allocation2 + $0x10a] sm:$0xff] }
  0x4d   : > { %634 = vrot.lane.b32.xlu1 %v551_v14, %s2936_s8  ;;  %640 = vrot.lane.b32.xlu0 %v554_v15, %s2936_s8  ;;  %v3399_v14 = vld [vmem:[#allocation2 + $0x92] sm:$0xff]  ;;  %v3405_v15 = vld [vmem:[#allocation2 + $0x82] sm:$0xff] }
  0x51   : > { %638 = vrot.lane.b32.xlu1 %v553_v20, %s2936_s8  ;;  %644 = vrot.lane.b32.xlu0 %v556_v21, %s2936_s8  ;;  %v3415_v20 = vld [vmem:[#allocation2 + $0xc2] sm:$0xff]  ;;  %v3421_v21 = vld [vmem:[#allocation2 + $0xb2] sm:$0xff] }
  0x55   : > { %642 = vrot.lane.b32.xlu1 %v555_v24, %s2936_s8  ;;  %648 = vrot.lane.b32.xlu0 %v558_v25, %s2936_s8  ;;  %v745_v24 = vld [vmem:[#allocation2 + $0xf2] sm:$0xff]  ;;  %v744_v25 = vld [vmem:[#allocation2 + $0xe2] sm:$0xff] }
  0x59   : > { %646 = vrot.lane.b32.xlu1 %v557_v29, %s2936_s8  ;;  %652 = vrot.lane.b32.xlu0 %v560_v30, %s2936_s8  ;;  %v746_v29 = vld [vmem:[#allocation2 + $0xfa] sm:$0xff]  ;;  %v749_v30 = vld [vmem:[#allocation2 + $0x122] sm:$0xff] }
  0x5d   : > { %650 = vrot.lane.b32.xlu1 %v559_v31, %s2936_s8  ;;  %656 = vrot.lane.b32.xlu0 %v562_v32, %s2936_s8  ;;  %v748_v32 = vld [vmem:[#allocation2 + $0x112] sm:$0xff] }
  0x61   : > { %654 = vrot.lane.b32.xlu1 %v561_v33, %s2936_s8  ;;  %789 = vrot.lane.b32.xlu0 %v725_v34, %s2937_s9  ;;  %v751_v33 = vld [vmem:[#allocation2 + $0x13a] sm:$0xff] }
  0x65   : > { %658 = vrot.lane.b32.xlu1 %v563_v35, %s2936_s8  ;;  %793 = vrot.lane.b32.xlu0 %v3363_v36, %s2937_s9  ;;  %v750_v35 = vld [vmem:[#allocation2 + $0x12a] sm:$0xff] }
  0x69   : > { %791 = vrot.lane.b32.xlu1 %v726_v37, %s2937_s9  ;;  %797 = vrot.lane.b32.xlu0 %v3368_v1, %s2937_s9  ;;  %v753_v37 = vld [vmem:[#allocation2 + $0x152] sm:$0xff] }
  0x6d   : > { %795 = vrot.lane.b32.xlu1 %v3373_v44, %s2937_s9  ;;  %801 = vrot.lane.b32.xlu0 %v3375_v50, %s2937_s9 }
  0x71   : > { %799 = vrot.lane.b32.xlu1 %v3381_v59, %s2937_s9  ;;  %805 = vrot.lane.b32.xlu0 %v3383_v60, %s2937_s9 }
  0x75   : > { %803 = vrot.lane.b32.xlu1 %v3389_v10, %s2937_s9  ;;  %809 = vrot.lane.b32.xlu0 %v3391_v11, %s2937_s9 }
  0x79   : > { %807 = vrot.lane.b32.xlu1 %v3397_v12, %s2937_s9  ;;  %813 = vrot.lane.b32.xlu0 %v3399_v14, %s2937_s9 }
  0x7d   : > { %811 = vrot.lane.b32.xlu1 %v3405_v15, %s2937_s9  ;;  %817 = vrot.lane.b32.xlu0 %v3407_v18, %s2937_s9 }
  0x80   : > { %v597_v31 = vpop.permute.xlu0 %596 }
  0x81   : > { %815 = vrot.lane.b32.xlu1 %v3413_v19, %s2937_s9  ;;  %821 = vrot.lane.b32.xlu0 %v3415_v20, %s2937_s9  ;;  %693 = vst.msk [vmem:[#allocation3] sm:$0xff] %vm692_vm2, %v597_v31 }
  0x85   : > { %819 = vrot.lane.b32.xlu1 %v3421_v21, %s2937_s9  ;;  %825 = vrot.lane.b32.xlu0 %v743_v22, %s2937_s9  ;;  %v752_v22 = vld [vmem:[#allocation2 + $0x142] sm:$0xff] }
  0x89   : > { %823 = vrot.lane.b32.xlu1 %v3426_v23, %s2937_s9  ;;  %829 = vrot.lane.b32.xlu0 %v745_v24, %s2937_s9  ;;  %v755_v24 = vld [vmem:[#allocation2 + $0x16a] sm:$0xff] }
  0x8d   : > { %827 = vrot.lane.b32.xlu1 %v744_v25, %s2937_s9  ;;  %833 = vrot.lane.b32.xlu0 %v747_v28, %s2937_s9 }
  0x91   : > { %831 = vrot.lane.b32.xlu1 %v746_v29, %s2937_s9  ;;  %837 = vrot.lane.b32.xlu0 %v749_v30, %s2937_s9  ;;  %v754_v29 = vld [vmem:[#allocation2 + $0x15a] sm:$0xff] }
  0x92   : > { %v599_v34 = vpop.permute.xlu0 %598 }
  0x93   : > { %694 = vst.msk [vmem:[#allocation3 + $0x8] sm:$0xff] %vm692_vm2, %v599_v34 }
  0x95   : > { %835 = vrot.lane.b32.xlu1 %v748_v32, %s2937_s9  ;;  %841 = vrot.lane.b32.xlu0 %v751_v33, %s2937_s9  ;;  %v756_v32 = vld [vmem:[#allocation2 + $0x172] sm:$0xff] }
  0x99   : > { %839 = vrot.lane.b32.xlu1 %v750_v35, %s2937_s9  ;;  %845 = vrot.lane.b32.xlu0 %v753_v37, %s2937_s9 }
  0x9b   : > { %v601_v25 = vpop.permute.xlu1 %600  ;;  %v605_v28 = vpop.permute.xlu0 %604 }
  0x9c   : > { %695 = vst.msk [vmem:[#allocation3 + $0x10] sm:$0xff] %vm692_vm2, %v601_v25  ;;  %697 = vst.msk [vmem:[#allocation3 + $0x20] sm:$0xff] %vm692_vm2, %v605_v28 }
  0x9d   : > { %843 = vrot.lane.b32.xlu1 %v752_v22, %s2937_s9  ;;  %849 = vrot.lane.b32.xlu0 %v755_v24, %s2937_s9 }
  0x9f   : > { %v603_v30 = vpop.permute.xlu1 %602  ;;  %v609_v31 = vpop.permute.xlu0 %608 }
  0xa0   : > { %696 = vst.msk [vmem:[#allocation3 + $0x18] sm:$0xff] %vm692_vm2, %v603_v30  ;;  %699 = vst.msk [vmem:[#allocation3 + $0x30] sm:$0xff] %vm692_vm2, %v609_v31 }
  0xa1   : > { %847 = vrot.lane.b32.xlu1 %v754_v29, %s2937_s9  ;;  %982 = vrot.lane.b32.xlu0 %v3237_v45, %s2938_s10 }
  0xa3   : > { %v607_v33 = vpop.permute.xlu1 %606  ;;  %v613_v34 = vpop.permute.xlu0 %612 }
  0xa4   : > { %698 = vst.msk [vmem:[#allocation3 + $0x28] sm:$0xff] %vm692_vm2, %v607_v33  ;;  %701 = vst.msk [vmem:[#allocation3 + $0x40] sm:$0xff] %vm692_vm2, %v613_v34 }
  0xa5   : > { %851 = vrot.lane.b32.xlu1 %v756_v32, %s2937_s9  ;;  %986 = vrot.lane.b32.xlu0 %v3241_v46, %s2938_s10 }
  0xa7   : > { %v611_v35 = vpop.permute.xlu1 %610  ;;  %v617_v37 = vpop.permute.xlu0 %616 }
  0xa8   : > { %700 = vst.msk [vmem:[#allocation3 + $0x38] sm:$0xff] %vm692_vm2, %v611_v35  ;;  %703 = vst.msk [vmem:[#allocation3 + $0x50] sm:$0xff] %vm692_vm2, %v617_v37 }
  0xa9   : > { %984 = vrot.lane.b32.xlu1 %v3247_v48, %s2938_s10  ;;  %990 = vrot.lane.b32.xlu0 %v3249_v49, %s2938_s10 }
  0xab   : > { %v615_v45 = vpop.permute.xlu1 %614  ;;  %v621_v22 = vpop.permute.xlu0 %620 }
  0xac   : > { %702 = vst.msk [vmem:[#allocation3 + $0x48] sm:$0xff] %vm692_vm2, %v615_v45  ;;  %705 = vst.msk [vmem:[#allocation3 + $0x60] sm:$0xff] %vm692_vm2, %v621_v22  ;;  %v2111_v45 = vld [vmem:[%s4192_s1 + $0x10] sm:$0xff]  ;;  %v2112_v22 = vld [vmem:[%s4192_s1 + $0x18] sm:$0xff] }
  0xad   : > { %988 = vrot.lane.b32.xlu1 %v3258_v51, %s2938_s10  ;;  %994 = vrot.lane.b32.xlu0 %v3260_v52, %s2938_s10 }
  0xaf   : > { %v619_v24 = vpop.permute.xlu1 %618  ;;  %v625_v25 = vpop.permute.xlu0 %624 }
  0xb0   : > { %704 = vst.msk [vmem:[#allocation3 + $0x58] sm:$0xff] %vm692_vm2, %v619_v24  ;;  %707 = vst.msk [vmem:[#allocation3 + $0x70] sm:$0xff] %vm692_vm2, %v625_v25 }
  0xb1   : > { %992 = vrot.lane.b32.xlu1 %v3266_v53, %s2938_s10  ;;  %998 = vrot.lane.b32.xlu0 %v3268_v54, %s2938_s10 }
  0xb3   : > { %v623_v48 = vpop.permute.xlu1 %622  ;;  %v629_v28 = vpop.permute.xlu0 %628 }
  0xb4   : > { %706 = vst.msk [vmem:[#allocation3 + $0x68] sm:$0xff] %vm692_vm2, %v623_v48  ;;  %709 = vst.msk [vmem:[#allocation3 + $0x80] sm:$0xff] %vm692_vm2, %v629_v28 }
  0xb5   : > { %996 = vrot.lane.b32.xlu1 %v3270_v55, %s2938_s10  ;;  %1002 = vrot.lane.b32.xlu0 %v3278_v56, %s2938_s10 }
  0xb7   : > { %v627_v29 = vpop.permute.xlu1 %626  ;;  %v633_v30 = vpop.permute.xlu0 %632 }
  0xb8   : > { %708 = vst.msk [vmem:[#allocation3 + $0x78] sm:$0xff] %vm692_vm2, %v627_v29  ;;  %711 = vst.msk [vmem:[#allocation3 + $0x90] sm:$0xff] %vm692_vm2, %v633_v30 }
  0xb9   : > { %1000 = vrot.lane.b32.xlu1 %v3280_v57, %s2938_s10  ;;  %1177 = vrot.lane.b32.xlu0 %v3181_v26, %s2939_s11 }
  0xbb   : > { %v631_v31 = vpop.permute.xlu1 %630  ;;  %v637_v32 = vpop.permute.xlu0 %636 }
  0xbc   : > { %710 = vst.msk [vmem:[#allocation3 + $0x88] sm:$0xff] %vm692_vm2, %v631_v31  ;;  %713 = vst.msk [vmem:[#allocation3 + $0xa0] sm:$0xff] %vm692_vm2, %v637_v32 }
  0xbd   : > { %1175 = vrot.lane.b32.xlu1 %v3159_v16, %s2939_s11  ;;  %1370 = vrot.lane.b32.xlu0 %v3373_v44, %s2940_s12  ;;  %v2109_v16 = vld [vmem:[%s4192_s1] sm:$0xff]  ;;  %v2110_v44 = vld [vmem:[%s4192_s1 + $0x8] sm:$0xff] }
  0xbe   : > { %v2894_v37 = vpack.c.bf16 %v2110_v44, %v2109_v16 }
  0xbf   : > { %v635_v33 = vpop.permute.xlu1 %634  ;;  %v641_v34 = vpop.permute.xlu0 %640 }
  0xc0   : > { %712 = vst.msk [vmem:[#allocation3 + $0x98] sm:$0xff] %vm692_vm2, %v635_v33  ;;  %715 = vst.msk [vmem:[#allocation3 + $0xb0] sm:$0xff] %vm692_vm2, %v641_v34  ;;  %2895 = vmatprep.subr.bf16.mxu0 %v2894_v37  ;;  %2902 = vmatprep.subr.bf16.mxu1 %v2894_v37 }
  0xc1   : > { %1368 = vrot.lane.b32.xlu1 %v3363_v36, %s2940_s12  ;;  %1564 = vrot.lane.b32.xlu0 %v3258_v51, %s2941_s13 }
  0xc2   : > { %2897 = vmatpush3.bf16.msra.mxu0 %v2894_v37  ;;  %2905 = vmatpush3.bf16.msra.mxu1 %v2894_v37 }
  0xc3   : > { %v639_v26 = vpop.permute.xlu1 %638  ;;  %v645_v35 = vpop.permute.xlu0 %644 }
  0xc4   : > { %714 = vst.msk [vmem:[#allocation3 + $0xa8] sm:$0xff] %vm692_vm2, %v639_v26  ;;  %717 = vst.msk [vmem:[#allocation3 + $0xc0] sm:$0xff] %vm692_vm2, %v645_v35 }
  0xc5   : > { %1562 = vrot.lane.b32.xlu1 %v3241_v46, %s2941_s13  ;;  %1179 = vrot.lane.b32.xlu0 %v3161_v17, %s2939_s11  ;;  %v2898_v46 = vpack.c.bf16 %v2112_v22, %v2111_v45 }
  0xc7   : > { %v643_v51 = vpop.permute.xlu1 %642  ;;  %v649_v36 = vpop.permute.xlu0 %648  ;;  %2899 = vmatprep.subr.bf16.mxu0 %v2898_v46  ;;  %2903 = vmatprep.subr.bf16.mxu1 %v2898_v46 }
  0xc8   : > { %716 = vst.msk [vmem:[#allocation3 + $0xb8] sm:$0xff] %vm692_vm2, %v643_v51  ;;  %719 = vst.msk [vmem:[#allocation3 + $0xd0] sm:$0xff] %vm692_vm2, %v649_v36  ;;  %2901 = vmatpush3.bf16.msra.mxu0 %v2898_v46  ;;  %2906 = vmatpush3.bf16.msra.mxu1 %v2898_v46 }
  0xc9   : > { %1755 = vrot.lane.b32.xlu1 %v3161_v17, %s2942_s25  ;;  %1948 = vrot.lane.b32.xlu0 %v3368_v1, %s2943_s26  ;;  %v2113_v17 = vld [vmem:[%s4192_s1 + $0x20] sm:$0xf] }
  0xca   : > { %2844 = vmatprep.subr.msk.mxu0 %vm2211_vm3, %v2113_v17  ;;  %2904 = vmatprep.subr.msk.mxu1 %vm2211_vm3, %v2113_v17 }
  0xcb   : > { %v647_v24 = vpop.permute.xlu1 %646  ;;  %v653_v25 = vpop.permute.xlu0 %652 }
  0xcc   : > { %718 = vst.msk [vmem:[#allocation3 + $0xc8] sm:$0xff] %vm692_vm2, %v647_v24  ;;  %721 = vst.msk [vmem:[#allocation3 + $0xe0] sm:$0xff] %vm692_vm2, %v653_v25  ;;  %2845 = vmatpush3.msk.msra.mxu0 %vm2211_vm3, %v2113_v17  ;;  %2907 = vmatpush3.msk.msra.mxu1 %vm2211_vm3, %v2113_v17 }
  0xcd   : > { %1757 = vrot.lane.b32.xlu1 %v3207_v38, %s2942_s25  ;;  %1372 = vrot.lane.b32.xlu0 %v3368_v1, %s2940_s12 }
  0xcf   : > { %v651_v48 = vpop.permute.xlu1 %650  ;;  %v657_v28 = vpop.permute.xlu0 %656 }
  0xd0   : > { %720 = vst.msk [vmem:[#allocation3 + $0xd8] sm:$0xff] %vm692_vm2, %v651_v48  ;;  %723 = vst.msk [vmem:[#allocation3 + $0xf0] sm:$0xff] %vm692_vm2, %v657_v28 }
  0xd1   : > { %1181 = vrot.lane.b32.xlu1 %v3207_v38, %s2939_s11  ;;  %1374 = vrot.lane.b32.xlu0 %v3381_v59, %s2940_s12 }
  0xd3   : > { %v655_v1 = vpop.permute.xlu1 %654  ;;  %v790_v29 = vpop.permute.xlu0 %789 }
  0xd4   : > { %722 = vst.msk [vmem:[#allocation3 + $0xe8] sm:$0xff] %vm692_vm2, %v655_v1 }
  0xd5   : > { %886 = vst.msk [vmem:[#allocation3] sm:$0xff] %vm885_vm4, %v790_v29  ;;  %1950 = vrot.lane.b32.xlu1 %v3381_v59, %s2943_s26  ;;  %1568 = vrot.lane.b32.xlu0 %v3266_v53, %s2941_s13  ;;  %v1702_v29 = vld [vmem:[#allocation2 + $0xb1] sm:$0xff] }
  0xd7   : > { %v659_v30 = vpop.permute.xlu1 %658  ;;  %v794_v31 = vpop.permute.xlu0 %793 }
  0xd8   : > { %724 = vst.msk [vmem:[#allocation3 + $0xf8] sm:$0xff] %vm692_vm2, %v659_v30 }
  0xd9   : > { %888 = vst.msk [vmem:[#allocation3 + $0x10] sm:$0xff] %vm885_vm4, %v794_v31  ;;  %1566 = vrot.lane.b32.xlu1 %v3249_v49, %s2941_s13  ;;  %1183 = vrot.lane.b32.xlu0 %v3183_v27, %s2939_s11 }
  0xdb   : > { %v792_v38 = vpop.permute.xlu1 %791  ;;  %v798_v32 = vpop.permute.xlu0 %797 }
  0xdc   : > { %887 = vst.msk [vmem:[#allocation3 + $0x8] sm:$0xff] %vm885_vm4, %v792_v38  ;;  %890 = vst.msk [vmem:[#allocation3 + $0x20] sm:$0xff] %vm885_vm4, %v798_v32 }
  0xdd   : > { %1759 = vrot.lane.b32.xlu1 %v3183_v27, %s2942_s25  ;;  %1952 = vrot.lane.b32.xlu0 %v3375_v50, %s2943_s26 }
  0xdf   : > { %v796_v53 = vpop.permute.xlu1 %795  ;;  %v802_v59 = vpop.permute.xlu0 %801 }
  0xe0   : > { %889 = vst.msk [vmem:[#allocation3 + $0x18] sm:$0xff] %vm885_vm4, %v796_v53  ;;  %892 = vst.msk [vmem:[#allocation3 + $0x30] sm:$0xff] %vm885_vm4, %v802_v59 }
  0xe1   : > { %1761 = vrot.lane.b32.xlu1 %v3219_v40, %s2942_s25  ;;  %1376 = vrot.lane.b32.xlu0 %v3375_v50, %s2940_s12 }
  0xe3   : > { %v800_v49 = vpop.permute.xlu1 %799  ;;  %v806_v33 = vpop.permute.xlu0 %805 }
  0xe4   : > { %891 = vst.msk [vmem:[#allocation3 + $0x28] sm:$0xff] %vm885_vm4, %v800_v49  ;;  %894 = vst.msk [vmem:[#allocation3 + $0x40] sm:$0xff] %vm885_vm4, %v806_v33 }
  0xe5   : > { %1185 = vrot.lane.b32.xlu1 %v3219_v40, %s2939_s11  ;;  %1378 = vrot.lane.b32.xlu0 %v3389_v10, %s2940_s12 }
  0xe7   : > { %v804_v27 = vpop.permute.xlu1 %803  ;;  %v810_v34 = vpop.permute.xlu0 %809 }
  0xe8   : > { %893 = vst.msk [vmem:[#allocation3 + $0x38] sm:$0xff] %vm885_vm4, %v804_v27  ;;  %896 = vst.msk [vmem:[#allocation3 + $0x50] sm:$0xff] %vm885_vm4, %v810_v34  ;;  %v1703_v34 = vld [vmem:[#allocation2 + $0xc1] sm:$0xff] }
  0xe9   : > { %1954 = vrot.lane.b32.xlu1 %v3389_v10, %s2943_s26  ;;  %1572 = vrot.lane.b32.xlu0 %v3270_v55, %s2941_s13 }
  0xeb   : > { %v808_v50 = vpop.permute.xlu1 %807  ;;  %v814_v26 = vpop.permute.xlu0 %813 }
  0xec   : > { %895 = vst.msk [vmem:[#allocation3 + $0x48] sm:$0xff] %vm885_vm4, %v808_v50  ;;  %898 = vst.msk [vmem:[#allocation3 + $0x60] sm:$0xff] %vm885_vm4, %v814_v26  ;;  %v1704_v50 = vld [vmem:[#allocation2 + $0xc9] sm:$0xff] }
  0xed   : > { %1570 = vrot.lane.b32.xlu1 %v3260_v52, %s2941_s13  ;;  %1187 = vrot.lane.b32.xlu0 %v3209_v39, %s2939_s11 }
  0xef   : > { %v812_v40 = vpop.permute.xlu1 %811  ;;  %v818_v35 = vpop.permute.xlu0 %817 }
  0xf0   : > { %897 = vst.msk [vmem:[#allocation3 + $0x58] sm:$0xff] %vm885_vm4, %v812_v40  ;;  %900 = vst.msk [vmem:[#allocation3 + $0x70] sm:$0xff] %vm885_vm4, %v818_v35 }
  0xf1   : > { %1763 = vrot.lane.b32.xlu1 %v3209_v39, %s2942_s25  ;;  %1956 = vrot.lane.b32.xlu0 %v3383_v60, %s2943_s26 }
  0xf3   : > { %v816_v55 = vpop.permute.xlu1 %815  ;;  %v822_v10 = vpop.permute.xlu0 %821 }
  0xf4   : > { %899 = vst.msk [vmem:[#allocation3 + $0x68] sm:$0xff] %vm885_vm4, %v816_v55  ;;  %902 = vst.msk [vmem:[#allocation3 + $0x80] sm:$0xff] %vm885_vm4, %v822_v10 }
  0xf5   : > { %1765 = vrot.lane.b32.xlu1 %v3227_v41, %s2942_s25  ;;  %1380 = vrot.lane.b32.xlu0 %v3383_v60, %s2940_s12 }
  0xf7   : > { %v820_v52 = vpop.permute.xlu1 %819  ;;  %v826_v16 = vpop.permute.xlu0 %825 }
  0xf8   : > { %901 = vst.msk [vmem:[#allocation3 + $0x78] sm:$0xff] %vm885_vm4, %v820_v52  ;;  %904 = vst.msk [vmem:[#allocation3 + $0x90] sm:$0xff] %vm885_vm4, %v826_v16 }
  0xf9   : > { %1189 = vrot.lane.b32.xlu1 %v3227_v41, %s2939_s11  ;;  %1382 = vrot.lane.b32.xlu0 %v3397_v12, %s2940_s12 }
  0xfb   : > { %v824_v39 = vpop.permute.xlu1 %823  ;;  %v830_v44 = vpop.permute.xlu0 %829 }
  0xfc   : > { %903 = vst.msk [vmem:[#allocation3 + $0x88] sm:$0xff] %vm885_vm4, %v824_v39  ;;  %906 = vst.msk [vmem:[#allocation3 + $0xa0] sm:$0xff] %vm885_vm4, %v830_v44 }
  0xfd   : > { %1958 = vrot.lane.b32.xlu1 %v3397_v12, %s2943_s26  ;;  %1576 = vrot.lane.b32.xlu0 %v3280_v57, %s2941_s13 }
  0xff   : > { %v828_v60 = vpop.permute.xlu1 %827  ;;  %v834_v37 = vpop.permute.xlu0 %833 }
 0x100   : > { %905 = vst.msk [vmem:[#allocation3 + $0x98] sm:$0xff] %vm885_vm4, %v828_v60  ;;  %908 = vst.msk [vmem:[#allocation3 + $0xb0] sm:$0xff] %vm885_vm4, %v834_v37  ;;  %v1705_v37 = vld [vmem:[#allocation2 + $0xd9] sm:$0xff] }
 0x101   : > { %1574 = vrot.lane.b32.xlu1 %v3268_v54, %s2941_s13  ;;  %1191 = vrot.lane.b32.xlu0 %v3221_v2, %s2939_s11 }
 0x103   : > { %v832_v41 = vpop.permute.xlu1 %831  ;;  %v838_v51 = vpop.permute.xlu0 %837 }
 0x104   : > { %907 = vst.msk [vmem:[#allocation3 + $0xa8] sm:$0xff] %vm885_vm4, %v832_v41  ;;  %910 = vst.msk [vmem:[#allocation3 + $0xc0] sm:$0xff] %vm885_vm4, %v838_v51  ;;  %v1706_v41 = vld [vmem:[#allocation2 + $0xe1] sm:$0xff] }
 0x105   : > { %1767 = vrot.lane.b32.xlu1 %v3221_v2, %s2942_s25  ;;  %1960 = vrot.lane.b32.xlu0 %v3391_v11, %s2943_s26 }
 0x107   : > { %v836_v57 = vpop.permute.xlu1 %835  ;;  %v842_v12 = vpop.permute.xlu0 %841 }
 0x108   : > { %909 = vst.msk [vmem:[#allocation3 + $0xb8] sm:$0xff] %vm885_vm4, %v836_v57  ;;  %912 = vst.msk [vmem:[#allocation3 + $0xd0] sm:$0xff] %vm885_vm4, %v842_v12 }
 0x109   : > { %1769 = vrot.lane.b32.xlu1 %v3235_v43, %s2942_s25  ;;  %1384 = vrot.lane.b32.xlu0 %v3391_v11, %s2940_s12 }
 0x10b   : > { %v840_v54 = vpop.permute.xlu1 %839  ;;  %v846_v36 = vpop.permute.xlu0 %845 }
 0x10c   : > { %911 = vst.msk [vmem:[#allocation3 + $0xc8] sm:$0xff] %vm885_vm4, %v840_v54  ;;  %914 = vst.msk [vmem:[#allocation3 + $0xe0] sm:$0xff] %vm885_vm4, %v846_v36 }
 0x10d   : > { %1193 = vrot.lane.b32.xlu1 %v3235_v43, %s2939_s11  ;;  %1386 = vrot.lane.b32.xlu0 %v3405_v15, %s2940_s12 }
 0x10f   : > { %v844_v2 = vpop.permute.xlu1 %843  ;;  %v850_v45 = vpop.permute.xlu0 %849 }
 0x110   : > { %913 = vst.msk [vmem:[#allocation3 + $0xd8] sm:$0xff] %vm885_vm4, %v844_v2  ;;  %916 = vst.msk [vmem:[#allocation3 + $0xf0] sm:$0xff] %vm885_vm4, %v850_v45 }
 0x111   : > { %1962 = vrot.lane.b32.xlu1 %v3405_v15, %s2943_s26  ;;  %1580 = vrot.lane.b32.xlu0 %v3290_v61, %s2941_s13  ;;  %v1121_v15 = vld [vmem:[#allocation2 + $0x91] sm:$0xff] }
 0x113   : > { %v848_v11 = vpop.permute.xlu1 %847  ;;  %v983_v22 = vpop.permute.xlu0 %982 }
 0x114   : > { %915 = vst.msk [vmem:[#allocation3 + $0xe8] sm:$0xff] %vm885_vm4, %v848_v11 }
 0x115   : > { %1079 = vst.msk [vmem:[#allocation3] sm:$0xff] %vm1078_vm5, %v983_v22  ;;  %1578 = vrot.lane.b32.xlu1 %v3278_v56, %s2941_s13  ;;  %1004 = vrot.lane.b32.xlu0 %v3290_v61, %s2938_s10 }
 0x117   : > { %v852_v43 = vpop.permute.xlu1 %851  ;;  %v987_v46 = vpop.permute.xlu0 %986 }
 0x118   : > { %917 = vst.msk [vmem:[#allocation3 + $0xf8] sm:$0xff] %vm885_vm4, %v852_v43 }
 0x119   : > { %1081 = vst.msk [vmem:[#allocation3 + $0x10] sm:$0xff] %vm1078_vm5, %v987_v46  ;;  %1771 = vrot.lane.b32.xlu1 %v3229_v42, %s2942_s25  ;;  %1773 = vrot.lane.b32.xlu0 %v3243_v47, %s2942_s25 }
 0x11b   : > { %v985_v24 = vpop.permute.xlu1 %984  ;;  %v991_v25 = vpop.permute.xlu0 %990 }
 0x11c   : > { %1080 = vst.msk [vmem:[#allocation3 + $0x8] sm:$0xff] %vm1078_vm5, %v985_v24  ;;  %1083 = vst.msk [vmem:[#allocation3 + $0x20] sm:$0xff] %vm1078_vm5, %v991_v25  ;;  %v2925_v24 = vld [vmem:[%s4193_s2] ss:$0 sm:$0xff] }
 0x11d   : > { %1195 = vrot.lane.b32.xlu1 %v1121_v15, %s2939_s11  ;;  %1197 = vrot.lane.b32.xlu0 %v3243_v47, %s2939_s11  ;;  %v299_v15 = vld [vmem:[%s3064_s29 + $0xf0] sm:$0xff] }
 0x11e   : > { %v338_v25 = vmul.f32 %v2925_v24, %v299_v15  ;;  %v1521_v15 = vld [vmem:[#allocation2 + $0x140] sm:$0xff] }
 0x11f   : > { %v989_v56 = vpop.permute.xlu1 %988  ;;  %v995_v61 = vpop.permute.xlu0 %994 }
 0x120   : > { %1082 = vst.msk [vmem:[#allocation3 + $0x18] sm:$0xff] %vm1078_vm5, %v989_v56  ;;  %1085 = vst.msk [vmem:[#allocation3 + $0x30] sm:$0xff] %vm1078_vm5, %v995_v61 }
 0x121   : > { %1964 = vrot.lane.b32.xlu1 %v3399_v14, %s2943_s26  ;;  %1966 = vrot.lane.b32.xlu0 %v3413_v19, %s2943_s26 }
 0x123   : > { %v993_v42 = vpop.permute.xlu1 %992  ;;  %v999_v17 = vpop.permute.xlu0 %998 }
 0x124   : > { %1084 = vst.msk [vmem:[#allocation3 + $0x28] sm:$0xff] %vm1078_vm5, %v993_v42  ;;  %1087 = vst.msk [vmem:[#allocation3 + $0x40] sm:$0xff] %vm1078_vm5, %v999_v17  ;;  %v2926_v42 = vld [vmem:[%s4194_s3] ss:$0 sm:$0xff] }
 0x125   : > { %1388 = vrot.lane.b32.xlu1 %v3399_v14, %s2940_s12  ;;  %1582 = vrot.lane.b32.xlu0 %v3282_v58, %s2941_s13  ;;  %v1701_v14 = vld [vmem:[#allocation2 + $0xa9] sm:$0xff]  ;;  %v377_v17 = vadd.f32 %v2926_v42, %v338_v25 }
 0x127   : > { %v997_v47 = vpop.permute.xlu1 %996  ;;  %v1003_v48 = vpop.permute.xlu0 %1002  ;;  %466 = vst.msk [vmem:[#allocation2 + $0x181] sm:$0xff] %vm379_vm0, %v377_v17  ;;  %v1714_v17 = vld [vmem:[#allocation2 + $0x141] sm:$0xff] }
 0x128   : > { %1086 = vst.msk [vmem:[#allocation3 + $0x38] sm:$0xff] %vm1078_vm5, %v997_v47  ;;  %1089 = vst.msk [vmem:[#allocation3 + $0x50] sm:$0xff] %vm1078_vm5, %v1003_v48  ;;  %v300_v47 = vld [vmem:[%s3064_s29 + $0xf8] sm:$0xff] }
 0x129   : > { %1390 = vrot.lane.b32.xlu1 %v3413_v19, %s2940_s12  ;;  %1584 = vrot.lane.b32.xlu0 %v3294_v63, %s2941_s13  ;;  %v1707_v48 = vld [vmem:[#allocation2 + $0xf1] sm:$0xff] }
 0x12b   : > { %v1001_v28 = vpop.permute.xlu1 %1000  ;;  %v1178_v1 = vpop.permute.xlu0 %1177 }
 0x12c   : > { %1088 = vst.msk [vmem:[#allocation3 + $0x48] sm:$0xff] %vm1078_vm5, %v1001_v28  ;;  %v1708_v28 = vld [vmem:[#allocation2 + $0xf9] sm:$0xff] }
 0x12d   : > { %1273 = vst.msk [vmem:[#allocation3 + $0x8] sm:$0xff] %vm1271_vm6, %v1178_v1  ;;  %1006 = vrot.lane.b32.xlu1 %v3282_v58, %s2938_s10  ;;  %1008 = vrot.lane.b32.xlu0 %v3294_v63, %s2938_s10  ;;  %v339_v1 = vmul.f32 %v2925_v24, %v300_v47 }
 0x12f   : > { %v1176_v30 = vpop.permute.xlu1 %1175  ;;  %v1371_v19 = vpop.permute.xlu0 %1370 }
 0x130   : > { %1272 = vst.msk [vmem:[#allocation3] sm:$0xff] %vm1271_vm6, %v1176_v30 }
 0x131   : > { %1466 = vst.msk [vmem:[#allocation3 + $0x8] sm:$0xff] %vm1464_vm7, %v1371_v19  ;;  %1775 = vrot.lane.b32.xlu1 %v1701_v14, %s2942_s25  ;;  %1777 = vrot.lane.b32.xlu0 %v1702_v29, %s2942_s25  ;;  %v378_v19 = vadd.f32 %v2926_v42, %v339_v1 }
 0x133   : > { %v1369_v31 = vpop.permute.xlu1 %1368  ;;  %v1565_v38 = vpop.permute.xlu0 %1564  ;;  %467 = vst.msk [vmem:[#allocation2 + $0x189] sm:$0xff] %vm379_vm0, %v378_v19 }
 0x134   : > { %1465 = vst.msk [vmem:[#allocation3] sm:$0xff] %vm1464_vm7, %v1369_v31  ;;  %v1900_v31 = vld [vmem:[#allocation2 + $0xf2] sm:$0xff] }
 0x135   : > { %1660 = vst.msk [vmem:[#allocation3 + $0x8] sm:$0xff] %vm1658_vm8, %v1565_v38  ;;  %1199 = vrot.lane.b32.xlu1 %v1701_v14, %s2939_s11  ;;  %1201 = vrot.lane.b32.xlu0 %v1702_v29, %s2939_s11  ;;  %v1901_v38 = vld [vmem:[#allocation2 + $0xfa] sm:$0xff] }
 0x137   : > { %v1563_v58 = vpop.permute.xlu1 %1562  ;;  %v1180_v63 = vpop.permute.xlu0 %1179 }
 0x138   : > { %1659 = vst.msk [vmem:[#allocation3] sm:$0xff] %vm1658_vm8, %v1563_v58 }
 0x139   : > { %1274 = vst.msk [vmem:[#allocation3 + $0x10] sm:$0xff] %vm1271_vm6, %v1180_v63  ;;  %1968 = vrot.lane.b32.xlu1 %v3407_v18, %s2943_s26  ;;  %1970 = vrot.lane.b32.xlu0 %v3421_v21, %s2943_s26 }
 0x13b   : > { %v1756_v32 = vpop.permute.xlu1 %1755  ;;  %v1949_v53 = vpop.permute.xlu0 %1948 }
 0x13c   : > { %1852 = vst.msk [vmem:[#allocation3] sm:$0xff] %vm1851_vm9, %v1756_v32 }
 0x13d   : > { %2045 = vst.msk [vmem:[#allocation3] sm:$0xff] %vm2044_vm10, %v1949_v53  ;;  %1392 = vrot.lane.b32.xlu1 %v3407_v18, %s2940_s12  ;;  %1586 = vrot.lane.b32.xlu0 %v3292_v62, %s2941_s13 }
 0x13f   : > { %v1758_v59 = vpop.permute.xlu1 %1757  ;;  %v1373_v49 = vpop.permute.xlu0 %1372 }
 0x140   : > { %1853 = vst.msk [vmem:[#allocation3 + $0x8] sm:$0xff] %vm1851_vm9, %v1758_v59 }
 0x141   : > { %1467 = vst.msk [vmem:[#allocation3 + $0x10] sm:$0xff] %vm1464_vm7, %v1373_v49  ;;  %1394 = vrot.lane.b32.xlu1 %v3421_v21, %s2940_s12  ;;  %1588 = vrot.lane.b32.xlu0 %v3307_v3, %s2941_s13 }
 0x143   : > { %v1182_v33 = vpop.permute.xlu1 %1181  ;;  %v1375_v27 = vpop.permute.xlu0 %1374 }
 0x144   : > { %1275 = vst.msk [vmem:[#allocation3 + $0x18] sm:$0xff] %vm1271_vm6, %v1182_v33  ;;  %v2077_v18 = vld [vmem:[#allocation3] sm:$0xff] }
 0x145   : > { %1468 = vst.msk [vmem:[#allocation3 + $0x18] sm:$0xff] %vm1464_vm7, %v1375_v27  ;;  %1010 = vrot.lane.b32.xlu1 %v3292_v62, %s2938_s10  ;;  %1012 = vrot.lane.b32.xlu0 %v3307_v3, %s2938_s10 }
 0x146   : > { %2846 = vmatprep.mubr.msk.f32.mxu0 %vm2114_vm11, %v2077_v18 }
 0x147   : > { %v1951_v21 = vpop.permute.xlu1 %1950  ;;  %v1569_v26 = vpop.permute.xlu0 %1568 }
 0x148   : > { %2046 = vst.msk [vmem:[#allocation3 + $0x8] sm:$0xff] %vm2044_vm10, %v1951_v21  ;;  %v1710_v21 = vld [vmem:[#allocation2 + $0x111] sm:$0xff] }
 0x149   : > { %1662 = vst.msk [vmem:[#allocation3 + $0x18] sm:$0xff] %vm1658_vm8, %v1569_v26  ;;  %1779 = vrot.lane.b32.xlu1 %v1703_v34, %s2942_s25  ;;  %1781 = vrot.lane.b32.xlu0 %v1704_v50, %s2942_s25 }
 0x14b   : > { %v1567_v40 = vpop.permute.xlu1 %1566  ;;  %v1184_v35 = vpop.permute.xlu0 %1183 }
 0x14c   : > { %1661 = vst.msk [vmem:[#allocation3 + $0x10] sm:$0xff] %vm1658_vm8, %v1567_v40 }
 0x14d   : > { %1276 = vst.msk [vmem:[#allocation3 + $0x20] sm:$0xff] %vm1271_vm6, %v1184_v35  ;;  %1203 = vrot.lane.b32.xlu1 %v1703_v34, %s2939_s11  ;;  %1205 = vrot.lane.b32.xlu0 %v1704_v50, %s2939_s11  ;;  %v1709_v50 = vld [vmem:[#allocation2 + $0x109] sm:$0xff] }
 0x14f   : > { %v1760_v62 = vpop.permute.xlu1 %1759  ;;  %v1953_v3 = vpop.permute.xlu0 %1952  ;;  %v2078_v55 = vld [vmem:[#allocation3 + $0x8] sm:$0xff] }
 0x150   : > { %1854 = vst.msk [vmem:[#allocation3 + $0x10] sm:$0xff] %vm1851_vm9, %v1760_v62  ;;  %2847 = vmatmul.mubr.msk.f32.vlgmr.msra.gmra.mrb[0].mxu0 %vm2114_vm11, %v2078_v55 }
 0x151   : > { %2047 = vst.msk [vmem:[#allocation3 + $0x10] sm:$0xff] %vm2044_vm10, %v1953_v3  ;;  %1972 = vrot.lane.b32.xlu1 %v3415_v20, %s2943_s26  ;;  %1974 = vrot.lane.b32.xlu0 %v3426_v23, %s2943_s26 }
 0x153   : > { %v1762_v10 = vpop.permute.xlu1 %1761  ;;  %v1377_v52 = vpop.permute.xlu0 %1376 }
 0x154   : > { %1855 = vst.msk [vmem:[#allocation3 + $0x18] sm:$0xff] %vm1851_vm9, %v1762_v10 }
 0x155   : > { %1469 = vst.msk [vmem:[#allocation3 + $0x20] sm:$0xff] %vm1464_vm7, %v1377_v52  ;;  %1396 = vrot.lane.b32.xlu1 %v3415_v20, %s2940_s12  ;;  %1590 = vrot.lane.b32.xlu0 %v3305_v0, %s2941_s13 }
 0x157   : > { %v1186_v16 = vpop.permute.xlu1 %1185  ;;  %v1379_v39 = vpop.permute.xlu0 %1378 }
 0x158   : > { %1277 = vst.msk [vmem:[#allocation3 + $0x28] sm:$0xff] %vm1271_vm6, %v1186_v16  ;;  %v2079_v44 = vld [vmem:[#allocation3 + $0x10] sm:$0xff] }
 0x159   : > { %1470 = vst.msk [vmem:[#allocation3 + $0x28] sm:$0xff] %vm1464_vm7, %v1379_v39  ;;  %1398 = vrot.lane.b32.xlu1 %v3426_v23, %s2940_s12  ;;  %1592 = vrot.lane.b32.xlu0 %v3317_v5, %s2941_s13 }
 0x15a   : > { %2849 = vmatprep.mubr.msk.f32.mxu0 %vm2114_vm11, %v2079_v44 }
 0x15b   : > { %v1955_v60 = vpop.permute.xlu1 %1954  ;;  %v1573_v20 = vpop.permute.xlu0 %1572 }
 0x15c   : > { %2048 = vst.msk [vmem:[#allocation3 + $0x18] sm:$0xff] %vm2044_vm10, %v1955_v60 }
 0x15d   : > { %1664 = vst.msk [vmem:[#allocation3 + $0x28] sm:$0xff] %vm1658_vm8, %v1573_v20  ;;  %1014 = vrot.lane.b32.xlu1 %v3305_v0, %s2938_s10  ;;  %1016 = vrot.lane.b32.xlu0 %v3317_v5, %s2938_s10  ;;  %v1898_v0 = vld [vmem:[#allocation2 + $0xda] sm:$0xff]  ;;  %v1899_v5 = vld [vmem:[#allocation2 + $0xe2] sm:$0xff] }
 0x15f   : > { %v1571_v23 = vpop.permute.xlu1 %1570  ;;  %v1188_v51 = vpop.permute.xlu0 %1187 }
 0x160   : > { %1663 = vst.msk [vmem:[#allocation3 + $0x20] sm:$0xff] %vm1658_vm8, %v1571_v23 }
 0x161   : > { %1278 = vst.msk [vmem:[#allocation3 + $0x30] sm:$0xff] %vm1271_vm6, %v1188_v51  ;;  %1783 = vrot.lane.b32.xlu1 %v1705_v37, %s2942_s25  ;;  %1785 = vrot.lane.b32.xlu0 %v1706_v41, %s2942_s25 }
 0x163   : > { %v1764_v57 = vpop.permute.xlu1 %1763  ;;  %v1957_v12 = vpop.permute.xlu0 %1956  ;;  %v2080_v54 = vld [vmem:[#allocation3 + $0x18] sm:$0xff] }
 0x164   : > { %1856 = vst.msk [vmem:[#allocation3 + $0x20] sm:$0xff] %vm1851_vm9, %v1764_v57  ;;  %2850 = vmatmul.mubr.msk.f32.gmra.mrb[2].mxu0 %vm2114_vm11, %v2080_v54  ;;  %v1712_v57 = vld [vmem:[#allocation2 + $0x129] sm:$0xff] }
 0x165   : > { %2049 = vst.msk [vmem:[#allocation3 + $0x20] sm:$0xff] %vm2044_vm10, %v1957_v12  ;;  %1207 = vrot.lane.b32.xlu1 %v1705_v37, %s2939_s11  ;;  %1209 = vrot.lane.b32.xlu0 %v1706_v41, %s2939_s11  ;;  %v1711_v41 = vld [vmem:[#allocation2 + $0x121] sm:$0xff] }
 0x167   : > { %v1766_v36 = vpop.permute.xlu1 %1765  ;;  %v1381_v2 = vpop.permute.xlu0 %1380 }
 0x168   : > { %1857 = vst.msk [vmem:[#allocation3 + $0x28] sm:$0xff] %vm1851_vm9, %v1766_v36 }
 0x169   : > { %1471 = vst.msk [vmem:[#allocation3 + $0x30] sm:$0xff] %vm1464_vm7, %v1381_v2  ;;  %1976 = vrot.lane.b32.xlu1 %v1898_v0, %s2943_s26  ;;  %1978 = vrot.lane.b32.xlu0 %v1899_v5, %s2943_s26 }
 0x16b   : > { %v1190_v45 = vpop.permute.xlu1 %1189  ;;  %v1383_v11 = vpop.permute.xlu0 %1382 }
 0x16c   : > { %1279 = vst.msk [vmem:[#allocation3 + $0x38] sm:$0xff] %vm1271_vm6, %v1190_v45  ;;  %v2081_v22 = vld [vmem:[#allocation3 + $0x20] sm:$0xff] }
 0x16d   : > { %1472 = vst.msk [vmem:[#allocation3 + $0x38] sm:$0xff] %vm1464_vm7, %v1383_v11  ;;  %1400 = vrot.lane.b32.xlu1 %v1898_v0, %s2940_s12  ;;  %1594 = vrot.lane.b32.xlu0 %v3309_v4, %s2941_s13 }
 0x16e   : > { %2852 = vmatprep.mubr.msk.f32.mxu0 %vm2114_vm11, %v2081_v22  ;;  %v1520_v22 = vld [vmem:[#allocation2 + $0x138] sm:$0xff] }
 0x16f   : > { %v1959_v43 = vpop.permute.xlu1 %1958  ;;  %v1577_v46 = vpop.permute.xlu0 %1576 }
 0x170   : > { %2050 = vst.msk [vmem:[#allocation3 + $0x28] sm:$0xff] %vm2044_vm10, %v1959_v43 }
 0x171   : > { %1666 = vst.msk [vmem:[#allocation3 + $0x38] sm:$0xff] %vm1658_vm8, %v1577_v46  ;;  %1402 = vrot.lane.b32.xlu1 %v1899_v5, %s2940_s12  ;;  %1596 = vrot.lane.b32.xlu0 %v3321_v7, %s2941_s13  ;;  %v1905_v5 = vld [vmem:[#allocation2 + $0x12a] sm:$0xff] }
 0x173   : > { %v1575_v56 = vpop.permute.xlu1 %1574  ;;  %v1192_v61 = vpop.permute.xlu0 %1191 }
 0x174   : > { %1665 = vst.msk [vmem:[#allocation3 + $0x30] sm:$0xff] %vm1658_vm8, %v1575_v56  ;;  %v1713_v56 = vld [vmem:[#allocation2 + $0x139] sm:$0xff] }
 0x175   : > { %1280 = vst.msk [vmem:[#allocation3 + $0x40] sm:$0xff] %vm1271_vm6, %v1192_v61  ;;  %1018 = vrot.lane.b32.xlu1 %v3309_v4, %s2938_s10  ;;  %1020 = vrot.lane.b32.xlu0 %v3321_v7, %s2938_s10 }
 0x177   : > { %v1768_v14 = vpop.permute.xlu1 %1767  ;;  %v1961_v29 = vpop.permute.xlu0 %1960  ;;  %v2082_v30 = vld [vmem:[#allocation3 + $0x28] sm:$0xff] }
 0x178   : > { %1858 = vst.msk [vmem:[#allocation3 + $0x30] sm:$0xff] %vm1851_vm9, %v1768_v14  ;;  %2853 = vmatmul.mubr.msk.f32.gmra.mrb[4].mxu0 %vm2114_vm11, %v2082_v30 }
 0x179   : > { %2051 = vst.msk [vmem:[#allocation3 + $0x30] sm:$0xff] %vm2044_vm10, %v1961_v29  ;;  %1787 = vrot.lane.b32.xlu1 %v1707_v48, %s2942_s25  ;;  %1789 = vrot.lane.b32.xlu0 %v1708_v28, %s2942_s25  ;;  %v1907_v29 = vld [vmem:[#allocation2 + $0x142] sm:$0xff] }
 0x17b   : > { %v1770_v4 = vpop.permute.xlu1 %1769  ;;  %v1385_v7 = vpop.permute.xlu0 %1384 }
 0x17c   : > { %1859 = vst.msk [vmem:[#allocation3 + $0x38] sm:$0xff] %vm1851_vm9, %v1770_v4 }
 0x17d   : > { %1473 = vst.msk [vmem:[#allocation3 + $0x40] sm:$0xff] %vm1464_vm7, %v1385_v7  ;;  %1211 = vrot.lane.b32.xlu1 %v1707_v48, %s2939_s11  ;;  %1213 = vrot.lane.b32.xlu0 %v1708_v28, %s2939_s11  ;;  %v1906_v28 = vld [vmem:[#allocation2 + $0x13a] sm:$0xff] }
 0x17f   : > { %v1194_v58 = vpop.permute.xlu1 %1193  ;;  %v1387_v63 = vpop.permute.xlu0 %1386 }
 0x180   : > { %1281 = vst.msk [vmem:[#allocation3 + $0x48] sm:$0xff] %vm1271_vm6, %v1194_v58  ;;  %v2083_v32 = vld [vmem:[#allocation3 + $0x30] sm:$0xff] }
 0x181   : > { %1474 = vst.msk [vmem:[#allocation3 + $0x48] sm:$0xff] %vm1464_vm7, %v1387_v63  ;;  %1980 = vrot.lane.b32.xlu1 %v1900_v31, %s2943_s26  ;;  %1982 = vrot.lane.b32.xlu0 %v1901_v38, %s2943_s26  ;;  %v1523_v63 = vld [vmem:[#allocation2 + $0x158] sm:$0xff] }
 0x182   : > { %2855 = vmatprep.mubr.msk.f32.mxu0 %vm2114_vm11, %v2083_v32 }
 0x183   : > { %v1963_v53 = vpop.permute.xlu1 %1962  ;;  %v1581_v59 = vpop.permute.xlu0 %1580 }
 0x184   : > { %2052 = vst.msk [vmem:[#allocation3 + $0x38] sm:$0xff] %vm2044_vm10, %v1963_v53 }
 0x185   : > { %1668 = vst.msk [vmem:[#allocation3 + $0x48] sm:$0xff] %vm1658_vm8, %v1581_v59  ;;  %1404 = vrot.lane.b32.xlu1 %v1900_v31, %s2940_s12  ;;  %1598 = vrot.lane.b32.xlu0 %v3319_v6, %s2941_s13  ;;  %v1522_v31 = vld [vmem:[#allocation2 + $0x150] sm:$0xff] }
 0x186   : > { %v1715_v59 = vld [vmem:[#allocation2 + $0x151] sm:$0xff] }
 0x187   : > { %v1579_v49 = vpop.permute.xlu1 %1578  ;;  %v1005_v33 = vpop.permute.xlu0 %1004 }
 0x188   : > { %1667 = vst.msk [vmem:[#allocation3 + $0x40] sm:$0xff] %vm1658_vm8, %v1579_v49 }
 0x189   : > { %1090 = vst.msk [vmem:[#allocation3 + $0x58] sm:$0xff] %vm1078_vm5, %v1005_v33  ;;  %1406 = vrot.lane.b32.xlu1 %v1901_v38, %s2940_s12  ;;  %1600 = vrot.lane.b32.xlu0 %v3335_v9, %s2941_s13 }
 0x18b   : > { %v1772_v27 = vpop.permute.xlu1 %1771  ;;  %v1774_v18 = vpop.permute.xlu0 %1773  ;;  %v2084_v34 = vld [vmem:[#allocation3 + $0x38] sm:$0xff] }
 0x18c   : > { %1860 = vst.msk [vmem:[#allocation3 + $0x40] sm:$0xff] %vm1851_vm9, %v1772_v27  ;;  %1861 = vst.msk [vmem:[#allocation3 + $0x48] sm:$0xff] %vm1851_vm9, %v1774_v18  ;;  %2856 = vmatmul.mubr.msk.f32.gmra.mrb[6].mxu0 %vm2114_vm11, %v2084_v34  ;;  %v1716_v27 = vld [vmem:[#allocation2 + $0x159] sm:$0xff] }
 0x18d   : > { %1022 = vrot.lane.b32.xlu1 %v3319_v6, %s2938_s10  ;;  %1024 = vrot.lane.b32.xlu0 %v3335_v9, %s2938_s10  ;;  %v1902_v6 = vld [vmem:[#allocation2 + $0x10a] sm:$0xff]  ;;  %v1903_v9 = vld [vmem:[#allocation2 + $0x112] sm:$0xff] }
 0x18f   : > { %v1196_v26 = vpop.permute.xlu1 %1195  ;;  %v1198_v40 = vpop.permute.xlu0 %1197 }
 0x190   : > { %1282 = vst.msk [vmem:[#allocation3 + $0x50] sm:$0xff] %vm1271_vm6, %v1196_v26  ;;  %1283 = vst.msk [vmem:[#allocation3 + $0x58] sm:$0xff] %vm1271_vm6, %v1198_v40  ;;  %v1909_v40 = vld [vmem:[#allocation2 + $0x15a] sm:$0xff] }
 0x191   : > { %1791 = vrot.lane.b32.xlu1 %v1709_v50, %s2942_s25  ;;  %1793 = vrot.lane.b32.xlu0 %v1710_v21, %s2942_s25 }
 0x193   : > { %v1965_v35 = vpop.permute.xlu1 %1964  ;;  %v1967_v62 = vpop.permute.xlu0 %1966 }
 0x194   : > { %2053 = vst.msk [vmem:[#allocation3 + $0x40] sm:$0xff] %vm2044_vm10, %v1965_v35  ;;  %2054 = vst.msk [vmem:[#allocation3 + $0x48] sm:$0xff] %vm2044_vm10, %v1967_v62 }
 0x195   : > { %1215 = vrot.lane.b32.xlu1 %v1709_v50, %s2939_s11  ;;  %1217 = vrot.lane.b32.xlu0 %v1710_v21, %s2939_s11  ;;  %v1908_v50 = vld [vmem:[#allocation2 + $0x152] sm:$0xff] }
 0x197   : > { %v1389_v3 = vpop.permute.xlu1 %1388  ;;  %v1583_v55 = vpop.permute.xlu0 %1582 }
 0x198   : > { %1475 = vst.msk [vmem:[#allocation3 + $0x50] sm:$0xff] %vm1464_vm7, %v1389_v3  ;;  %v1524_v3 = vld [vmem:[#allocation2 + $0x168] sm:$0xff] }
 0x199   : > { %1669 = vst.msk [vmem:[#allocation3 + $0x50] sm:$0xff] %vm1658_vm8, %v1583_v55  ;;  %1984 = vrot.lane.b32.xlu1 %v1902_v6, %s2943_s26  ;;  %1986 = vrot.lane.b32.xlu0 %v1903_v9, %s2943_s26 }
 0x19b   : > { %v1391_v10 = vpop.permute.xlu1 %1390  ;;  %v1585_v52 = vpop.permute.xlu0 %1584  ;;  %v2085_v16 = vld [vmem:[#allocation3 + $0x40] sm:$0xff]  ;;  %v2086_v39 = vld [vmem:[#allocation3 + $0x48] sm:$0xff] }
 0x19c   : > { %1476 = vst.msk [vmem:[#allocation3 + $0x58] sm:$0xff] %vm1464_vm7, %v1391_v10  ;;  %2858 = vmatprep.mubr.msk.f32.mxu0 %vm2114_vm11, %v2085_v16 }
 0x19d   : > { %1670 = vst.msk [vmem:[#allocation3 + $0x58] sm:$0xff] %vm1658_vm8, %v1585_v52  ;;  %1408 = vrot.lane.b32.xlu1 %v1902_v6, %s2940_s12  ;;  %2859 = vmatmul.mubr.msk.f32.gmra.mrb[8].mxu0 %vm2114_vm11, %v2086_v39  ;;  %v1525_v52 = vld [vmem:[#allocation2 + $0x170] sm:$0xff] }
 0x19e   : > { %1602 = vrot.lane.b32.xlu0 %v3329_v8, %s2941_s13 }
 0x19f   : > { %v1007_v44 = vpop.permute.xlu1 %1006  ;;  %v1009_v60 = vpop.permute.xlu0 %1008 }
 0x1a0   : > { %1091 = vst.msk [vmem:[#allocation3 + $0x60] sm:$0xff] %vm1078_vm5, %v1007_v44  ;;  %1092 = vst.msk [vmem:[#allocation3 + $0x68] sm:$0xff] %vm1078_vm5, %v1009_v60  ;;  %v1717_v44 = vld [vmem:[#allocation2 + $0x169] sm:$0xff] }
 0x1a1   : > { %1410 = vrot.lane.b32.xlu1 %v1903_v9, %s2940_s12 }
 0x1a2   : > { %1604 = vrot.lane.b32.xlu0 %v3342_v13, %s2941_s13 }
 0x1a3   : > { %v1776_v20 = vpop.permute.xlu1 %1775  ;;  %v1778_v37 = vpop.permute.xlu0 %1777 }
 0x1a4   : > { %1862 = vst.msk [vmem:[#allocation3 + $0x50] sm:$0xff] %vm1851_vm9, %v1776_v20  ;;  %1863 = vst.msk [vmem:[#allocation3 + $0x58] sm:$0xff] %vm1851_vm9, %v1778_v37  ;;  %v1718_v37 = vld [vmem:[#allocation2 + $0x171] sm:$0xff] }
 0x1a5   : > { %1026 = vrot.lane.b32.xlu1 %v3329_v8, %s2938_s10  ;;  %v1904_v8 = vld [vmem:[#allocation2 + $0x122] sm:$0xff] }
 0x1a6   : > { %1028 = vrot.lane.b32.xlu0 %v3342_v13, %s2938_s10 }
 0x1a7   : > { %v1200_v23 = vpop.permute.xlu1 %1199  ;;  %v1202_v51 = vpop.permute.xlu0 %1201 }
 0x1a8   : > { %1284 = vst.msk [vmem:[#allocation3 + $0x60] sm:$0xff] %vm1271_vm6, %v1200_v23  ;;  %1285 = vst.msk [vmem:[#allocation3 + $0x68] sm:$0xff] %vm1271_vm6, %v1202_v51  ;;  %v1910_v51 = vld [vmem:[#allocation2 + $0x16a] sm:$0xff] }
 0x1a9   : > { %1795 = vrot.lane.b32.xlu1 %v1711_v41, %s2942_s25 }
 0x1aa   : > { %1797 = vrot.lane.b32.xlu0 %v1712_v57, %s2942_s25 }
 0x1ab   : > { %v1969_v12 = vpop.permute.xlu1 %1968  ;;  %v1971_v54 = vpop.permute.xlu0 %1970 }
 0x1ac   : > { %2055 = vst.msk [vmem:[#allocation3 + $0x50] sm:$0xff] %vm2044_vm10, %v1969_v12  ;;  %2056 = vst.msk [vmem:[#allocation3 + $0x58] sm:$0xff] %vm2044_vm10, %v1971_v54  ;;  %v1911_v54 = vld [vmem:[#allocation2 + $0x172] sm:$0xff] }
 0x1ad   : > { %1219 = vrot.lane.b32.xlu1 %v1711_v41, %s2939_s11 }
 0x1ae   : > { %1221 = vrot.lane.b32.xlu0 %v1712_v57, %s2939_s11 }
 0x1af   : > { %v1393_v13 = vpop.permute.xlu1 %1392  ;;  %v1587_v0 = vpop.permute.xlu0 %1586 }
 0x1b0   : > { %1477 = vst.msk [vmem:[#allocation3 + $0x60] sm:$0xff] %vm1464_vm7, %v1393_v13 }
 0x1b1   : > { %1671 = vst.msk [vmem:[#allocation3 + $0x60] sm:$0xff] %vm1658_vm8, %v1587_v0  ;;  %1988 = vrot.lane.b32.xlu1 %v1904_v8, %s2943_s26 }
 0x1b2   : > { %1990 = vrot.lane.b32.xlu0 %v1905_v5, %s2943_s26 }
 0x1b3   : > { %v1395_v36 = vpop.permute.xlu1 %1394  ;;  %v1589_v2 = vpop.permute.xlu0 %1588  ;;  %v2087_v45 = vld [vmem:[#allocation3 + $0x50] sm:$0xff]  ;;  %v2088_v11 = vld [vmem:[#allocation3 + $0x58] sm:$0xff] }
 0x1b4   : > { %1478 = vst.msk [vmem:[#allocation3 + $0x68] sm:$0xff] %vm1464_vm7, %v1395_v36  ;;  %2861 = vmatprep.mubr.msk.f32.mxu0 %vm2114_vm11, %v2087_v45  ;;  %v1526_v36 = vld [vmem:[#allocation2 + $0x180] sm:$0xff] }
 0x1b5   : > { %1672 = vst.msk [vmem:[#allocation3 + $0x68] sm:$0xff] %vm1658_vm8, %v1589_v2  ;;  %1412 = vrot.lane.b32.xlu1 %v1904_v8, %s2940_s12  ;;  %2862 = vmatmul.mubr.msk.f32.gmra.mrb[10].mxu0 %vm2114_vm11, %v2088_v11  ;;  %v1527_v11 = vld [vmem:[#allocation2 + $0x188] sm:$0xff] }
 0x1b6   : > { %1606 = vrot.lane.b32.xlu0 %v1520_v22, %s2941_s13 }
 0x1b7   : > { %v1011_v43 = vpop.permute.xlu1 %1010  ;;  %v1013_v46 = vpop.permute.xlu0 %1012 }
 0x1b8   : > { %1093 = vst.msk [vmem:[#allocation3 + $0x70] sm:$0xff] %vm1078_vm5, %v1011_v43  ;;  %1094 = vst.msk [vmem:[#allocation3 + $0x78] sm:$0xff] %vm1078_vm5, %v1013_v46  ;;  %v1719_v46 = vld [vmem:[#allocation2 + $0x181] sm:$0xff] }
 0x1b9   : > { %1414 = vrot.lane.b32.xlu1 %v1905_v5, %s2940_s12 }
 0x1ba   : > { %1608 = vrot.lane.b32.xlu0 %v1521_v15, %s2941_s13 }
 0x1bb   : > { %v1780_v24 = vpop.permute.xlu1 %1779  ;;  %v1782_v25 = vpop.permute.xlu0 %1781 }
 0x1bc   : > { %1864 = vst.msk [vmem:[#allocation3 + $0x60] sm:$0xff] %vm1851_vm9, %v1780_v24  ;;  %1865 = vst.msk [vmem:[#allocation3 + $0x68] sm:$0xff] %vm1851_vm9, %v1782_v25  ;;  %v1720_v25 = vld [vmem:[#allocation2 + $0x189] sm:$0xff] }
 0x1bd   : > { %1030 = vrot.lane.b32.xlu1 %v1520_v22, %s2938_s10 }
 0x1be   : > { %1032 = vrot.lane.b32.xlu0 %v1521_v15, %s2938_s10 }
 0x1bf   : > { %v1204_v61 = vpop.permute.xlu1 %1203  ;;  %v1206_v42 = vpop.permute.xlu0 %1205 }
 0x1c0   : > { %1286 = vst.msk [vmem:[#allocation3 + $0x70] sm:$0xff] %vm1271_vm6, %v1204_v61  ;;  %1287 = vst.msk [vmem:[#allocation3 + $0x78] sm:$0xff] %vm1271_vm6, %v1206_v42  ;;  %v1912_v42 = vld [vmem:[#allocation2 + $0x182] sm:$0xff] }
 0x1c1   : > { %1799 = vrot.lane.b32.xlu1 %v1713_v56, %s2942_s25 }
 0x1c2   : > { %1801 = vrot.lane.b32.xlu0 %v1714_v17, %s2942_s25 }
 0x1c3   : > { %v1973_v47 = vpop.permute.xlu1 %1972  ;;  %v1975_v48 = vpop.permute.xlu0 %1974 }
 0x1c4   : > { %2057 = vst.msk [vmem:[#allocation3 + $0x60] sm:$0xff] %vm2044_vm10, %v1973_v47  ;;  %2058 = vst.msk [vmem:[#allocation3 + $0x68] sm:$0xff] %vm2044_vm10, %v1975_v48  ;;  %v1913_v47 = vld [vmem:[#allocation2 + $0x18a] sm:$0xff] }
 0x1c5   : > { %1223 = vrot.lane.b32.xlu1 %v1713_v56, %s2939_s11 }
 0x1c6   : > { %1225 = vrot.lane.b32.xlu0 %v1714_v17, %s2939_s11 }
 0x1c7   : > { %v1397_v1 = vpop.permute.xlu1 %1396  ;;  %v1591_v14 = vpop.permute.xlu0 %1590 }
 0x1c8   : > { %1479 = vst.msk [vmem:[#allocation3 + $0x70] sm:$0xff] %vm1464_vm7, %v1397_v1 }
 0x1c9   : > { %1673 = vst.msk [vmem:[#allocation3 + $0x70] sm:$0xff] %vm1658_vm8, %v1591_v14  ;;  %1992 = vrot.lane.b32.xlu1 %v1906_v28, %s2943_s26 }
 0x1ca   : > { %1994 = vrot.lane.b32.xlu0 %v1907_v29, %s2943_s26 }
 0x1cb   : > { %v1399_v30 = vpop.permute.xlu1 %1398  ;;  %v1593_v19 = vpop.permute.xlu0 %1592  ;;  %v2089_v4 = vld [vmem:[#allocation3 + $0x60] sm:$0xff]  ;;  %v2090_v7 = vld [vmem:[#allocation3 + $0x68] sm:$0xff] }
 0x1cc   : > { %1480 = vst.msk [vmem:[#allocation3 + $0x78] sm:$0xff] %vm1464_vm7, %v1399_v30  ;;  %2864 = vmatprep.mubr.msk.f32.mxu0 %vm2114_vm11, %v2089_v4  ;;  %v1721_v4 = vld [vmem:[#allocation2 + $0x199] sm:$0xff] }
 0x1cd   : > { %1674 = vst.msk [vmem:[#allocation3 + $0x78] sm:$0xff] %vm1658_vm8, %v1593_v19  ;;  %1416 = vrot.lane.b32.xlu1 %v1906_v28, %s2940_s12  ;;  %2865 = vmatmul.mubr.msk.f32.gmra.mrb[12].mxu0 %vm2114_vm11, %v2090_v7 }
 0x1ce   : > { %1610 = vrot.lane.b32.xlu0 %v1522_v31, %s2941_s13 }
 0x1cf   : > { %v1015_v38 = vpop.permute.xlu1 %1014  ;;  %v1017_v58 = vpop.permute.xlu0 %1016 }
 0x1d0   : > { %1095 = vst.msk [vmem:[#allocation3 + $0x80] sm:$0xff] %vm1078_vm5, %v1015_v38  ;;  %1096 = vst.msk [vmem:[#allocation3 + $0x88] sm:$0xff] %vm1078_vm5, %v1017_v58  ;;  %v1914_v58 = vld [vmem:[#allocation2 + $0x19a] sm:$0xff] }
 0x1d1   : > { %1418 = vrot.lane.b32.xlu1 %v1907_v29, %s2940_s12  ;;  %v1528_v29 = vld [vmem:[#allocation2 + $0x198] sm:$0xff] }
 0x1d2   : > { %1612 = vrot.lane.b32.xlu0 %v1523_v63, %s2941_s13 }
 0x1d3   : > { %v1784_v32 = vpop.permute.xlu1 %1783  ;;  %v1786_v53 = vpop.permute.xlu0 %1785 }
 0x1d4   : > { %1866 = vst.msk [vmem:[#allocation3 + $0x70] sm:$0xff] %vm1851_vm9, %v1784_v32  ;;  %1867 = vst.msk [vmem:[#allocation3 + $0x78] sm:$0xff] %vm1851_vm9, %v1786_v53  ;;  %v1722_v32 = vld [vmem:[#allocation2 + $0x1a1] sm:$0xff] }
 0x1d5   : > { %1034 = vrot.lane.b32.xlu1 %v1522_v31, %s2938_s10  ;;  %v1529_v31 = vld [vmem:[#allocation2 + $0x1a0] sm:$0xff] }
 0x1d6   : > { %1036 = vrot.lane.b32.xlu0 %v1523_v63, %s2938_s10 }
 0x1d7   : > { %v1208_v49 = vpop.permute.xlu1 %1207  ;;  %v1210_v33 = vpop.permute.xlu0 %1209 }
 0x1d8   : > { %1288 = vst.msk [vmem:[#allocation3 + $0x80] sm:$0xff] %vm1271_vm6, %v1208_v49  ;;  %1289 = vst.msk [vmem:[#allocation3 + $0x88] sm:$0xff] %vm1271_vm6, %v1210_v33  ;;  %v1915_v49 = vld [vmem:[#allocation2 + $0x1a2] sm:$0xff] }
 0x1d9   : > { %1803 = vrot.lane.b32.xlu1 %v1715_v59, %s2942_s25 }
 0x1da   : > { %1805 = vrot.lane.b32.xlu0 %v1716_v27, %s2942_s25 }
 0x1db   : > { %v1977_v18 = vpop.permute.xlu1 %1976  ;;  %v1979_v34 = vpop.permute.xlu0 %1978 }
 0x1dc   : > { %2059 = vst.msk [vmem:[#allocation3 + $0x70] sm:$0xff] %vm2044_vm10, %v1977_v18  ;;  %2060 = vst.msk [vmem:[#allocation3 + $0x78] sm:$0xff] %vm2044_vm10, %v1979_v34 }
 0x1dd   : > { %1227 = vrot.lane.b32.xlu1 %v1715_v59, %s2939_s11 }
 0x1de   : > { %1229 = vrot.lane.b32.xlu0 %v1716_v27, %s2939_s11 }
 0x1df   : > { %v1401_v21 = vpop.permute.xlu1 %1400  ;;  %v1595_v26 = vpop.permute.xlu0 %1594 }
 0x1e0   : > { %1481 = vst.msk [vmem:[#allocation3 + $0x80] sm:$0xff] %vm1464_vm7, %v1401_v21 }
 0x1e1   : > { %1675 = vst.msk [vmem:[#allocation3 + $0x80] sm:$0xff] %vm1658_vm8, %v1595_v26  ;;  %1996 = vrot.lane.b32.xlu1 %v1908_v50, %s2943_s26 }
 0x1e2   : > { %1998 = vrot.lane.b32.xlu0 %v1909_v40, %s2943_s26 }
 0x1e3   : > { %v1403_v35 = vpop.permute.xlu1 %1402  ;;  %v1597_v62 = vpop.permute.xlu0 %1596  ;;  %v2091_v6 = vld [vmem:[#allocation3 + $0x70] sm:$0xff]  ;;  %v2092_v9 = vld [vmem:[#allocation3 + $0x78] sm:$0xff] }
 0x1e4   : > { %1482 = vst.msk [vmem:[#allocation3 + $0x88] sm:$0xff] %vm1464_vm7, %v1403_v35  ;;  %2867 = vmatprep.mubr.msk.f32.mxu0 %vm2114_vm11, %v2091_v6 }
 0x1e5   : > { %1676 = vst.msk [vmem:[#allocation3 + $0x88] sm:$0xff] %vm1658_vm8, %v1597_v62  ;;  %1420 = vrot.lane.b32.xlu1 %v1908_v50, %s2940_s12  ;;  %2868 = vmatmul.mubr.msk.f32.gmra.mrb[14].mxu0 %vm2114_vm11, %v2092_v9 }
 0x1e6   : > { %1614 = vrot.lane.b32.xlu0 %v1524_v3, %s2941_s13 }
 0x1e7   : > { %v1019_v55 = vpop.permute.xlu1 %1018  ;;  %v1021_v10 = vpop.permute.xlu0 %1020 }
 0x1e8   : > { %1097 = vst.msk [vmem:[#allocation3 + $0x90] sm:$0xff] %vm1078_vm5, %v1019_v55  ;;  %1098 = vst.msk [vmem:[#allocation3 + $0x98] sm:$0xff] %vm1078_vm5, %v1021_v10 }
 0x1e9   : > { %1422 = vrot.lane.b32.xlu1 %v1909_v40, %s2940_s12 }
 0x1ea   : > { %1616 = vrot.lane.b32.xlu0 %v1525_v52, %s2941_s13 }
 0x1eb   : > { %v1788_v16 = vpop.permute.xlu1 %1787  ;;  %v1790_v39 = vpop.permute.xlu0 %1789 }
 0x1ec   : > { %1868 = vst.msk [vmem:[#allocation3 + $0x80] sm:$0xff] %vm1851_vm9, %v1788_v16  ;;  %1869 = vst.msk [vmem:[#allocation3 + $0x88] sm:$0xff] %vm1851_vm9, %v1790_v39 }
 0x1ed   : > { %1038 = vrot.lane.b32.xlu1 %v1524_v3, %s2938_s10 }
 0x1ee   : > { %1040 = vrot.lane.b32.xlu0 %v1525_v52, %s2938_s10 }
 0x1ef   : > { %v1212_v60 = vpop.permute.xlu1 %1211  ;;  %v1214_v20 = vpop.permute.xlu0 %1213 }
 0x1f0   : > { %1290 = vst.msk [vmem:[#allocation3 + $0x90] sm:$0xff] %vm1271_vm6, %v1212_v60  ;;  %1291 = vst.msk [vmem:[#allocation3 + $0x98] sm:$0xff] %vm1271_vm6, %v1214_v20 }
 0x1f1   : > { %1807 = vrot.lane.b32.xlu1 %v1717_v44, %s2942_s25 }
 0x1f2   : > { %1809 = vrot.lane.b32.xlu0 %v1718_v37, %s2942_s25 }
 0x1f3   : > { %v1981_v41 = vpop.permute.xlu1 %1980  ;;  %v1983_v23 = vpop.permute.xlu0 %1982 }
 0x1f4   : > { %2061 = vst.msk [vmem:[#allocation3 + $0x80] sm:$0xff] %vm2044_vm10, %v1981_v41  ;;  %2062 = vst.msk [vmem:[#allocation3 + $0x88] sm:$0xff] %vm2044_vm10, %v1983_v23 }
 0x1f5   : > { %1231 = vrot.lane.b32.xlu1 %v1717_v44, %s2939_s11 }
 0x1f6   : > { %1233 = vrot.lane.b32.xlu0 %v1718_v37, %s2939_s11 }
 0x1f7   : > { %v1405_v57 = vpop.permute.xlu1 %1404  ;;  %v1599_v12 = vpop.permute.xlu0 %1598 }
 0x1f8   : > { %1483 = vst.msk [vmem:[#allocation3 + $0x90] sm:$0xff] %vm1464_vm7, %v1405_v57 }
 0x1f9   : > { %1677 = vst.msk [vmem:[#allocation3 + $0x90] sm:$0xff] %vm1658_vm8, %v1599_v12  ;;  %2000 = vrot.lane.b32.xlu1 %v1910_v51, %s2943_s26 }
 0x1fa   : > { %2002 = vrot.lane.b32.xlu0 %v1911_v54, %s2943_s26 }
 0x1fb   : > { %v1407_v8 = vpop.permute.xlu1 %1406  ;;  %v1601_v13 = vpop.permute.xlu0 %1600  ;;  %v2093_v0 = vld [vmem:[#allocation3 + $0x80] sm:$0xff]  ;;  %v2094_v5 = vld [vmem:[#allocation3 + $0x88] sm:$0xff] }
 0x1fc   : > { %1484 = vst.msk [vmem:[#allocation3 + $0x98] sm:$0xff] %vm1464_vm7, %v1407_v8  ;;  %2870 = vmatprep.mubr.msk.f32.mxu1 %vm2114_vm11, %v2093_v0 }
 0x1fd   : > { %1678 = vst.msk [vmem:[#allocation3 + $0x98] sm:$0xff] %vm1658_vm8, %v1601_v13  ;;  %1424 = vrot.lane.b32.xlu1 %v1910_v51, %s2940_s12  ;;  %2871 = vmatmul.mubr.msk.f32.vlgmr.msra.gmra.mrb[0].mxu1 %vm2114_vm11, %v2094_v5 }
 0x1fe   : > { %1618 = vrot.lane.b32.xlu0 %v1526_v36, %s2941_s13 }
 0x1ff   : > { %v1023_v2 = vpop.permute.xlu1 %1022  ;;  %v1025_v45 = vpop.permute.xlu0 %1024 }
 0x200   : > { %1099 = vst.msk [vmem:[#allocation3 + $0xa0] sm:$0xff] %vm1078_vm5, %v1023_v2  ;;  %1100 = vst.msk [vmem:[#allocation3 + $0xa8] sm:$0xff] %vm1078_vm5, %v1025_v45 }
 0x201   : > { %1426 = vrot.lane.b32.xlu1 %v1911_v54, %s2940_s12 }
 0x202   : > { %1620 = vrot.lane.b32.xlu0 %v1527_v11, %s2941_s13 }
 0x203   : > { %v1792_v22 = vpop.permute.xlu1 %1791  ;;  %v1794_v43 = vpop.permute.xlu0 %1793 }
 0x204   : > { %1870 = vst.msk [vmem:[#allocation3 + $0x90] sm:$0xff] %vm1851_vm9, %v1792_v22  ;;  %1871 = vst.msk [vmem:[#allocation3 + $0x98] sm:$0xff] %vm1851_vm9, %v1794_v43 }
 0x205   : > { %1042 = vrot.lane.b32.xlu1 %v1526_v36, %s2938_s10 }
 0x206   : > { %1044 = vrot.lane.b32.xlu0 %v1527_v11, %s2938_s10 }
 0x207   : > { %v1216_v15 = vpop.permute.xlu1 %1215  ;;  %v1218_v24 = vpop.permute.xlu0 %1217 }
 0x208   : > { %1292 = vst.msk [vmem:[#allocation3 + $0xa0] sm:$0xff] %vm1271_vm6, %v1216_v15  ;;  %1293 = vst.msk [vmem:[#allocation3 + $0xa8] sm:$0xff] %vm1271_vm6, %v1218_v24 }
 0x209   : > { %1811 = vrot.lane.b32.xlu1 %v1719_v46, %s2942_s25 }
 0x20a   : > { %1813 = vrot.lane.b32.xlu0 %v1720_v25, %s2942_s25 }
 0x20b   : > { %v1985_v56 = vpop.permute.xlu1 %1984  ;;  %v1987_v61 = vpop.permute.xlu0 %1986 }
 0x20c   : > { %2063 = vst.msk [vmem:[#allocation3 + $0x90] sm:$0xff] %vm2044_vm10, %v1985_v56  ;;  %2064 = vst.msk [vmem:[#allocation3 + $0x98] sm:$0xff] %vm2044_vm10, %v1987_v61 }
 0x20d   : > { %1235 = vrot.lane.b32.xlu1 %v1719_v46, %s2939_s11 }
 0x20e   : > { %1237 = vrot.lane.b32.xlu0 %v1720_v25, %s2939_s11  ;;  %s3979_s11 = scalar_lea.vmem %s4195_s4, %s2797_s24 }
 0x20f   : > { %v1409_v17 = vpop.permute.xlu1 %1408 }
 0x210   : > { %1485 = vst.msk [vmem:[#allocation3 + $0xa0] sm:$0xff] %vm1464_vm7, %v1409_v17  ;;  %v1603_v48 = vpop.permute.xlu0 %1602 }
 0x211   : > { %1679 = vst.msk [vmem:[#allocation3 + $0xa0] sm:$0xff] %vm1658_vm8, %v1603_v48  ;;  %2004 = vrot.lane.b32.xlu1 %v1912_v42, %s2943_s26 }
 0x212   : > { %2006 = vrot.lane.b32.xlu0 %v1913_v47, %s2943_s26 }
 0x213   : > { %v1411_v28 = vpop.permute.xlu1 %1410  ;;  %v2095_v1 = vld [vmem:[#allocation3 + $0x90] sm:$0xff]  ;;  %v2096_v14 = vld [vmem:[#allocation3 + $0x98] sm:$0xff] }
 0x214   : > { %1486 = vst.msk [vmem:[#allocation3 + $0xa8] sm:$0xff] %vm1464_vm7, %v1411_v28  ;;  %v1605_v30 = vpop.permute.xlu0 %1604  ;;  %2873 = vmatprep.mubr.msk.f32.mxu1 %vm2114_vm11, %v2095_v1 }
 0x215   : > { %1680 = vst.msk [vmem:[#allocation3 + $0xa8] sm:$0xff] %vm1658_vm8, %v1605_v30  ;;  %1428 = vrot.lane.b32.xlu1 %v1912_v42, %s2940_s12  ;;  %2874 = vmatmul.mubr.msk.f32.gmra.mrb[2].mxu1 %vm2114_vm11, %v2096_v14 }
 0x216   : > { %1622 = vrot.lane.b32.xlu0 %v1528_v29, %s2941_s13 }
 0x217   : > { %v1027_v19 = vpop.permute.xlu1 %1026 }
 0x218   : > { %1101 = vst.msk [vmem:[#allocation3 + $0xb0] sm:$0xff] %vm1078_vm5, %v1027_v19  ;;  %v1029_v7 = vpop.permute.xlu0 %1028 }
 0x219   : > { %1102 = vst.msk [vmem:[#allocation3 + $0xb8] sm:$0xff] %vm1078_vm5, %v1029_v7  ;;  %1430 = vrot.lane.b32.xlu1 %v1913_v47, %s2940_s12 }
 0x21a   : > { %1815 = vrot.lane.b32.xlu0 %v1721_v4, %s2942_s25 }
 0x21b   : > { %v1796_v38 = vpop.permute.xlu1 %1795 }
 0x21c   : > { %1872 = vst.msk [vmem:[#allocation3 + $0xa0] sm:$0xff] %vm1851_vm9, %v1796_v38  ;;  %v1798_v63 = vpop.permute.xlu0 %1797 }
 0x21d   : > { %1873 = vst.msk [vmem:[#allocation3 + $0xa8] sm:$0xff] %vm1851_vm9, %v1798_v63  ;;  %1624 = vrot.lane.b32.xlu1 %v1529_v31, %s2941_s13  ;;  %s265_s13 = scalar_lea.vmem %s4196_s5, %s4200_s22 }
 0x21e   : > { %2008 = vrot.lane.b32.xlu0 %v1914_v58, %s2943_s26 }
 0x21f   : > { %v1220_v53 = vpop.permute.xlu1 %1219 }
 0x220   : > { %1294 = vst.msk [vmem:[#allocation3 + $0xb0] sm:$0xff] %vm1271_vm6, %v1220_v53  ;;  %v1222_v59 = vpop.permute.xlu0 %1221 }
 0x221   : > { %1295 = vst.msk [vmem:[#allocation3 + $0xb8] sm:$0xff] %vm1271_vm6, %v1222_v59  ;;  %1817 = vrot.lane.b32.xlu1 %v1722_v32, %s2942_s25 }
 0x223   : > { %v2848_v33 = vpop.f32.mrb[0].mxu0  ;;  %v1989_v27 = vpop.permute.xlu1 %1988 }
 0x224   : > { %2442 = vst.msk [vmem:[%s3979_s11 + $0x8] sm:$0xff] %vm2440_vm12, %v2848_v33  ;;  %v2474_v18 = vsel %vm2440_vm12, %v2848_v33, 0.0  ;;  %v2545_v34 = vmul.f32 %v2848_v33, %v2848_v33  ;;  %v1991_v50 = vpop.permute.xlu0 %1990  ;;  %v2281_v21 = vpop.f32.mrb[1].mxu0 }
 0x225   : > { %2065 = vst.msk [vmem:[#allocation3 + $0xa0] sm:$0xff] %vm2044_vm10, %v1989_v27  ;;  %2066 = vst.msk [vmem:[#allocation3 + $0xa8] sm:$0xff] %vm2044_vm10, %v1991_v50  ;;  %v2473_v26 = vsel %vm2440_vm12, %v2281_v21, 0.0  ;;  %v2544_v40 = vmul.f32 %v2281_v21, %v2281_v21  ;;  %2010 = vrot.lane.b32.xlu1 %v1915_v49, %s2943_s26 }
 0x226   : > { %2441 = vst.msk [vmem:[%s3979_s11] sm:$0xff] %vm2440_vm12, %v2281_v21  ;;  %v2577_v35 = vsel %vm2440_vm12, %v2545_v34, 0.0  ;;  %v2475_v62 = vadd.f32 %v2474_v18, %v2473_v26 }
 0x227   : > { %v2576_v6 = vsel %vm2440_vm12, %v2544_v40, 0.0  ;;  %v1413_v9 = vpop.permute.xlu1 %1412 }
 0x228   : > { %v2578_v3 = vadd.f32 %v2577_v35, %v2576_v6  ;;  %1487 = vst.msk [vmem:[#allocation3 + $0xb0] sm:$0xff] %vm1464_vm7, %v1413_v9  ;;  %v1607_v55 = vpop.permute.xlu0 %1606 }
 0x229   : > { %1681 = vst.msk [vmem:[#allocation3 + $0xb0] sm:$0xff] %vm1658_vm8, %v1607_v55 }
 0x22b   : > { %v1415_v10 = vpop.permute.xlu1 %1414 }
 0x22c   : > { %v2097_v52 = vld [vmem:[#allocation3 + $0xa0] sm:$0xff]  ;;  %1488 = vst.msk [vmem:[#allocation3 + $0xb8] sm:$0xff] %vm1464_vm7, %v1415_v10  ;;  %v1609_v16 = vpop.permute.xlu0 %1608  ;;  %v2098_v39 = vld [vmem:[#allocation3 + $0xa8] sm:$0xff] }
 0x22d   : > { %2876 = vmatprep.mubr.msk.f32.mxu1 %vm2114_vm11, %v2097_v52  ;;  %1682 = vst.msk [vmem:[#allocation3 + $0xb8] sm:$0xff] %vm1658_vm8, %v1609_v16 }
 0x22e   : > { %2877 = vmatmul.mubr.msk.f32.gmra.mrb[4].mxu1 %vm2114_vm11, %v2098_v39 }
 0x22f   : > { %v1031_v44 = vpop.permute.xlu1 %1030 }
 0x230   : > { %1103 = vst.msk [vmem:[#allocation3 + $0xc0] sm:$0xff] %vm1078_vm5, %v1031_v44  ;;  %v1033_v60 = vpop.permute.xlu0 %1032 }
 0x231   : > { %1104 = vst.msk [vmem:[#allocation3 + $0xc8] sm:$0xff] %vm1078_vm5, %v1033_v60 }
 0x233   : > { %v1800_v20 = vpop.permute.xlu1 %1799 }
 0x234   : > { %1874 = vst.msk [vmem:[#allocation3 + $0xb0] sm:$0xff] %vm1851_vm9, %v1800_v20  ;;  %v1802_v37 = vpop.permute.xlu0 %1801 }
 0x235   : > { %1875 = vst.msk [vmem:[#allocation3 + $0xb8] sm:$0xff] %vm1851_vm9, %v1802_v37 }
 0x237   : > { %v1224_v41 = vpop.permute.xlu1 %1223  ;;  %v2851_v23 = vpop.f32.mrb[2].mxu0 }
 0x238   : > { %1296 = vst.msk [vmem:[#allocation3 + $0xc0] sm:$0xff] %vm1271_vm6, %v1224_v41  ;;  %v1226_v51 = vpop.permute.xlu0 %1225  ;;  %v2291_v57 = vpop.f32.mrb[3].mxu0  ;;  %v2547_v12 = vmul.f32 %v2851_v23, %v2851_v23  ;;  %v2478_v0 = vsel %vm2440_vm12, %v2851_v23, 0.0 }
 0x239   : > { %2444 = vst.msk [vmem:[%s3979_s11 + $0x18] sm:$0xff] %vm2440_vm12, %v2851_v23  ;;  %2443 = vst.msk [vmem:[%s3979_s11 + $0x10] sm:$0xff] %vm2440_vm12, %v2291_v57  ;;  %v2476_v54 = vsel %vm2440_vm12, %v2291_v57, 0.0  ;;  %v2546_v8 = vmul.f32 %v2291_v57, %v2291_v57 }
 0x23a   : > { %1297 = vst.msk [vmem:[#allocation3 + $0xc8] sm:$0xff] %vm1271_vm6, %v1226_v51  ;;  %v2477_v13 = vadd.f32 %v2476_v54, %v2475_v62  ;;  %v2581_v22 = vsel %vm2440_vm12, %v2547_v12, 0.0 }
 0x23b   : > { %v2579_v5 = vsel %vm2440_vm12, %v2546_v8, 0.0  ;;  %v1993_v36 = vpop.permute.xlu1 %1992 }
 0x23c   : > { %v2580_v2 = vadd.f32 %v2579_v5, %v2578_v3  ;;  %2067 = vst.msk [vmem:[#allocation3 + $0xb0] sm:$0xff] %vm2044_vm10, %v1993_v36  ;;  %v1995_v45 = vpop.permute.xlu0 %1994  ;;  %v2479_v11 = vadd.f32 %v2478_v0, %v2477_v13 }
 0x23d   : > { %2068 = vst.msk [vmem:[#allocation3 + $0xb8] sm:$0xff] %vm2044_vm10, %v1995_v45 }
 0x23e   : > { %v2582_v43 = vadd.f32 %v2581_v22, %v2580_v2 }
 0x23f   : > { %v1417_v46 = vpop.permute.xlu1 %1416 }
 0x240   : > { %1489 = vst.msk [vmem:[#allocation3 + $0xc0] sm:$0xff] %vm1464_vm7, %v1417_v46  ;;  %v1611_v15 = vpop.permute.xlu0 %1610 }
 0x241   : > { %1683 = vst.msk [vmem:[#allocation3 + $0xc0] sm:$0xff] %vm1658_vm8, %v1611_v15 }
 0x243   : > { %v1419_v24 = vpop.permute.xlu1 %1418  ;;  %v2099_v25 = vld [vmem:[#allocation3 + $0xb0] sm:$0xff] }
 0x244   : > { %1490 = vst.msk [vmem:[#allocation3 + $0xc8] sm:$0xff] %vm1464_vm7, %v1419_v24  ;;  %v1613_v56 = vpop.permute.xlu0 %1612  ;;  %2879 = vmatprep.mubr.msk.f32.mxu1 %vm2114_vm11, %v2099_v25  ;;  %v2100_v61 = vld [vmem:[#allocation3 + $0xb8] sm:$0xff] }
 0x245   : > { %1684 = vst.msk [vmem:[#allocation3 + $0xc8] sm:$0xff] %vm1658_vm8, %v1613_v56  ;;  %2880 = vmatmul.mubr.msk.f32.gmra.mrb[6].mxu1 %vm2114_vm11, %v2100_v61 }
 0x247   : > { %v1035_v42 = vpop.permute.xlu1 %1034 }
 0x248   : > { %1105 = vst.msk [vmem:[#allocation3 + $0xd0] sm:$0xff] %vm1078_vm5, %v1035_v42  ;;  %v1037_v17 = vpop.permute.xlu0 %1036 }
 0x249   : > { %1106 = vst.msk [vmem:[#allocation3 + $0xd8] sm:$0xff] %vm1078_vm5, %v1037_v17 }
 0x24b   : > { %v1804_v47 = vpop.permute.xlu1 %1803  ;;  %v2854_v48 = vpop.f32.mrb[4].mxu0 }
 0x24c   : > { %1876 = vst.msk [vmem:[#allocation3 + $0xc0] sm:$0xff] %vm1851_vm9, %v1804_v47  ;;  %v1806_v28 = vpop.permute.xlu0 %1805  ;;  %v2301_v1 = vpop.f32.mrb[5].mxu0  ;;  %v2549_v14 = vmul.f32 %v2854_v48, %v2854_v48  ;;  %v2482_v4 = vsel %vm2440_vm12, %v2854_v48, 0.0 }
 0x24d   : > { %2446 = vst.msk [vmem:[%s3979_s11 + $0x28] sm:$0xff] %vm2440_vm12, %v2854_v48  ;;  %2445 = vst.msk [vmem:[%s3979_s11 + $0x20] sm:$0xff] %vm2440_vm12, %v2301_v1  ;;  %v2480_v29 = vsel %vm2440_vm12, %v2301_v1, 0.0  ;;  %v2548_v30 = vmul.f32 %v2301_v1, %v2301_v1 }
 0x24e   : > { %1877 = vst.msk [vmem:[#allocation3 + $0xc8] sm:$0xff] %vm1851_vm9, %v1806_v28  ;;  %v2481_v19 = vadd.f32 %v2480_v29, %v2479_v11  ;;  %v2585_v32 = vsel %vm2440_vm12, %v2549_v14, 0.0 }
 0x24f   : > { %v2583_v7 = vsel %vm2440_vm12, %v2548_v30, 0.0  ;;  %v1228_v31 = vpop.permute.xlu1 %1227 }
 0x250   : > { %v2584_v38 = vadd.f32 %v2583_v7, %v2582_v43  ;;  %1298 = vst.msk [vmem:[#allocation3 + $0xd0] sm:$0xff] %vm1271_vm6, %v1228_v31  ;;  %v1230_v58 = vpop.permute.xlu0 %1229  ;;  %v2483_v63 = vadd.f32 %v2482_v4, %v2481_v19 }
 0x251   : > { %1299 = vst.msk [vmem:[#allocation3 + $0xd8] sm:$0xff] %vm1271_vm6, %v1230_v58 }
 0x252   : > { %v2586_v53 = vadd.f32 %v2585_v32, %v2584_v38 }
 0x253   : > { %v1997_v59 = vpop.permute.xlu1 %1996 }
 0x254   : > { %2069 = vst.msk [vmem:[#allocation3 + $0xc0] sm:$0xff] %vm2044_vm10, %v1997_v59  ;;  %v1999_v49 = vpop.permute.xlu0 %1998 }
 0x255   : > { %2070 = vst.msk [vmem:[#allocation3 + $0xc8] sm:$0xff] %vm2044_vm10, %v1999_v49 }
 0x257   : > { %v1421_v33 = vpop.permute.xlu1 %1420 }
 0x258   : > { %1491 = vst.msk [vmem:[#allocation3 + $0xd0] sm:$0xff] %vm1464_vm7, %v1421_v33  ;;  %v1615_v27 = vpop.permute.xlu0 %1614 }
 0x259   : > { %1685 = vst.msk [vmem:[#allocation3 + $0xd0] sm:$0xff] %vm1658_vm8, %v1615_v27 }
 0x25b   : > { %v1423_v18 = vpop.permute.xlu1 %1422  ;;  %v2101_v34 = vld [vmem:[#allocation3 + $0xc0] sm:$0xff] }
 0x25c   : > { %1492 = vst.msk [vmem:[#allocation3 + $0xd8] sm:$0xff] %vm1464_vm7, %v1423_v18  ;;  %v1617_v50 = vpop.permute.xlu0 %1616  ;;  %2882 = vmatprep.mubr.msk.f32.mxu1 %vm2114_vm11, %v2101_v34  ;;  %v2102_v21 = vld [vmem:[#allocation3 + $0xc8] sm:$0xff] }
 0x25d   : > { %1686 = vst.msk [vmem:[#allocation3 + $0xd8] sm:$0xff] %vm1658_vm8, %v1617_v50  ;;  %2883 = vmatmul.mubr.msk.f32.gmra.mrb[8].mxu1 %vm2114_vm11, %v2102_v21 }
 0x25f   : > { %v1039_v26 = vpop.permute.xlu1 %1038  ;;  %v2857_v40 = vpop.f32.mrb[6].mxu0 }
 0x260   : > { %1107 = vst.msk [vmem:[#allocation3 + $0xe0] sm:$0xff] %vm1078_vm5, %v1039_v26  ;;  %v1041_v35 = vpop.permute.xlu0 %1040  ;;  %v2311_v62 = vpop.f32.mrb[7].mxu0  ;;  %v2551_v6 = vmul.f32 %v2857_v40, %v2857_v40  ;;  %v2486_v10 = vsel %vm2440_vm12, %v2857_v40, 0.0 }
 0x261   : > { %2448 = vst.msk [vmem:[%s3979_s11 + $0x38] sm:$0xff] %vm2440_vm12, %v2857_v40  ;;  %2447 = vst.msk [vmem:[%s3979_s11 + $0x30] sm:$0xff] %vm2440_vm12, %v2311_v62  ;;  %v2484_v9 = vsel %vm2440_vm12, %v2311_v62, 0.0  ;;  %v2550_v3 = vmul.f32 %v2311_v62, %v2311_v62 }
 0x262   : > { %1108 = vst.msk [vmem:[#allocation3 + $0xe8] sm:$0xff] %vm1078_vm5, %v1041_v35  ;;  %v2485_v55 = vadd.f32 %v2484_v9, %v2483_v63  ;;  %v2589_v20 = vsel %vm2440_vm12, %v2551_v6, 0.0 }
 0x263   : > { %v2587_v52 = vsel %vm2440_vm12, %v2550_v3, 0.0  ;;  %v1808_v16 = vpop.permute.xlu1 %1807 }
 0x264   : > { %v2588_v39 = vadd.f32 %v2587_v52, %v2586_v53  ;;  %1878 = vst.msk [vmem:[#allocation3 + $0xd0] sm:$0xff] %vm1851_vm9, %v1808_v16  ;;  %v1810_v44 = vpop.permute.xlu0 %1809  ;;  %v2487_v60 = vadd.f32 %v2486_v10, %v2485_v55 }
 0x265   : > { %1879 = vst.msk [vmem:[#allocation3 + $0xd8] sm:$0xff] %vm1851_vm9, %v1810_v44 }
 0x266   : > { %v2590_v37 = vadd.f32 %v2589_v20, %v2588_v39 }
 0x267   : > { %v1232_v41 = vpop.permute.xlu1 %1231 }
 0x268   : > { %1300 = vst.msk [vmem:[#allocation3 + $0xe0] sm:$0xff] %vm1271_vm6, %v1232_v41  ;;  %v1234_v23 = vpop.permute.xlu0 %1233 }
 0x269   : > { %1301 = vst.msk [vmem:[#allocation3 + $0xe8] sm:$0xff] %vm1271_vm6, %v1234_v23 }
 0x26b   : > { %v2001_v51 = vpop.permute.xlu1 %2000 }
 0x26c   : > { %2071 = vst.msk [vmem:[#allocation3 + $0xd0] sm:$0xff] %vm2044_vm10, %v2001_v51  ;;  %v2003_v57 = vpop.permute.xlu0 %2002 }
 0x26d   : > { %2072 = vst.msk [vmem:[#allocation3 + $0xd8] sm:$0xff] %vm2044_vm10, %v2003_v57 }
 0x26f   : > { %v1425_v12 = vpop.permute.xlu1 %1424 }
 0x270   : > { %1493 = vst.msk [vmem:[#allocation3 + $0xe0] sm:$0xff] %vm1464_vm7, %v1425_v12  ;;  %v1619_v54 = vpop.permute.xlu0 %1618  ;;  %v2860_v8 = vpop.f32.mrb[8].mxu0 }
 0x271   : > { %1687 = vst.msk [vmem:[#allocation3 + $0xe0] sm:$0xff] %vm1658_vm8, %v1619_v54  ;;  %v2553_v13 = vmul.f32 %v2860_v8, %v2860_v8  ;;  %v2321_v0 = vpop.f32.mrb[9].mxu0  ;;  %v2490_v5 = vsel %vm2440_vm12, %v2860_v8, 0.0 }
 0x272   : > { %2450 = vst.msk [vmem:[%s3979_s11 + $0x48] sm:$0xff] %vm2440_vm12, %v2860_v8  ;;  %2449 = vst.msk [vmem:[%s3979_s11 + $0x40] sm:$0xff] %vm2440_vm12, %v2321_v0  ;;  %v2488_v36 = vsel %vm2440_vm12, %v2321_v0, 0.0  ;;  %v2552_v2 = vmul.f32 %v2321_v0, %v2321_v0 }
 0x273   : > { %v2489_v45 = vadd.f32 %v2488_v36, %v2487_v60  ;;  %v1427_v11 = vpop.permute.xlu1 %1426  ;;  %v2103_v22 = vld [vmem:[#allocation3 + $0xd0] sm:$0xff]  ;;  %v2593_v43 = vsel %vm2440_vm12, %v2553_v13, 0.0 }
 0x274   : > { %v2591_v46 = vsel %vm2440_vm12, %v2552_v2, 0.0  ;;  %1494 = vst.msk [vmem:[#allocation3 + $0xe8] sm:$0xff] %vm1464_vm7, %v1427_v11  ;;  %v1621_v15 = vpop.permute.xlu0 %1620  ;;  %2885 = vmatprep.mubr.msk.f32.mxu1 %vm2114_vm11, %v2103_v22  ;;  %v2104_v24 = vld [vmem:[#allocation3 + $0xd8] sm:$0xff] }
 0x275   : > { %v2592_v25 = vadd.f32 %v2591_v46, %v2590_v37  ;;  %1688 = vst.msk [vmem:[#allocation3 + $0xe8] sm:$0xff] %vm1658_vm8, %v1621_v15  ;;  %2886 = vmatmul.mubr.msk.f32.gmra.mrb[10].mxu1 %vm2114_vm11, %v2104_v24  ;;  %v2491_v56 = vadd.f32 %v2490_v5, %v2489_v45 }
 0x277   : > { %v1043_v61 = vpop.permute.xlu1 %1042  ;;  %v2594_v42 = vadd.f32 %v2593_v43, %v2592_v25 }
 0x278   : > { %1109 = vst.msk [vmem:[#allocation3 + $0xf0] sm:$0xff] %vm1078_vm5, %v1043_v61  ;;  %v1045_v17 = vpop.permute.xlu0 %1044 }
 0x279   : > { %1110 = vst.msk [vmem:[#allocation3 + $0xf8] sm:$0xff] %vm1078_vm5, %v1045_v17 }
 0x27b   : > { %v1812_v47 = vpop.permute.xlu1 %1811 }
 0x27c   : > { %1880 = vst.msk [vmem:[#allocation3 + $0xe0] sm:$0xff] %vm1851_vm9, %v1812_v47  ;;  %v1814_v48 = vpop.permute.xlu0 %1813 }
 0x27d   : > { %1881 = vst.msk [vmem:[#allocation3 + $0xe8] sm:$0xff] %vm1851_vm9, %v1814_v48 }
 0x27f   : > { %v1236_v28 = vpop.permute.xlu1 %1235 }
 0x280   : > { %1302 = vst.msk [vmem:[#allocation3 + $0xf0] sm:$0xff] %vm1271_vm6, %v1236_v28  ;;  %v1238_v1 = vpop.permute.xlu0 %1237 }
 0x281   : > { %1303 = vst.msk [vmem:[#allocation3 + $0xf8] sm:$0xff] %vm1271_vm6, %v1238_v1 }
 0x283   : > { %v2005_v14 = vpop.permute.xlu1 %2004 }
 0x284   : > { %2073 = vst.msk [vmem:[#allocation3 + $0xe0] sm:$0xff] %vm2044_vm10, %v2005_v14  ;;  %v2007_v29 = vpop.permute.xlu0 %2006 }
 0x285   : > { %2074 = vst.msk [vmem:[#allocation3 + $0xe8] sm:$0xff] %vm2044_vm10, %v2007_v29 }
 0x287   : > { %v1429_v30 = vpop.permute.xlu1 %1428 }
 0x288   : > { %1495 = vst.msk [vmem:[#allocation3 + $0xf0] sm:$0xff] %vm1464_vm7, %v1429_v30  ;;  %v2863_v19 = vpop.f32.mrb[10].mxu0  ;;  %v1623_v4 = vpop.permute.xlu0 %1622 }
 0x289   : > { %2452 = vst.msk [vmem:[%s3979_s11 + $0x58] sm:$0xff] %vm2440_vm12, %v2863_v19  ;;  %v2555_v7 = vmul.f32 %v2863_v19, %v2863_v19  ;;  %v2331_v31 = vpop.f32.mrb[11].mxu0  ;;  %v2494_v38 = vsel %vm2440_vm12, %v2863_v19, 0.0 }
 0x28a   : > { %1689 = vst.msk [vmem:[#allocation3 + $0xf0] sm:$0xff] %vm1658_vm8, %v1623_v4  ;;  %v2492_v58 = vsel %vm2440_vm12, %v2331_v31, 0.0  ;;  %v2554_v63 = vmul.f32 %v2331_v31, %v2331_v31 }
 0x28b   : > { %2451 = vst.msk [vmem:[%s3979_s11 + $0x50] sm:$0xff] %vm2440_vm12, %v2331_v31  ;;  %v2493_v32 = vadd.f32 %v2492_v58, %v2491_v56  ;;  %v1431_v53 = vpop.permute.xlu1 %1430  ;;  %v2105_v59 = vld [vmem:[#allocation3 + $0xe0] sm:$0xff]  ;;  %v2597_v49 = vsel %vm2440_vm12, %v2555_v7, 0.0 }
 0x28c   : > { %v2595_v33 = vsel %vm2440_vm12, %v2554_v63, 0.0  ;;  %1496 = vst.msk [vmem:[#allocation3 + $0xf8] sm:$0xff] %vm1464_vm7, %v1431_v53  ;;  %2888 = vmatprep.mubr.msk.f32.mxu1 %vm2114_vm11, %v2105_v59  ;;  %v2106_v27 = vld [vmem:[#allocation3 + $0xe8] sm:$0xff]  ;;  %v1816_v18 = vpop.permute.xlu0 %1815 }
 0x28d   : > { %v2596_v34 = vadd.f32 %v2595_v33, %v2594_v42  ;;  %2889 = vmatmul.mubr.msk.f32.gmra.mrb[12].mxu1 %vm2114_vm11, %v2106_v27  ;;  %1882 = vst.msk [vmem:[#allocation3 + $0xf0] sm:$0xff] %vm1851_vm9, %v1816_v18  ;;  %v2495_v50 = vadd.f32 %v2494_v38, %v2493_v32 }
 0x28f   : > { %v1625_v21 = vpop.permute.xlu1 %1624  ;;  %v2598_v26 = vadd.f32 %v2597_v49, %v2596_v34 }
 0x290   : > { %1690 = vst.msk [vmem:[#allocation3 + $0xf8] sm:$0xff] %vm1658_vm8, %v1625_v21  ;;  %v2009_v40 = vpop.permute.xlu0 %2008 }
 0x291   : > { %2075 = vst.msk [vmem:[#allocation3 + $0xf0] sm:$0xff] %vm2044_vm10, %v2009_v40 }
 0x293   : > { %v1818_v35 = vpop.permute.xlu1 %1817 }
 0x294   : > { %1883 = vst.msk [vmem:[#allocation3 + $0xf8] sm:$0xff] %vm1851_vm9, %v1818_v35 }
 0x297   : > { %v2011_v62 = vpop.permute.xlu1 %2010 }
 0x298   : > { %2076 = vst.msk [vmem:[#allocation3 + $0xf8] sm:$0xff] %vm2044_vm10, %v2011_v62  ;;  %v2107_v6 = vld [vmem:[#allocation3 + $0xf0] sm:$0xff] }
 0x299   : > { %2891 = vmatprep.mubr.msk.f32.mxu1 %vm2114_vm11, %v2107_v6 }
 0x29f   : > { %v2108_v9 = vld [vmem:[#allocation3 + $0xf8] sm:$0xff] }
 0x2a0   : > { %v2866_v3 = vpop.f32.mrb[12].mxu0  ;;  %2892 = vmatmul.mubr.msk.f32.gmra.mrb[14].mxu1 %vm2114_vm11, %v2108_v9 }
 0x2a1   : > { %2454 = vst.msk [vmem:[%s3979_s11 + $0x68] sm:$0xff] %vm2440_vm12, %v2866_v3  ;;  %v2557_v55 = vmul.f32 %v2866_v3, %v2866_v3  ;;  %v2341_v10 = vpop.f32.mrb[13].mxu0  ;;  %v2498_v52 = vsel %vm2440_vm12, %v2866_v3, 0.0 }
 0x2a2   : > { %2453 = vst.msk [vmem:[%s3979_s11 + $0x60] sm:$0xff] %vm2440_vm12, %v2341_v10  ;;  %v2496_v16 = vsel %vm2440_vm12, %v2341_v10, 0.0  ;;  %v2556_v39 = vmul.f32 %v2341_v10, %v2341_v10 }
 0x2a3   : > { %v2497_v44 = vadd.f32 %v2496_v16, %v2495_v50  ;;  %v2601_v60 = vsel %vm2440_vm12, %v2557_v55, 0.0 }
 0x2a4   : > { %v2599_v20 = vsel %vm2440_vm12, %v2556_v39, 0.0 }
 0x2a5   : > { %v2600_v37 = vadd.f32 %v2599_v20, %v2598_v26  ;;  %v2499_v41 = vadd.f32 %v2498_v52, %v2497_v44 }
 0x2a7   : > { %v2602_v23 = vadd.f32 %v2601_v60, %v2600_v37 }
 0x2b8   : > { %v2869_v51 = vpop.f32.mrb[14].mxu0 }
 0x2b9   : > { %2456 = vst.msk [vmem:[%s3979_s11 + $0x78] sm:$0xff] %vm2440_vm12, %v2869_v51  ;;  %v2559_v57 = vmul.f32 %v2869_v51, %v2869_v51  ;;  %v2351_v12 = vpop.f32.mrb[15].mxu0  ;;  %v2502_v54 = vsel %vm2440_vm12, %v2869_v51, 0.0 }
 0x2ba   : > { %2455 = vst.msk [vmem:[%s3979_s11 + $0x70] sm:$0xff] %vm2440_vm12, %v2351_v12  ;;  %v2500_v8 = vsel %vm2440_vm12, %v2351_v12, 0.0  ;;  %v2558_v13 = vmul.f32 %v2351_v12, %v2351_v12 }
 0x2bb   : > { %v2501_v0 = vadd.f32 %v2500_v8, %v2499_v41  ;;  %v2605_v5 = vsel %vm2440_vm12, %v2559_v57, 0.0 }
 0x2bc   : > { %v2603_v36 = vsel %vm2440_vm12, %v2558_v13, 0.0 }
 0x2bd   : > { %v2503_v2 = vadd.f32 %v2502_v54, %v2501_v0  ;;  %v2604_v45 = vadd.f32 %v2603_v36, %v2602_v23 }
 0x2bf   : > { %v2606_v11 = vadd.f32 %v2605_v5, %v2604_v45 }
 0x2d0   : > { %v2872_v22 = vpop.f32.mrb[0].mxu1 }
 0x2d1   : > { %2458 = vst.msk [vmem:[%s3979_s11 + $0x88] sm:$0xff] %vm2440_vm12, %v2872_v22  ;;  %v2561_v43 = vmul.f32 %v2872_v22, %v2872_v22  ;;  %v2361_v46 = vpop.f32.mrb[1].mxu1  ;;  %v2506_v15 = vsel %vm2440_vm12, %v2872_v22, 0.0 }
 0x2d2   : > { %2457 = vst.msk [vmem:[%s3979_s11 + $0x80] sm:$0xff] %vm2440_vm12, %v2361_v46  ;;  %v2504_v24 = vsel %vm2440_vm12, %v2361_v46, 0.0  ;;  %v2560_v25 = vmul.f32 %v2361_v46, %v2361_v46 }
 0x2d3   : > { %v2505_v56 = vadd.f32 %v2504_v24, %v2503_v2  ;;  %v2609_v61 = vsel %vm2440_vm12, %v2561_v43, 0.0 }
 0x2d4   : > { %v2607_v42 = vsel %vm2440_vm12, %v2560_v25, 0.0 }
 0x2d5   : > { %v2608_v17 = vadd.f32 %v2607_v42, %v2606_v11  ;;  %v2507_v47 = vadd.f32 %v2506_v15, %v2505_v56 }
 0x2d7   : > { %v2610_v48 = vadd.f32 %v2609_v61, %v2608_v17 }
 0x2e8   : > { %v2875_v28 = vpop.f32.mrb[2].mxu1 }
 0x2e9   : > { %2460 = vst.msk [vmem:[%s3979_s11 + $0x98] sm:$0xff] %vm2440_vm12, %v2875_v28  ;;  %v2563_v1 = vmul.f32 %v2875_v28, %v2875_v28  ;;  %v2371_v14 = vpop.f32.mrb[3].mxu1  ;;  %v2510_v29 = vsel %vm2440_vm12, %v2875_v28, 0.0 }
 0x2ea   : > { %2459 = vst.msk [vmem:[%s3979_s11 + $0x90] sm:$0xff] %vm2440_vm12, %v2371_v14  ;;  %v2508_v30 = vsel %vm2440_vm12, %v2371_v14, 0.0  ;;  %v2562_v19 = vmul.f32 %v2371_v14, %v2371_v14 }
 0x2eb   : > { %v2509_v4 = vadd.f32 %v2508_v30, %v2507_v47  ;;  %v2613_v7 = vsel %vm2440_vm12, %v2563_v1, 0.0 }
 0x2ec   : > { %v2611_v31 = vsel %vm2440_vm12, %v2562_v19, 0.0 }
 0x2ed   : > { %v2612_v38 = vadd.f32 %v2611_v31, %v2610_v48  ;;  %v2511_v58 = vadd.f32 %v2510_v29, %v2509_v4 }
 0x2ef   : > { %v2614_v63 = vadd.f32 %v2613_v7, %v2612_v38 }
 0x301   : > { %v2878_v32 = vpop.f32.mrb[4].mxu1 }
 0x302   : > { %2462 = vst.msk [vmem:[%s3979_s11 + $0xa8] sm:$0xff] %vm2440_vm12, %v2878_v32  ;;  %v2565_v53 = vmul.f32 %v2878_v32, %v2878_v32  ;;  %v2381_v59 = vpop.f32.mrb[5].mxu1  ;;  %v2514_v49 = vsel %vm2440_vm12, %v2878_v32, 0.0 }
 0x303   : > { %2461 = vst.msk [vmem:[%s3979_s11 + $0xa0] sm:$0xff] %vm2440_vm12, %v2381_v59  ;;  %v2512_v33 = vsel %vm2440_vm12, %v2381_v59, 0.0  ;;  %v2564_v27 = vmul.f32 %v2381_v59, %v2381_v59 }
 0x304   : > { %v2513_v18 = vadd.f32 %v2512_v33, %v2511_v58  ;;  %v2617_v34 = vsel %vm2440_vm12, %v2565_v53, 0.0 }
 0x305   : > { %v2615_v50 = vsel %vm2440_vm12, %v2564_v27, 0.0 }
 0x306   : > { %v2616_v21 = vadd.f32 %v2615_v50, %v2614_v63  ;;  %v2515_v26 = vadd.f32 %v2514_v49, %v2513_v18 }
 0x308   : > { %v2618_v40 = vadd.f32 %v2617_v34, %v2616_v21 }
 0x318   : > { %v2881_v35 = vpop.f32.mrb[6].mxu1 }
 0x319   : > { %2464 = vst.msk [vmem:[%s3979_s11 + $0xb8] sm:$0xff] %vm2440_vm12, %v2881_v35  ;;  %v2567_v62 = vmul.f32 %v2881_v35, %v2881_v35  ;;  %v2391_v6 = vpop.f32.mrb[7].mxu1  ;;  %v2518_v9 = vsel %vm2440_vm12, %v2881_v35, 0.0 }
 0x31a   : > { %2463 = vst.msk [vmem:[%s3979_s11 + $0xb0] sm:$0xff] %vm2440_vm12, %v2391_v6  ;;  %v2516_v3 = vsel %vm2440_vm12, %v2391_v6, 0.0  ;;  %v2566_v55 = vmul.f32 %v2391_v6, %v2391_v6 }
 0x31b   : > { %v2517_v10 = vadd.f32 %v2516_v3, %v2515_v26  ;;  %v2621_v52 = vsel %vm2440_vm12, %v2567_v62, 0.0 }
 0x31c   : > { %v2619_v16 = vsel %vm2440_vm12, %v2566_v55, 0.0 }
 0x31d   : > { %v2620_v39 = vadd.f32 %v2619_v16, %v2618_v40  ;;  %v2519_v44 = vadd.f32 %v2518_v9, %v2517_v10 }
 0x31f   : > { %v2622_v60 = vadd.f32 %v2621_v52, %v2620_v39 }
 0x330   : > { %v2884_v20 = vpop.f32.mrb[8].mxu1 }
 0x331   : > { %2466 = vst.msk [vmem:[%s3979_s11 + $0xc8] sm:$0xff] %vm2440_vm12, %v2884_v20  ;;  %v2569_v37 = vmul.f32 %v2884_v20, %v2884_v20  ;;  %v2401_v41 = vpop.f32.mrb[9].mxu1  ;;  %v2522_v23 = vsel %vm2440_vm12, %v2884_v20, 0.0 }
 0x332   : > { %2465 = vst.msk [vmem:[%s3979_s11 + $0xc0] sm:$0xff] %vm2440_vm12, %v2401_v41  ;;  %v2520_v51 = vsel %vm2440_vm12, %v2401_v41, 0.0  ;;  %v2568_v57 = vmul.f32 %v2401_v41, %v2401_v41 }
 0x333   : > { %v2521_v12 = vadd.f32 %v2520_v51, %v2519_v44  ;;  %v2625_v54 = vsel %vm2440_vm12, %v2569_v37, 0.0 }
 0x334   : > { %v2623_v8 = vsel %vm2440_vm12, %v2568_v57, 0.0 }
 0x335   : > { %v2624_v13 = vadd.f32 %v2623_v8, %v2622_v60  ;;  %v2523_v0 = vadd.f32 %v2522_v23, %v2521_v12 }
 0x337   : > { %v2626_v5 = vadd.f32 %v2625_v54, %v2624_v13 }
 0x348   : > { %v2887_v36 = vpop.f32.mrb[10].mxu1 }
 0x349   : > { %2468 = vst.msk [vmem:[%s3979_s11 + $0xd8] sm:$0xff] %vm2440_vm12, %v2887_v36  ;;  %v2571_v2 = vmul.f32 %v2887_v36, %v2887_v36  ;;  %v2411_v45 = vpop.f32.mrb[11].mxu1  ;;  %v2526_v11 = vsel %vm2440_vm12, %v2887_v36, 0.0 }
 0x34a   : > { %2467 = vst.msk [vmem:[%s3979_s11 + $0xd0] sm:$0xff] %vm2440_vm12, %v2411_v45  ;;  %v2524_v22 = vsel %vm2440_vm12, %v2411_v45, 0.0  ;;  %v2570_v43 = vmul.f32 %v2411_v45, %v2411_v45 }
 0x34b   : > { %v2525_v46 = vadd.f32 %v2524_v22, %v2523_v0  ;;  %v2629_v15 = vsel %vm2440_vm12, %v2571_v2, 0.0 }
 0x34c   : > { %v2627_v24 = vsel %vm2440_vm12, %v2570_v43, 0.0 }
 0x34d   : > { %v2628_v25 = vadd.f32 %v2627_v24, %v2626_v5  ;;  %v2527_v56 = vadd.f32 %v2526_v11, %v2525_v46 }
 0x34f   : > { %v2630_v61 = vadd.f32 %v2629_v15, %v2628_v25 }
 0x360   : > { %v2890_v42 = vpop.f32.mrb[12].mxu1 }
 0x361   : > { %2470 = vst.msk [vmem:[%s3979_s11 + $0xe8] sm:$0xff] %vm2440_vm12, %v2890_v42  ;;  %v2573_v17 = vmul.f32 %v2890_v42, %v2890_v42  ;;  %v2421_v47 = vpop.f32.mrb[13].mxu1  ;;  %v2530_v48 = vsel %vm2440_vm12, %v2890_v42, 0.0 }
 0x362   : > { %2469 = vst.msk [vmem:[%s3979_s11 + $0xe0] sm:$0xff] %vm2440_vm12, %v2421_v47  ;;  %v2528_v28 = vsel %vm2440_vm12, %v2421_v47, 0.0  ;;  %v2572_v1 = vmul.f32 %v2421_v47, %v2421_v47 }
 0x363   : > { %v2529_v14 = vadd.f32 %v2528_v28, %v2527_v56  ;;  %v2633_v29 = vsel %vm2440_vm12, %v2573_v17, 0.0 }
 0x364   : > { %v2631_v30 = vsel %vm2440_vm12, %v2572_v1, 0.0 }
 0x365   : > { %v2632_v19 = vadd.f32 %v2631_v30, %v2630_v61  ;;  %v2531_v4 = vadd.f32 %v2530_v48, %v2529_v14 }
 0x367   : > { %v2634_v7 = vadd.f32 %v2633_v29, %v2632_v19 }
 0x373   : > { %v2893_v31 = vpop.f32.mrb[14].mxu1 }
 0x374   : > { %2472 = vst.msk [vmem:[%s3979_s11 + $0xf8] sm:$0xff] %vm2440_vm12, %v2893_v31  ;;  %v2431_v38 = vpop.f32.mrb[15].mxu1  ;;  %v2575_v58 = vmul.f32 %v2893_v31, %v2893_v31  ;;  %v2534_v59 = vsel %vm2440_vm12, %v2893_v31, 0.0 }
 0x375   : > { %2471 = vst.msk [vmem:[%s3979_s11 + $0xf0] sm:$0xff] %vm2440_vm12, %v2431_v38  ;;  %v2532_v63 = vsel %vm2440_vm12, %v2431_v38, 0.0  ;;  %v2574_v32 = vmul.f32 %v2431_v38, %v2431_v38 }
 0x376   : > { %v2533_v53 = vadd.f32 %v2532_v63, %v2531_v4  ;;  %v2637_v18 = vsel %vm2440_vm12, %v2575_v58, 0.0 }
 0x377   : > { %v2635_v49 = vsel %vm2440_vm12, %v2574_v32, 0.0 }
 0x378   : > { %v2535_v33 = vadd.f32 %v2534_v59, %v2533_v53  ;;  %v2636_v27 = vadd.f32 %v2635_v49, %v2634_v7 }
 0x37a   : > { %v2536_v34 = vrot.slane %v2535_v33, 4  ;;  %v2638_v50 = vadd.f32 %v2637_v18, %v2636_v27 }
 0x37c   : > { %v2537_v21 = vadd.f32 %v2536_v34, %v2535_v33  ;;  %v2639_v26 = vrot.slane %v2638_v50, 4 }
 0x37e   : > { %v2538_v40 = vrot.slane %v2537_v21, 2  ;;  %v2640_v35 = vadd.f32 %v2639_v26, %v2638_v50 }
 0x380   : > { %v2539_v62 = vadd.f32 %v2538_v40, %v2537_v21  ;;  %v2641_v6 = vrot.slane %v2640_v35, 2 }
 0x382   : > { %v2540_v9 = vrot.slane %v2539_v62, 1  ;;  %v2642_v3 = vadd.f32 %v2641_v6, %v2640_v35 }
 0x384   : > { %v2541_v55 = vadd.f32 %v2540_v9, %v2539_v62  ;;  %v2643_v10 = vrot.slane %v2642_v3, 1 }
 0x386   : > { %2543 = vst.msk [vmem:[%s265_s13] sm:$0x1] %vm2542_vm13, %v2541_v55  ;;  %v2644_v52 = vadd.f32 %v2643_v10, %v2642_v3 }
 0x388   : > { %2645 = vst.msk [vmem:[%s268_s16] sm:$0x1] %vm2542_vm13, %v2644_v52 }
 0x389 PF: > { %s17_s21 = sadd.s32 1, %s2933_s21  }
 0x38a   : > { %p14_p4 = scmp.ge.s32.totalorder %s17_s21, 4  }
 0x38c   :  { %16 = sbr.rel (!%p14_p4) target bundleno = 1 (0x1), region = 92 }

// kernel: conv_block_forward.4
= control target key start
LH: loop header
LB: loop body
LE: loop exit
PB: predicated region body
PF: predicated region fallthrough
CT: control target
= control target key end

     0   :  { %s3033_s21 = smov 0   ;;  %s4251_s0 = inlined_call_operand.vmem [shape: f32[2,16,16,8], index: 0, kind: input, shape index: {}]   ;;  %s4252_s1 = inlined_call_operand.vmem [shape: f32[72,8], index: 1, kind: input, shape index: {}]   ;;  %s4253_s2 = inlined_call_operand.vmem [shape: f32[1,8], index: 2, kind: input, shape index: {}]   ;;  %s4254_s3 = inlined_call_operand.vmem [shape: f32[1,8], index: 3, kind: input, shape index: {}]   ;;  %s4255_s4 = inlined_call_operand.vmem [shape: f32[2,16,16,8], index: 4, kind: output, shape index: {0}]   ;;  %s4256_s5 = inlined_call_operand.vmem [shape: f32[2,1,8], index: 5, kind: output, shape index: {1}]   ;;  %s4257_s6 = inlined_call_operand.vmem [shape: f32[2,1,8], index: 6, kind: output, shape index: {2}]  }
   0x1 LB: > { %s2782_s22 = sadd.s32 4294967295, %s2987_s21   ;;  %p2786_p0 = scmp.ge.s32.totalorder %s2987_s21, 1  ;;  %s2987_s21 = sphi %s3033_s21, %s17_s21  }
   0x2   : > { %p217_p1 = scmp.lt.s32.totalorder %s2987_s21, 3 }
   0x4   : > { %p218_p2 = pnand %p2786_p0, %p217_p1 }
   0x5   : > { %vm411_vm0 = vcmask (!%p218_p2), 64512   ;;  %vm414_vm1 = vcmask (!%p218_p2), 58368   ;;  %p3043_p3 = scmp.lt.s32.totalorder (!%p218_p2), %s2782_s22, 1  ;;  %v2989_v0 = vmov (!%p218_p2), 0.0   ;;  %v3111_v1 = vld [vmem:[%s4253_s2] ss:$0 sm:$0xff] (!%p218_p2) }
   0x6   : > { %221 = sbr.rel (%p218_p2) target bundleno = 905 (0x389), region = 36  ;;  %412 = vst.msk [vmem:[#allocation2] sm:$0xff] (!%p218_p2), %vm411_vm0, %v2989_v0  ;;  %413 = vst.msk [vmem:[#allocation2 + $0x8] sm:$0xff] (!%p218_p2), %vm411_vm0, %v2989_v0  ;;  %v3123_v2 = vld [vmem:[%s4254_s3] ss:$0 sm:$0xff] (!%p218_p2)  ;;  %s2990_s8 = smov (!%p218_p2), 8  }
   0x7   : > { %416 = vst.msk [vmem:[#allocation2 + $0x18] sm:$0xff] (!%p218_p2), %vm411_vm0, %v2989_v0  ;;  %417 = vst.msk [vmem:[#allocation2 + $0x20] sm:$0xff] (!%p218_p2), %vm411_vm0, %v2989_v0  ;;  %s2991_s9 = smov (!%p218_p2), 16   ;;  %vm724_vm2 = vcmask (!%p218_p2), 130112   ;;  %s2992_s10 = smov (!%p218_p2), 24   ;;  %vm917_vm3 = vcmask (!%p218_p2), 195712  }
   0x8   : > { %419 = vst.msk [vmem:[#allocation2 + $0x30] sm:$0xff] (!%p218_p2), %vm411_vm0, %v2989_v0  ;;  %420 = vst.msk [vmem:[#allocation2 + $0x38] sm:$0xff] (!%p218_p2), %vm411_vm0, %v2989_v0  ;;  %s2993_s11 = smov (!%p218_p2), 32   ;;  %s2994_s16 = smov (!%p218_p2), 40   ;;  %vm1110_vm4 = vcmask (!%p218_p2), 261312   ;;  %vm1303_vm5 = vcmask (!%p218_p2), 326912  }
   0x9   : > { %422 = vst.msk [vmem:[#allocation2 + $0x48] sm:$0xff] (!%p218_p2), %vm411_vm0, %v2989_v0  ;;  %423 = vst.msk [vmem:[#allocation2 + $0x50] sm:$0xff] (!%p218_p2), %vm411_vm0, %v2989_v0  ;;  %s2995_s23 = smov (!%p218_p2), 48   ;;  %s2996_s12 = smov (!%p218_p2), 56   ;;  %vm1496_vm6 = vcmask (!%p218_p2), 392512   ;;  %vm1690_vm7 = vcmask (!%p218_p2), 458112  }
   0xa   : > { %425 = vst.msk [vmem:[#allocation2 + $0x60] sm:$0xff] (!%p218_p2), %vm411_vm0, %v2989_v0  ;;  %426 = vst.msk [vmem:[#allocation2 + $0x68] sm:$0xff] (!%p218_p2), %vm411_vm0, %v2989_v0  ;;  %s2997_s13 = smov (!%p218_p2), 64   ;;  %vm1883_vm8 = vcmask (!%p218_p2), 523712   ;;  %vm2076_vm9 = vcmask (!%p218_p2), 589312   ;;  %vm2150_vm10 = vcmask (!%p218_p2), 588800  }
   0xb   : > { %428 = vst.msk [vmem:[#allocation2 + $0x78] sm:$0xff] (!%p218_p2), %vm411_vm0, %v2989_v0  ;;  %429 = vst.msk [vmem:[#allocation2 + $0x80] sm:$0xff] (!%p218_p2), %vm411_vm0, %v2989_v0  ;;  %vm2573_vm11 = vcmask (!%p218_p2), 57344  }
   0xc   : > { %431 = vst.msk [vmem:[#allocation2 + $0x90] sm:$0xff] (!%p218_p2), %vm411_vm0, %v2989_v0  ;;  %432 = vst.msk [vmem:[#allocation2 + $0x98] sm:$0xff] (!%p218_p2), %vm411_vm0, %v2989_v0 }
   0xd   : > { %434 = vst.msk [vmem:[#allocation2 + $0xa8] sm:$0xff] %vm411_vm0, %v2989_v0  ;;  %435 = vst.msk [vmem:[#allocation2 + $0xb0] sm:$0xff] %vm411_vm0, %v2989_v0  ;;  %s4260_s22 = smov (!%p3043_p3, %s2782_s22), 1  ;;  %v564_v12 = vld [vmem:[#allocation2 + $0x1] sm:$0xff] }
   0xe   : > { %437 = vst.msk [vmem:[#allocation2 + $0xc0] sm:$0xff] %vm411_vm0, %v2989_v0  ;;  %438 = vst.msk [vmem:[#allocation2 + $0xc8] sm:$0xff] %vm411_vm0, %v2989_v0  ;;  %s2827_s24 = sshll.u32 %s4260_s22, 8  ;;  %628 = vrot.lane.b32.xlu0 %v564_v12, %s2990_s8  ;;  %s268_s27 = scalar_lea.vmem %s4257_s6, %s4260_s22 }
   0xf   : > { %440 = vst.msk [vmem:[#allocation2 + $0xd8] sm:$0xff] %vm411_vm0, %v2989_v0  ;;  %441 = vst.msk [vmem:[#allocation2 + $0xe0] sm:$0xff] %vm411_vm0, %v2989_v0  ;;  %s3118_s29 = scalar_lea.vmem %s4251_s0, %s2827_s24 }
  0x10   : > { %443 = vst.msk [vmem:[#allocation2 + $0xf0] sm:$0xff] %vm411_vm0, %v2989_v0  ;;  %444 = vst.msk [vmem:[#allocation2 + $0xf8] sm:$0xff] %vm411_vm0, %v2989_v0  ;;  %v269_v3 = vld [vmem:[%s3118_s29] sm:$0xff]  ;;  %v271_v4 = vld [vmem:[%s3118_s29 + $0x10] sm:$0xff] }
  0x11   : > { %446 = vst.msk [vmem:[#allocation2 + $0x108] sm:$0xff] %vm411_vm0, %v2989_v0  ;;  %447 = vst.msk [vmem:[#allocation2 + $0x110] sm:$0xff] %vm411_vm0, %v2989_v0  ;;  %v270_v5 = vld [vmem:[%s3118_s29 + $0x8] sm:$0xff]  ;;  %v308_v6 = vmul.f32 %v3111_v1, %v269_v3  ;;  %v310_v7 = vmul.f32 %v3111_v1, %v271_v4  ;;  %v273_v9 = vld [vmem:[%s3118_s29 + $0x20] sm:$0xff] }
  0x12   : > { %449 = vst.msk [vmem:[#allocation2 + $0x120] sm:$0xff] %vm411_vm0, %v2989_v0  ;;  %450 = vst.msk [vmem:[#allocation2 + $0x128] sm:$0xff] %vm411_vm0, %v2989_v0  ;;  %v309_v8 = vmul.f32 %v3111_v1, %v270_v5  ;;  %v272_v10 = vld [vmem:[%s3118_s29 + $0x18] sm:$0xff]  ;;  %v275_v11 = vld [vmem:[%s3118_s29 + $0x30] sm:$0xff]  ;;  %v312_v13 = vmul.f32 %v3111_v1, %v273_v9 }
  0x13   : > { %452 = vst.msk [vmem:[#allocation2 + $0x138] sm:$0xff] %vm411_vm0, %v2989_v0  ;;  %453 = vst.msk [vmem:[#allocation2 + $0x140] sm:$0xff] %vm411_vm0, %v2989_v0  ;;  %v311_v14 = vmul.f32 %v3111_v1, %v272_v10  ;;  %v314_v15 = vmul.f32 %v3111_v1, %v275_v11  ;;  %v274_v16 = vld [vmem:[%s3118_s29 + $0x28] sm:$0xff]  ;;  %v347_v18 = vadd.f32 %v3123_v2, %v308_v6  ;;  %v277_v22 = vld [vmem:[%s3118_s29 + $0x40] sm:$0xff] }
  0x14   : > { %455 = vst.msk [vmem:[#allocation2 + $0x150] sm:$0xff] %vm411_vm0, %v2989_v0  ;;  %456 = vst.msk [vmem:[#allocation2 + $0x158] sm:$0xff] %vm411_vm0, %v2989_v0  ;;  %v349_v19 = vadd.f32 %v3123_v2, %v310_v7  ;;  %v348_v20 = vadd.f32 %v3123_v2, %v309_v8  ;;  %v313_v21 = vmul.f32 %v3111_v1, %v274_v16  ;;  %v276_v27 = vld [vmem:[%s3118_s29 + $0x38] sm:$0xff]  ;;  %v279_v28 = vld [vmem:[%s3118_s29 + $0x50] sm:$0xff] }
  0x15   : > { %458 = vst.msk [vmem:[#allocation2 + $0x168] sm:$0xff] %vm411_vm0, %v2989_v0  ;;  %459 = vst.msk [vmem:[#allocation2 + $0x170] sm:$0xff] %vm411_vm0, %v2989_v0  ;;  %v351_v23 = vadd.f32 %v3123_v2, %v312_v13  ;;  %v350_v24 = vadd.f32 %v3123_v2, %v311_v14  ;;  %v353_v25 = vadd.f32 %v3123_v2, %v314_v15  ;;  %v278_v29 = vld [vmem:[%s3118_s29 + $0x48] sm:$0xff]  ;;  %v379_v30 = vmax.f32 %v347_v18, 0.0  ;;  %v281_v34 = vld [vmem:[%s3118_s29 + $0x60] sm:$0xff] }
  0x16   : > { %461 = vst.msk [vmem:[#allocation2 + $0x180] sm:$0xff] %vm411_vm0, %v2989_v0  ;;  %462 = vst.msk [vmem:[#allocation2 + $0x188] sm:$0xff] %vm411_vm0, %v2989_v0  ;;  %v316_v26 = vmul.f32 %v3111_v1, %v277_v22  ;;  %v381_v31 = vmax.f32 %v349_v19, 0.0  ;;  %v380_v32 = vmax.f32 %v348_v20, 0.0  ;;  %v352_v33 = vadd.f32 %v3123_v2, %v313_v21  ;;  %v280_v35 = vld [vmem:[%s3118_s29 + $0x58] sm:$0xff]  ;;  %v283_v36 = vld [vmem:[%s3118_s29 + $0x70] sm:$0xff] }
  0x17   : > { %464 = vst.msk [vmem:[#allocation2 + $0x198] sm:$0xff] %vm411_vm0, %v2989_v0  ;;  %465 = vst.msk [vmem:[#allocation2 + $0x1a0] sm:$0xff] %vm411_vm0, %v2989_v0  ;;  %v383_v37 = vmax.f32 %v351_v23, 0.0  ;;  %v382_v38 = vmax.f32 %v350_v24, 0.0  ;;  %v385_v39 = vmax.f32 %v353_v25, 0.0  ;;  %v282_v41 = vld [vmem:[%s3118_s29 + $0x68] sm:$0xff]  ;;  %v315_v43 = vmul.f32 %v3111_v1, %v276_v27 }
  0x18   : > { %415 = vst.msk [vmem:[#allocation2 + $0x10] sm:$0x3] %vm414_vm1, %v2989_v0  ;;  %418 = vst.msk [vmem:[#allocation2 + $0x28] sm:$0x3] %vm414_vm1, %v2989_v0  ;;  %v355_v40 = vadd.f32 %v3123_v2, %v316_v26  ;;  %v384_v42 = vmax.f32 %v352_v33, 0.0  ;;  %v318_v44 = vmul.f32 %v3111_v1, %v279_v28  ;;  %v317_v45 = vmul.f32 %v3111_v1, %v278_v29  ;;  %v285_v46 = vld [vmem:[%s3118_s29 + $0x80] sm:$0xff] }
  0x19   : > { %421 = vst.msk [vmem:[#allocation2 + $0x40] sm:$0x3] %vm414_vm1, %v2989_v0  ;;  %424 = vst.msk [vmem:[#allocation2 + $0x58] sm:$0x3] %vm414_vm1, %v2989_v0  ;;  %v320_v48 = vmul.f32 %v3111_v1, %v281_v34  ;;  %v319_v49 = vmul.f32 %v3111_v1, %v280_v35  ;;  %v322_v50 = vmul.f32 %v3111_v1, %v283_v36  ;;  %v284_v55 = vld [vmem:[%s3118_s29 + $0x78] sm:$0xff]  ;;  %v287_v56 = vld [vmem:[%s3118_s29 + $0x90] sm:$0xff] }
  0x1a   : > { %427 = vst.msk [vmem:[#allocation2 + $0x70] sm:$0x3] %vm414_vm1, %v2989_v0  ;;  %430 = vst.msk [vmem:[#allocation2 + $0x88] sm:$0x3] %vm414_vm1, %v2989_v0  ;;  %v387_v47 = vmax.f32 %v355_v40, 0.0  ;;  %v354_v51 = vadd.f32 %v3123_v2, %v315_v43  ;;  %v357_v52 = vadd.f32 %v3123_v2, %v318_v44  ;;  %v356_v53 = vadd.f32 %v3123_v2, %v317_v45  ;;  %v286_v61 = vld [vmem:[%s3118_s29 + $0x88] sm:$0xff] }
  0x1b   : > { %433 = vst.msk [vmem:[#allocation2 + $0xa0] sm:$0x3] %vm414_vm1, %v2989_v0  ;;  %436 = vst.msk [vmem:[#allocation2 + $0xb8] sm:$0x3] %vm414_vm1, %v2989_v0  ;;  %v321_v54 = vmul.f32 %v3111_v1, %v282_v41  ;;  %v359_v57 = vadd.f32 %v3123_v2, %v320_v48  ;;  %v358_v58 = vadd.f32 %v3123_v2, %v319_v49  ;;  %v289_v62 = vld [vmem:[%s3118_s29 + $0xa0] sm:$0xff]  ;;  %v288_v63 = vld [vmem:[%s3118_s29 + $0x98] sm:$0xff] }
  0x1c   : > { %439 = vst.msk [vmem:[#allocation2 + $0xd0] sm:$0x3] %vm414_vm1, %v2989_v0  ;;  %442 = vst.msk [vmem:[#allocation2 + $0xe8] sm:$0x3] %vm414_vm1, %v2989_v0  ;;  %v361_v59 = vadd.f32 %v3123_v2, %v322_v50  ;;  %v324_v60 = vmul.f32 %v3111_v1, %v285_v46  ;;  %v389_v3 = vmax.f32 %v357_v52, 0.0  ;;  %v388_v4 = vmax.f32 %v356_v53, 0.0 }
  0x1d   : > { %445 = vst.msk [vmem:[#allocation2 + $0x100] sm:$0x3] %vm414_vm1, %v2989_v0  ;;  %448 = vst.msk [vmem:[#allocation2 + $0x118] sm:$0x3] %vm414_vm1, %v2989_v0  ;;  %v360_v5 = vadd.f32 %v3123_v2, %v321_v54  ;;  %v291_v6 = vld [vmem:[%s3118_s29 + $0xb0] sm:$0xff]  ;;  %v500_v7 = vld [vmem:[#allocation2] sm:$0xff]  ;;  %v323_v14 = vmul.f32 %v3111_v1, %v284_v55  ;;  %v326_v15 = vmul.f32 %v3111_v1, %v287_v56 }
  0x1e   : > { %451 = vst.msk [vmem:[#allocation2 + $0x130] sm:$0x3] %vm414_vm1, %v2989_v0  ;;  %454 = vst.msk [vmem:[#allocation2 + $0x148] sm:$0x3] %vm414_vm1, %v2989_v0  ;;  %v501_v8 = vld [vmem:[#allocation2 + $0x8] sm:$0xff]  ;;  %v391_v9 = vmax.f32 %v359_v57, 0.0  ;;  %v363_v12 = vadd.f32 %v3123_v2, %v324_v60  ;;  %v325_v16 = vmul.f32 %v3111_v1, %v286_v61  ;;  %v328_v21 = vmul.f32 %v3111_v1, %v289_v62 }
  0x1f   : > { %457 = vst.msk [vmem:[#allocation2 + $0x160] sm:$0x3] %vm414_vm1, %v2989_v0  ;;  %460 = vst.msk [vmem:[#allocation2 + $0x178] sm:$0x3] %vm414_vm1, %v2989_v0  ;;  %v565_v17 = vld [vmem:[#allocation2 + $0x9] sm:$0xff]  ;;  %v390_v10 = vmax.f32 %v358_v58, 0.0  ;;  %v327_v22 = vmul.f32 %v3111_v1, %v288_v63  ;;  %v330_v23 = vmul.f32 %v3111_v1, %v291_v6  ;;  %v362_v25 = vadd.f32 %v3123_v2, %v323_v14 }
  0x20   : > { %463 = vst.msk [vmem:[#allocation2 + $0x190] sm:$0x3] %vm414_vm1, %v2989_v0  ;;  %466 = vst.msk [vmem:[#allocation2 + $0x1a8] sm:$0x3] %vm414_vm1, %v2989_v0  ;;  %630 = vrot.lane.b32.xlu0 %v565_v17, %s2990_s8  ;;  %v386_v0 = vmax.f32 %v354_v51, 0.0  ;;  %v393_v11 = vmax.f32 %v361_v59, 0.0  ;;  %v365_v26 = vadd.f32 %v3123_v2, %v326_v15  ;;  %v364_v27 = vadd.f32 %v3123_v2, %v325_v16 }
  0x21   : > { %468 = vst.msk [vmem:[#allocation2 + $0x19] sm:$0xff] %vm411_vm0, %v379_v30  ;;  %470 = vst.msk [vmem:[#allocation2 + $0x31] sm:$0xff] %vm411_vm0, %v381_v31  ;;  %v392_v13 = vmax.f32 %v360_v5, 0.0  ;;  %v290_v17 = vld [vmem:[%s3118_s29 + $0xa8] sm:$0xff]  ;;  %v395_v20 = vmax.f32 %v363_v12, 0.0  ;;  %v293_v24 = vld [vmem:[%s3118_s29 + $0xc0] sm:$0xff]  ;;  %v367_v31 = vadd.f32 %v3123_v2, %v328_v21  ;;  %v369_v33 = vadd.f32 %v3123_v2, %v330_v23 }
  0x22   : > { %469 = vst.msk [vmem:[#allocation2 + $0x21] sm:$0xff] %vm411_vm0, %v380_v32  ;;  %472 = vst.msk [vmem:[#allocation2 + $0x49] sm:$0xff] %vm411_vm0, %v383_v37  ;;  %v292_v28 = vld [vmem:[%s3118_s29 + $0xb8] sm:$0xff]  ;;  %v366_v32 = vadd.f32 %v3123_v2, %v327_v22  ;;  %v329_v34 = vmul.f32 %v3111_v1, %v290_v17  ;;  %v295_v35 = vld [vmem:[%s3118_s29 + $0xd0] sm:$0xff]  ;;  %v394_v36 = vmax.f32 %v362_v25, 0.0  ;;  %v397_v37 = vmax.f32 %v365_v26, 0.0 }
  0x23   : > { %471 = vst.msk [vmem:[#allocation2 + $0x39] sm:$0xff] %vm411_vm0, %v382_v38  ;;  %474 = vst.msk [vmem:[#allocation2 + $0x61] sm:$0xff] %vm411_vm0, %v385_v39  ;;  %v396_v38 = vmax.f32 %v364_v27, 0.0  ;;  %v332_v39 = vmul.f32 %v3111_v1, %v293_v24  ;;  %v294_v40 = vld [vmem:[%s3118_s29 + $0xc8] sm:$0xff]  ;;  %v297_v41 = vld [vmem:[%s3118_s29 + $0xe0] sm:$0xff]  ;;  %v399_v43 = vmax.f32 %v367_v31, 0.0  ;;  %v331_v50 = vmul.f32 %v3111_v1, %v292_v28 }
  0x24   : > { %473 = vst.msk [vmem:[#allocation2 + $0x51] sm:$0xff] %vm411_vm0, %v384_v42  ;;  %476 = vst.msk [vmem:[#allocation2 + $0x79] sm:$0xff] %vm411_vm0, %v387_v47  ;;  %v296_v42 = vld [vmem:[%s3118_s29 + $0xd8] sm:$0xff]  ;;  %v398_v44 = vmax.f32 %v366_v32, 0.0  ;;  %v401_v45 = vmax.f32 %v369_v33, 0.0  ;;  %v368_v46 = vadd.f32 %v3123_v2, %v329_v34  ;;  %v298_v47 = vld [vmem:[%s3118_s29 + $0xe8] sm:$0xff]  ;;  %v334_v51 = vmul.f32 %v3111_v1, %v295_v35 }
  0x25   : > { %532 = vst.msk [vmem:[#allocation3] sm:$0xff] %vm411_vm0, %v500_v7  ;;  %533 = vst.msk [vmem:[#allocation3 + $0x8] sm:$0xff] %vm411_vm0, %v501_v8  ;;  %v371_v49 = vadd.f32 %v3123_v2, %v332_v39  ;;  %v333_v58 = vmul.f32 %v3111_v1, %v294_v40  ;;  %v336_v59 = vmul.f32 %v3111_v1, %v297_v41 }
  0x26   : > { %475 = vst.msk [vmem:[#allocation2 + $0x69] sm:$0xff] %vm411_vm0, %v386_v0  ;;  %478 = vst.msk [vmem:[#allocation2 + $0x91] sm:$0xff] %vm411_vm0, %v389_v3  ;;  %v400_v57 = vmax.f32 %v368_v46, 0.0  ;;  %v335_v60 = vmul.f32 %v3111_v1, %v296_v42  ;;  %v370_v62 = vadd.f32 %v3123_v2, %v331_v50  ;;  %v373_v63 = vadd.f32 %v3123_v2, %v334_v51 }
  0x27   : > { %477 = vst.msk [vmem:[#allocation2 + $0x81] sm:$0xff] %vm411_vm0, %v388_v4  ;;  %480 = vst.msk [vmem:[#allocation2 + $0xa9] sm:$0xff] %vm411_vm0, %v391_v9  ;;  %v403_v61 = vmax.f32 %v371_v49, 0.0  ;;  %v337_v0 = vmul.f32 %v3111_v1, %v298_v47  ;;  %v372_v3 = vadd.f32 %v3123_v2, %v333_v58  ;;  %v375_v4 = vadd.f32 %v3123_v2, %v336_v59 }
  0x28   : > { %v3198_v18 = vld [vmem:[#allocation2 + $0x19] sm:$0xff]  ;;  %v3200_v19 = vld [vmem:[#allocation2 + $0x31] sm:$0xff]  ;;  %479 = vst.msk [vmem:[#allocation2 + $0x99] sm:$0xff] %vm411_vm0, %v390_v10  ;;  %482 = vst.msk [vmem:[#allocation2 + $0xc1] sm:$0xff] %vm411_vm0, %v393_v11  ;;  %v374_v5 = vadd.f32 %v3123_v2, %v335_v60  ;;  %v402_v6 = vmax.f32 %v370_v62, 0.0  ;;  %v405_v7 = vmax.f32 %v373_v63, 0.0 }
  0x29   : > { %632 = vrot.lane.b32.xlu1 %v3198_v18, %s2990_s8  ;;  %636 = vrot.lane.b32.xlu0 %v3200_v19, %s2990_s8  ;;  %481 = vst.msk [vmem:[#allocation2 + $0xb1] sm:$0xff] %vm411_vm0, %v392_v13  ;;  %v3218_v29 = vld [vmem:[#allocation2 + $0x21] sm:$0xff]  ;;  %v3220_v30 = vld [vmem:[#allocation2 + $0x49] sm:$0xff]  ;;  %484 = vst.msk [vmem:[#allocation2 + $0xd9] sm:$0xff] %vm411_vm0, %v395_v20  ;;  %v376_v1 = vadd.f32 %v3123_v2, %v337_v0  ;;  %v404_v10 = vmax.f32 %v372_v3, 0.0  ;;  %v407_v11 = vmax.f32 %v375_v4, 0.0 }
  0x2a   : > { %v3234_v48 = vld [vmem:[#allocation2 + $0x18] sm:$0xff]  ;;  %483 = vst.msk [vmem:[#allocation2 + $0xc9] sm:$0xff] %vm411_vm0, %v394_v36  ;;  %486 = vst.msk [vmem:[#allocation2 + $0xf1] sm:$0xff] %vm411_vm0, %v397_v37  ;;  %v3248_v52 = vld [vmem:[#allocation2 + $0x30] sm:$0xff]  ;;  %v406_v12 = vmax.f32 %v374_v5, 0.0 }
  0x2b   : > { %485 = vst.msk [vmem:[#allocation2 + $0xe1] sm:$0xff] %vm411_vm0, %v396_v38  ;;  %534 = vst.msk [vmem:[#allocation3 + $0x10] sm:$0xff] %vm411_vm0, %v3234_v48  ;;  %v3250_v53 = vld [vmem:[#allocation2 + $0x20] sm:$0xff]  ;;  %v3252_v54 = vld [vmem:[#allocation2 + $0x48] sm:$0xff]  ;;  %v408_v13 = vmax.f32 %v376_v1, 0.0 }
  0x2c   : > { %v3254_v55 = vld [vmem:[#allocation2 + $0x39] sm:$0xff]  ;;  %v3256_v56 = vld [vmem:[#allocation2 + $0x61] sm:$0xff]  ;;  %488 = vst.msk [vmem:[#allocation2 + $0x109] sm:$0xff] %vm411_vm0, %v399_v43  ;;  %487 = vst.msk [vmem:[#allocation2 + $0xf9] sm:$0xff] %vm411_vm0, %v398_v44 }
  0x2d   : > { %634 = vrot.lane.b32.xlu1 %v3218_v29, %s2990_s8  ;;  %640 = vrot.lane.b32.xlu0 %v3220_v30, %s2990_s8  ;;  %490 = vst.msk [vmem:[#allocation2 + $0x121] sm:$0xff] %vm411_vm0, %v401_v45  ;;  %536 = vst.msk [vmem:[#allocation3 + $0x20] sm:$0xff] %vm411_vm0, %v3248_v52  ;;  %v3283_v8 = vld [vmem:[#allocation2 + $0x51] sm:$0xff]  ;;  %v3285_v9 = vld [vmem:[#allocation2 + $0x79] sm:$0xff] }
  0x2e   : > { %535 = vst.msk [vmem:[#allocation3 + $0x18] sm:$0xff] %vm411_vm0, %v3250_v53  ;;  %538 = vst.msk [vmem:[#allocation3 + $0x30] sm:$0xff] %vm411_vm0, %v3252_v54  ;;  %v3289_v14 = vld [vmem:[#allocation2 + $0x38] sm:$0xff]  ;;  %v3291_v15 = vld [vmem:[#allocation2 + $0x60] sm:$0xff] }
  0x2f   : > { %489 = vst.msk [vmem:[#allocation2 + $0x111] sm:$0xff] %vm411_vm0, %v400_v57  ;;  %492 = vst.msk [vmem:[#allocation2 + $0x139] sm:$0xff] %vm411_vm0, %v403_v61  ;;  %v3305_v2 = vld [vmem:[#allocation2 + $0x69] sm:$0xff]  ;;  %v576_v16 = vld [vmem:[#allocation2 + $0x91] sm:$0xff] }
  0x30   : > { %491 = vst.msk [vmem:[#allocation2 + $0x129] sm:$0xff] %vm411_vm0, %v402_v6  ;;  %494 = vst.msk [vmem:[#allocation2 + $0x151] sm:$0xff] %vm411_vm0, %v405_v7  ;;  %v3310_v17 = vld [vmem:[#allocation2 + $0x50] sm:$0xff]  ;;  %v3312_v20 = vld [vmem:[#allocation2 + $0x78] sm:$0xff] }
  0x31   : > { %638 = vrot.lane.b32.xlu1 %v3254_v55, %s2990_s8  ;;  %644 = vrot.lane.b32.xlu0 %v3256_v56, %s2990_s8  ;;  %493 = vst.msk [vmem:[#allocation2 + $0x141] sm:$0xff] %vm411_vm0, %v404_v10  ;;  %496 = vst.msk [vmem:[#allocation2 + $0x169] sm:$0xff] %vm411_vm0, %v407_v11  ;;  %v3314_v21 = vld [vmem:[#allocation2 + $0x81] sm:$0xff]  ;;  %v578_v22 = vld [vmem:[#allocation2 + $0xa9] sm:$0xff] }
  0x32   : > { %495 = vst.msk [vmem:[#allocation2 + $0x159] sm:$0xff] %vm411_vm0, %v406_v12  ;;  %537 = vst.msk [vmem:[#allocation3 + $0x28] sm:$0xff] %vm411_vm0, %v3289_v14  ;;  %v3323_v23 = vld [vmem:[#allocation2 + $0x99] sm:$0xff]  ;;  %v580_v24 = vld [vmem:[#allocation2 + $0xc1] sm:$0xff] }
  0x33   : > { %540 = vst.msk [vmem:[#allocation3 + $0x40] sm:$0xff] %vm411_vm0, %v3291_v15  ;;  %497 = vst.msk [vmem:[#allocation2 + $0x171] sm:$0xff] %vm411_vm0, %v408_v13  ;;  %v3325_v25 = vld [vmem:[#allocation2 + $0x68] sm:$0xff]  ;;  %v3329_v26 = vld [vmem:[#allocation2 + $0x90] sm:$0xff] }
  0x34   : > { %539 = vst.msk [vmem:[#allocation3 + $0x38] sm:$0xff] %vm411_vm0, %v3310_v17  ;;  %542 = vst.msk [vmem:[#allocation3 + $0x50] sm:$0xff] %vm411_vm0, %v3312_v20  ;;  %v3331_v27 = vld [vmem:[#allocation2 + $0x80] sm:$0xff]  ;;  %v3333_v28 = vld [vmem:[#allocation2 + $0xa8] sm:$0xff] }
  0x35   : > { %642 = vrot.lane.b32.xlu1 %v3283_v8, %s2990_s8  ;;  %648 = vrot.lane.b32.xlu0 %v3285_v9, %s2990_s8  ;;  %541 = vst.msk [vmem:[#allocation3 + $0x48] sm:$0xff] %vm411_vm0, %v3325_v25  ;;  %v579_v31 = vld [vmem:[#allocation2 + $0xb1] sm:$0xff]  ;;  %v582_v32 = vld [vmem:[#allocation2 + $0xd9] sm:$0xff]  ;;  %544 = vst.msk [vmem:[#allocation3 + $0x60] sm:$0xff] %vm411_vm0, %v3329_v26 }
  0x36   : > { %543 = vst.msk [vmem:[#allocation3 + $0x58] sm:$0xff] %vm411_vm0, %v3331_v27  ;;  %546 = vst.msk [vmem:[#allocation3 + $0x70] sm:$0xff] %vm411_vm0, %v3333_v28  ;;  %v3341_v33 = vld [vmem:[#allocation2 + $0x98] sm:$0xff]  ;;  %v3343_v34 = vld [vmem:[#allocation2 + $0xc0] sm:$0xff] }
  0x37   : > { %v3345_v35 = vld [vmem:[#allocation2 + $0xb0] sm:$0xff]  ;;  %545 = vst.msk [vmem:[#allocation3 + $0x68] sm:$0xff] %vm411_vm0, %v3341_v33  ;;  %548 = vst.msk [vmem:[#allocation3 + $0x80] sm:$0xff] %vm411_vm0, %v3343_v34  ;;  %v3356_v36 = vld [vmem:[#allocation2 + $0xd8] sm:$0xff] }
  0x38   : > { %547 = vst.msk [vmem:[#allocation3 + $0x78] sm:$0xff] %vm411_vm0, %v3345_v35  ;;  %v3358_v37 = vld [vmem:[#allocation2 + $0xc8] sm:$0xff]  ;;  %v3360_v38 = vld [vmem:[#allocation2 + $0xf0] sm:$0xff]  ;;  %550 = vst.msk [vmem:[#allocation3 + $0x90] sm:$0xff] %vm411_vm0, %v3356_v36 }
  0x39   : > { %646 = vrot.lane.b32.xlu1 %v3305_v2, %s2990_s8  ;;  %652 = vrot.lane.b32.xlu0 %v576_v16, %s2990_s8  ;;  %549 = vst.msk [vmem:[#allocation3 + $0x88] sm:$0xff] %vm411_vm0, %v3358_v37  ;;  %552 = vst.msk [vmem:[#allocation3 + $0xa0] sm:$0xff] %vm411_vm0, %v3360_v38  ;;  %v3368_v39 = vld [vmem:[#allocation2 + $0xe0] sm:$0xff]  ;;  %v3370_v40 = vld [vmem:[#allocation2 + $0x108] sm:$0xff] }
  0x3a   : > { %v3372_v41 = vld [vmem:[#allocation2 + $0xf8] sm:$0xff]  ;;  %551 = vst.msk [vmem:[#allocation3 + $0x98] sm:$0xff] %vm411_vm0, %v3368_v39  ;;  %554 = vst.msk [vmem:[#allocation3 + $0xb0] sm:$0xff] %vm411_vm0, %v3370_v40  ;;  %v3380_v42 = vld [vmem:[#allocation2 + $0x120] sm:$0xff] }
  0x3b   : > { %553 = vst.msk [vmem:[#allocation3 + $0xa8] sm:$0xff] %vm411_vm0, %v3372_v41  ;;  %556 = vst.msk [vmem:[#allocation3 + $0xc0] sm:$0xff] %vm411_vm0, %v3380_v42  ;;  %v3386_v43 = vld [vmem:[#allocation2 + $0x110] sm:$0xff]  ;;  %v526_v46 = vld [vmem:[#allocation2 + $0x138] sm:$0xff] }
  0x3c   : > { %v581_v44 = vld [vmem:[#allocation2 + $0xc9] sm:$0xff]  ;;  %v584_v45 = vld [vmem:[#allocation2 + $0xf1] sm:$0xff]  ;;  %555 = vst.msk [vmem:[#allocation3 + $0xb8] sm:$0xff] %vm411_vm0, %v3386_v43  ;;  %558 = vst.msk [vmem:[#allocation3 + $0xd0] sm:$0xff] %vm411_vm0, %v526_v46 }
  0x3d   : > { %650 = vrot.lane.b32.xlu1 %v3314_v21, %s2990_s8  ;;  %656 = vrot.lane.b32.xlu0 %v578_v22, %s2990_s8  ;;  %v3393_v47 = vld [vmem:[#allocation2 + $0x128] sm:$0xff]  ;;  %v528_v51 = vld [vmem:[#allocation2 + $0x150] sm:$0xff]  ;;  %v527_v57 = vld [vmem:[#allocation2 + $0x140] sm:$0xff] }
  0x3e   : > { %v583_v49 = vld [vmem:[#allocation2 + $0xe1] sm:$0xff]  ;;  %v586_v50 = vld [vmem:[#allocation2 + $0x109] sm:$0xff]  ;;  %557 = vst.msk [vmem:[#allocation3 + $0xc8] sm:$0xff] %vm411_vm0, %v3393_v47  ;;  %560 = vst.msk [vmem:[#allocation3 + $0xe0] sm:$0xff] %vm411_vm0, %v528_v51 }
  0x3f   : > { %v585_v58 = vld [vmem:[#allocation2 + $0xf9] sm:$0xff]  ;;  %v588_v59 = vld [vmem:[#allocation2 + $0x121] sm:$0xff]  ;;  %559 = vst.msk [vmem:[#allocation3 + $0xd8] sm:$0xff] %vm411_vm0, %v527_v57  ;;  %v587_v62 = vld [vmem:[#allocation2 + $0x111] sm:$0xff] }
  0x40   : > { %v530_v60 = vld [vmem:[#allocation2 + $0x168] sm:$0xff]  ;;  %v529_v61 = vld [vmem:[#allocation2 + $0x158] sm:$0xff]  ;;  %v531_v0 = vld [vmem:[#allocation2 + $0x170] sm:$0xff] }
  0x41   : > { %654 = vrot.lane.b32.xlu1 %v3323_v23, %s2990_s8  ;;  %660 = vrot.lane.b32.xlu0 %v580_v24, %s2990_s8  ;;  %562 = vst.msk [vmem:[#allocation3 + $0xf0] sm:$0xff] %vm411_vm0, %v530_v60  ;;  %v590_v63 = vld [vmem:[#allocation2 + $0x139] sm:$0xff]  ;;  %561 = vst.msk [vmem:[#allocation3 + $0xe8] sm:$0xff] %vm411_vm0, %v529_v61  ;;  %v589_v3 = vld [vmem:[#allocation2 + $0x129] sm:$0xff] }
  0x42   : > { %v592_v4 = vld [vmem:[#allocation2 + $0x151] sm:$0xff]  ;;  %563 = vst.msk [vmem:[#allocation3 + $0xf8] sm:$0xff] %vm411_vm0, %v531_v0  ;;  %v591_v5 = vld [vmem:[#allocation2 + $0x141] sm:$0xff]  ;;  %v594_v6 = vld [vmem:[#allocation2 + $0x169] sm:$0xff] }
  0x43   : > { %v593_v7 = vld [vmem:[#allocation2 + $0x159] sm:$0xff]  ;;  %v757_v1 = vld [vmem:[#allocation2 + $0x2] sm:$0xff]  ;;  %v595_v10 = vld [vmem:[#allocation2 + $0x171] sm:$0xff] }
  0x44   : > { %v3414_v11 = vld [vmem:[#allocation2 + $0x1a] sm:$0xff]  ;;  %v758_v12 = vld [vmem:[#allocation2 + $0xa] sm:$0xff]  ;;  %v3419_v13 = vld [vmem:[#allocation2 + $0x32] sm:$0xff] }
  0x45   : > { %658 = vrot.lane.b32.xlu1 %v579_v31, %s2990_s8  ;;  %664 = vrot.lane.b32.xlu0 %v582_v32, %s2990_s8  ;;  %v3424_v16 = vld [vmem:[#allocation2 + $0x22] sm:$0xff]  ;;  %v3426_v22 = vld [vmem:[#allocation2 + $0x4a] sm:$0xff]  ;;  %v3432_v24 = vld [vmem:[#allocation2 + $0x3a] sm:$0xff] }
  0x46   : > { %v3434_v31 = vld [vmem:[#allocation2 + $0x62] sm:$0xff]  ;;  %v3440_v32 = vld [vmem:[#allocation2 + $0x52] sm:$0xff]  ;;  %v3464_v51 = vld [vmem:[#allocation2 + $0x9a] sm:$0xff] }
  0x47   : > { %v3450_v46 = vld [vmem:[#allocation2 + $0x92] sm:$0xff]  ;;  %v3466_v57 = vld [vmem:[#allocation2 + $0xc2] sm:$0xff]  ;;  %v3477_v60 = vld [vmem:[#allocation2 + $0xca] sm:$0xff] }
  0x48   : > { %v777_v61 = vld [vmem:[#allocation2 + $0xf2] sm:$0xff]  ;;  %v778_v0 = vld [vmem:[#allocation2 + $0xfa] sm:$0xff] }
  0x49   : > { %662 = vrot.lane.b32.xlu1 %v581_v44, %s2990_s8  ;;  %668 = vrot.lane.b32.xlu0 %v584_v45, %s2990_s8  ;;  %v3442_v44 = vld [vmem:[#allocation2 + $0x7a] sm:$0xff]  ;;  %v3448_v45 = vld [vmem:[#allocation2 + $0x6a] sm:$0xff] }
  0x4d   : > { %666 = vrot.lane.b32.xlu1 %v583_v49, %s2990_s8  ;;  %672 = vrot.lane.b32.xlu0 %v586_v50, %s2990_s8  ;;  %v3456_v49 = vld [vmem:[#allocation2 + $0x82] sm:$0xff]  ;;  %v3458_v50 = vld [vmem:[#allocation2 + $0xaa] sm:$0xff] }
  0x51   : > { %670 = vrot.lane.b32.xlu1 %v585_v58, %s2990_s8  ;;  %676 = vrot.lane.b32.xlu0 %v588_v59, %s2990_s8  ;;  %v3472_v58 = vld [vmem:[#allocation2 + $0xb2] sm:$0xff]  ;;  %v775_v59 = vld [vmem:[#allocation2 + $0xda] sm:$0xff] }
  0x55   : > { %674 = vrot.lane.b32.xlu1 %v587_v62, %s2990_s8  ;;  %680 = vrot.lane.b32.xlu0 %v590_v63, %s2990_s8  ;;  %v776_v62 = vld [vmem:[#allocation2 + $0xe2] sm:$0xff]  ;;  %v779_v63 = vld [vmem:[#allocation2 + $0x10a] sm:$0xff] }
  0x59   : > { %678 = vrot.lane.b32.xlu1 %v589_v3, %s2990_s8  ;;  %684 = vrot.lane.b32.xlu0 %v592_v4, %s2990_s8  ;;  %v781_v3 = vld [vmem:[#allocation2 + $0x122] sm:$0xff] }
  0x5d   : > { %682 = vrot.lane.b32.xlu1 %v591_v5, %s2990_s8  ;;  %688 = vrot.lane.b32.xlu0 %v594_v6, %s2990_s8  ;;  %v780_v5 = vld [vmem:[#allocation2 + $0x112] sm:$0xff]  ;;  %v783_v6 = vld [vmem:[#allocation2 + $0x13a] sm:$0xff] }
  0x61   : > { %686 = vrot.lane.b32.xlu1 %v593_v7, %s2990_s8  ;;  %821 = vrot.lane.b32.xlu0 %v757_v1, %s2991_s9  ;;  %v782_v1 = vld [vmem:[#allocation2 + $0x12a] sm:$0xff] }
  0x65   : > { %690 = vrot.lane.b32.xlu1 %v595_v10, %s2990_s8  ;;  %825 = vrot.lane.b32.xlu0 %v3414_v11, %s2991_s9  ;;  %v785_v10 = vld [vmem:[#allocation2 + $0x152] sm:$0xff] }
  0x69   : > { %823 = vrot.lane.b32.xlu1 %v758_v12, %s2991_s9  ;;  %829 = vrot.lane.b32.xlu0 %v3419_v13, %s2991_s9  ;;  %v784_v12 = vld [vmem:[#allocation2 + $0x142] sm:$0xff] }
  0x6d   : > { %827 = vrot.lane.b32.xlu1 %v3424_v16, %s2991_s9  ;;  %833 = vrot.lane.b32.xlu0 %v3426_v22, %s2991_s9 }
  0x71   : > { %831 = vrot.lane.b32.xlu1 %v3432_v24, %s2991_s9  ;;  %837 = vrot.lane.b32.xlu0 %v3434_v31, %s2991_s9 }
  0x75   : > { %835 = vrot.lane.b32.xlu1 %v3440_v32, %s2991_s9  ;;  %841 = vrot.lane.b32.xlu0 %v3442_v44, %s2991_s9 }
  0x79   : > { %839 = vrot.lane.b32.xlu1 %v3448_v45, %s2991_s9  ;;  %845 = vrot.lane.b32.xlu0 %v3450_v46, %s2991_s9 }
  0x7d   : > { %843 = vrot.lane.b32.xlu1 %v3456_v49, %s2991_s9  ;;  %849 = vrot.lane.b32.xlu0 %v3458_v50, %s2991_s9 }
  0x80   : > { %v629_v4 = vpop.permute.xlu0 %628 }
  0x81   : > { %847 = vrot.lane.b32.xlu1 %v3464_v51, %s2991_s9  ;;  %853 = vrot.lane.b32.xlu0 %v3466_v57, %s2991_s9  ;;  %725 = vst.msk [vmem:[#allocation3] sm:$0xff] %vm724_vm2, %v629_v4  ;;  %v788_v4 = vld [vmem:[#allocation2 + $0x172] sm:$0xff] }
  0x85   : > { %851 = vrot.lane.b32.xlu1 %v3472_v58, %s2991_s9  ;;  %857 = vrot.lane.b32.xlu0 %v775_v59, %s2991_s9  ;;  %v787_v59 = vld [vmem:[#allocation2 + $0x16a] sm:$0xff] }
  0x89   : > { %855 = vrot.lane.b32.xlu1 %v3477_v60, %s2991_s9  ;;  %861 = vrot.lane.b32.xlu0 %v777_v61, %s2991_s9 }
  0x8d   : > { %859 = vrot.lane.b32.xlu1 %v776_v62, %s2991_s9  ;;  %865 = vrot.lane.b32.xlu0 %v779_v63, %s2991_s9  ;;  %v786_v63 = vld [vmem:[#allocation2 + $0x15a] sm:$0xff] }
  0x91   : > { %863 = vrot.lane.b32.xlu1 %v778_v0, %s2991_s9  ;;  %869 = vrot.lane.b32.xlu0 %v781_v3, %s2991_s9 }
  0x92   : > { %v631_v7 = vpop.permute.xlu0 %630 }
  0x93   : > { %726 = vst.msk [vmem:[#allocation3 + $0x8] sm:$0xff] %vm724_vm2, %v631_v7 }
  0x95   : > { %867 = vrot.lane.b32.xlu1 %v780_v5, %s2991_s9  ;;  %873 = vrot.lane.b32.xlu0 %v783_v6, %s2991_s9 }
  0x99   : > { %871 = vrot.lane.b32.xlu1 %v782_v1, %s2991_s9  ;;  %877 = vrot.lane.b32.xlu0 %v785_v10, %s2991_s9 }
  0x9b   : > { %v633_v61 = vpop.permute.xlu1 %632  ;;  %v637_v62 = vpop.permute.xlu0 %636 }
  0x9c   : > { %727 = vst.msk [vmem:[#allocation3 + $0x10] sm:$0xff] %vm724_vm2, %v633_v61  ;;  %729 = vst.msk [vmem:[#allocation3 + $0x20] sm:$0xff] %vm724_vm2, %v637_v62 }
  0x9d   : > { %875 = vrot.lane.b32.xlu1 %v784_v12, %s2991_s9  ;;  %881 = vrot.lane.b32.xlu0 %v787_v59, %s2991_s9 }
  0x9f   : > { %v635_v0 = vpop.permute.xlu1 %634  ;;  %v641_v3 = vpop.permute.xlu0 %640 }
  0xa0   : > { %728 = vst.msk [vmem:[#allocation3 + $0x18] sm:$0xff] %vm724_vm2, %v635_v0  ;;  %731 = vst.msk [vmem:[#allocation3 + $0x30] sm:$0xff] %vm724_vm2, %v641_v3 }
  0xa1   : > { %879 = vrot.lane.b32.xlu1 %v786_v63, %s2991_s9  ;;  %1014 = vrot.lane.b32.xlu0 %v3234_v48, %s2992_s10 }
  0xa3   : > { %v639_v5 = vpop.permute.xlu1 %638  ;;  %v645_v6 = vpop.permute.xlu0 %644 }
  0xa4   : > { %730 = vst.msk [vmem:[#allocation3 + $0x28] sm:$0xff] %vm724_vm2, %v639_v5  ;;  %733 = vst.msk [vmem:[#allocation3 + $0x40] sm:$0xff] %vm724_vm2, %v645_v6  ;;  %v2142_v5 = vld [vmem:[%s4252_s1 + $0x8] sm:$0xff] }
  0xa5   : > { %883 = vrot.lane.b32.xlu1 %v788_v4, %s2991_s9  ;;  %1018 = vrot.lane.b32.xlu0 %v3248_v52, %s2992_s10  ;;  %v2141_v4 = vld [vmem:[%s4252_s1] sm:$0xff] }
  0xa6   : > { %v2936_v6 = vpack.c.bf16 %v2142_v5, %v2141_v4 }
  0xa7   : > { %v643_v7 = vpop.permute.xlu1 %642  ;;  %v649_v1 = vpop.permute.xlu0 %648 }
  0xa8   : > { %732 = vst.msk [vmem:[#allocation3 + $0x38] sm:$0xff] %vm724_vm2, %v643_v7  ;;  %735 = vst.msk [vmem:[#allocation3 + $0x50] sm:$0xff] %vm724_vm2, %v649_v1  ;;  %2937 = vmatprep.subr.bf16.mxu0 %v2936_v6  ;;  %2952 = vmatprep.subr.bf16.mxu1 %v2936_v6  ;;  %v2143_v1 = vld [vmem:[%s4252_s1 + $0x10] sm:$0xff] }
  0xa9   : > { %1016 = vrot.lane.b32.xlu1 %v3250_v53, %s2992_s10  ;;  %1022 = vrot.lane.b32.xlu0 %v3252_v54, %s2992_s10 }
  0xaa   : > { %2939 = vmatpush3.bf16.msra.mxu0 %v2936_v6  ;;  %2957 = vmatpush3.bf16.msra.mxu1 %v2936_v6 }
  0xab   : > { %v647_v48 = vpop.permute.xlu1 %646  ;;  %v653_v10 = vpop.permute.xlu0 %652 }
  0xac   : > { %734 = vst.msk [vmem:[#allocation3 + $0x48] sm:$0xff] %vm724_vm2, %v647_v48  ;;  %737 = vst.msk [vmem:[#allocation3 + $0x60] sm:$0xff] %vm724_vm2, %v653_v10  ;;  %v2144_v48 = vld [vmem:[%s4252_s1 + $0x18] sm:$0xff] }
  0xad   : > { %1020 = vrot.lane.b32.xlu1 %v3289_v14, %s2992_s10  ;;  %1026 = vrot.lane.b32.xlu0 %v3291_v15, %s2992_s10 }
  0xaf   : > { %v651_v12 = vpop.permute.xlu1 %650  ;;  %v657_v59 = vpop.permute.xlu0 %656 }
  0xb0   : > { %736 = vst.msk [vmem:[#allocation3 + $0x58] sm:$0xff] %vm724_vm2, %v651_v12  ;;  %739 = vst.msk [vmem:[#allocation3 + $0x70] sm:$0xff] %vm724_vm2, %v657_v59  ;;  %v2145_v12 = vld [vmem:[%s4252_s1 + $0x20] sm:$0xff]  ;;  %v2146_v59 = vld [vmem:[%s4252_s1 + $0x28] sm:$0xff] }
  0xb1   : > { %1024 = vrot.lane.b32.xlu1 %v3310_v17, %s2992_s10  ;;  %1030 = vrot.lane.b32.xlu0 %v3312_v20, %s2992_s10 }
  0xb3   : > { %v655_v53 = vpop.permute.xlu1 %654  ;;  %v661_v61 = vpop.permute.xlu0 %660 }
  0xb4   : > { %738 = vst.msk [vmem:[#allocation3 + $0x68] sm:$0xff] %vm724_vm2, %v655_v53  ;;  %741 = vst.msk [vmem:[#allocation3 + $0x80] sm:$0xff] %vm724_vm2, %v661_v61  ;;  %v2147_v61 = vld [vmem:[%s4252_s1 + $0x30] sm:$0xff] }
  0xb5   : > { %1028 = vrot.lane.b32.xlu1 %v3325_v25, %s2992_s10  ;;  %1034 = vrot.lane.b32.xlu0 %v3329_v26, %s2992_s10 }
  0xb7   : > { %v659_v62 = vpop.permute.xlu1 %658  ;;  %v665_v63 = vpop.permute.xlu0 %664 }
  0xb8   : > { %740 = vst.msk [vmem:[#allocation3 + $0x78] sm:$0xff] %vm724_vm2, %v659_v62  ;;  %743 = vst.msk [vmem:[#allocation3 + $0x90] sm:$0xff] %vm724_vm2, %v665_v63  ;;  %v2148_v62 = vld [vmem:[%s4252_s1 + $0x38] sm:$0xff] }
  0xb9   : > { %1032 = vrot.lane.b32.xlu1 %v3331_v27, %s2992_s10  ;;  %1209 = vrot.lane.b32.xlu0 %v3218_v29, %s2993_s11 }
  0xbb   : > { %v663_v0 = vpop.permute.xlu1 %662  ;;  %v669_v3 = vpop.permute.xlu0 %668 }
  0xbc   : > { %742 = vst.msk [vmem:[#allocation3 + $0x88] sm:$0xff] %vm724_vm2, %v663_v0  ;;  %745 = vst.msk [vmem:[#allocation3 + $0xa0] sm:$0xff] %vm724_vm2, %v669_v3 }
  0xbd   : > { %1207 = vrot.lane.b32.xlu1 %v3198_v18, %s2993_s11  ;;  %1402 = vrot.lane.b32.xlu0 %v3424_v16, %s2994_s16  ;;  %v2940_v18 = vpack.c.bf16 %v2144_v48, %v2143_v1 }
  0xbf   : > { %v667_v29 = vpop.permute.xlu1 %666  ;;  %v673_v7 = vpop.permute.xlu0 %672  ;;  %2941 = vmatprep.subr.bf16.mxu0 %v2940_v18  ;;  %2953 = vmatprep.subr.bf16.mxu1 %v2940_v18 }
  0xc0   : > { %744 = vst.msk [vmem:[#allocation3 + $0x98] sm:$0xff] %vm724_vm2, %v667_v29  ;;  %747 = vst.msk [vmem:[#allocation3 + $0xb0] sm:$0xff] %vm724_vm2, %v673_v7  ;;  %2943 = vmatpush3.bf16.msra.mxu0 %v2940_v18  ;;  %2958 = vmatpush3.bf16.msra.mxu1 %v2940_v18 }
  0xc1   : > { %1400 = vrot.lane.b32.xlu1 %v3414_v11, %s2994_s16  ;;  %1596 = vrot.lane.b32.xlu0 %v3289_v14, %s2995_s23  ;;  %v2944_v11 = vpack.c.bf16 %v2146_v59, %v2145_v12 }
  0xc3   : > { %v671_v16 = vpop.permute.xlu1 %670  ;;  %v677_v10 = vpop.permute.xlu0 %676  ;;  %2945 = vmatprep.subr.bf16.mxu0 %v2944_v11  ;;  %2954 = vmatprep.subr.bf16.mxu1 %v2944_v11 }
  0xc4   : > { %746 = vst.msk [vmem:[#allocation3 + $0xa8] sm:$0xff] %vm724_vm2, %v671_v16  ;;  %749 = vst.msk [vmem:[#allocation3 + $0xc0] sm:$0xff] %vm724_vm2, %v677_v10  ;;  %2947 = vmatpush3.bf16.msra.mxu0 %v2944_v11  ;;  %2959 = vmatpush3.bf16.msra.mxu1 %v2944_v11 }
  0xc5   : > { %1594 = vrot.lane.b32.xlu1 %v3248_v52, %s2995_s23  ;;  %1211 = vrot.lane.b32.xlu0 %v3200_v19, %s2993_s11  ;;  %v2948_v52 = vpack.c.bf16 %v2148_v62, %v2147_v61 }
  0xc7   : > { %v675_v14 = vpop.permute.xlu1 %674  ;;  %v681_v53 = vpop.permute.xlu0 %680  ;;  %2949 = vmatprep.subr.bf16.mxu0 %v2948_v52  ;;  %2955 = vmatprep.subr.bf16.mxu1 %v2948_v52 }
  0xc8   : > { %748 = vst.msk [vmem:[#allocation3 + $0xb8] sm:$0xff] %vm724_vm2, %v675_v14  ;;  %751 = vst.msk [vmem:[#allocation3 + $0xd0] sm:$0xff] %vm724_vm2, %v681_v53  ;;  %2951 = vmatpush3.bf16.msra.mxu0 %v2948_v52  ;;  %2960 = vmatpush3.bf16.msra.mxu1 %v2948_v52 }
  0xc9   : > { %1787 = vrot.lane.b32.xlu1 %v3200_v19, %s2996_s12  ;;  %1980 = vrot.lane.b32.xlu0 %v3419_v13, %s2997_s13  ;;  %v2149_v19 = vld [vmem:[%s4252_s1 + $0x40] sm:$0xff] }
  0xca   : > { %2886 = vmatprep.subr.mxu0 %v2149_v19  ;;  %2956 = vmatprep.subr.mxu1 %v2149_v19 }
  0xcb   : > { %v679_v63 = vpop.permute.xlu1 %678  ;;  %v685_v0 = vpop.permute.xlu0 %684 }
  0xcc   : > { %750 = vst.msk [vmem:[#allocation3 + $0xc8] sm:$0xff] %vm724_vm2, %v679_v63  ;;  %753 = vst.msk [vmem:[#allocation3 + $0xe0] sm:$0xff] %vm724_vm2, %v685_v0  ;;  %2887 = vmatpush3.msra.mxu0 %v2149_v19  ;;  %2961 = vmatpush3.msra.mxu1 %v2149_v19 }
  0xcd   : > { %1789 = vrot.lane.b32.xlu1 %v3254_v55, %s2996_s12  ;;  %1404 = vrot.lane.b32.xlu0 %v3419_v13, %s2994_s16 }
  0xcf   : > { %v683_v3 = vpop.permute.xlu1 %682  ;;  %v689_v4 = vpop.permute.xlu0 %688 }
  0xd0   : > { %752 = vst.msk [vmem:[#allocation3 + $0xd8] sm:$0xff] %vm724_vm2, %v683_v3  ;;  %755 = vst.msk [vmem:[#allocation3 + $0xf0] sm:$0xff] %vm724_vm2, %v689_v4 }
  0xd1   : > { %1213 = vrot.lane.b32.xlu1 %v3254_v55, %s2993_s11  ;;  %1406 = vrot.lane.b32.xlu0 %v3432_v24, %s2994_s16 }
  0xd3   : > { %v687_v13 = vpop.permute.xlu1 %686  ;;  %v822_v5 = vpop.permute.xlu0 %821 }
  0xd4   : > { %754 = vst.msk [vmem:[#allocation3 + $0xe8] sm:$0xff] %vm724_vm2, %v687_v13 }
  0xd5   : > { %918 = vst.msk [vmem:[#allocation3] sm:$0xff] %vm917_vm3, %v822_v5  ;;  %1982 = vrot.lane.b32.xlu1 %v3432_v24, %s2997_s13  ;;  %1600 = vrot.lane.b32.xlu0 %v3310_v17, %s2995_s23 }
  0xd7   : > { %v691_v6 = vpop.permute.xlu1 %690  ;;  %v826_v29 = vpop.permute.xlu0 %825 }
  0xd8   : > { %756 = vst.msk [vmem:[#allocation3 + $0xf8] sm:$0xff] %vm724_vm2, %v691_v6  ;;  %v1734_v6 = vld [vmem:[#allocation2 + $0xb1] sm:$0xff] }
  0xd9   : > { %920 = vst.msk [vmem:[#allocation3 + $0x10] sm:$0xff] %vm917_vm3, %v826_v29  ;;  %1598 = vrot.lane.b32.xlu1 %v3252_v54, %s2995_s23  ;;  %1215 = vrot.lane.b32.xlu0 %v3220_v30, %s2993_s11 }
  0xdb   : > { %v824_v55 = vpop.permute.xlu1 %823  ;;  %v830_v7 = vpop.permute.xlu0 %829 }
  0xdc   : > { %919 = vst.msk [vmem:[#allocation3 + $0x8] sm:$0xff] %vm917_vm3, %v824_v55  ;;  %922 = vst.msk [vmem:[#allocation3 + $0x20] sm:$0xff] %vm917_vm3, %v830_v7 }
  0xdd   : > { %1791 = vrot.lane.b32.xlu1 %v3220_v30, %s2996_s12  ;;  %1984 = vrot.lane.b32.xlu0 %v3426_v22, %s2997_s13 }
  0xdf   : > { %v828_v17 = vpop.permute.xlu1 %827  ;;  %v834_v24 = vpop.permute.xlu0 %833 }
  0xe0   : > { %921 = vst.msk [vmem:[#allocation3 + $0x18] sm:$0xff] %vm917_vm3, %v828_v17  ;;  %924 = vst.msk [vmem:[#allocation3 + $0x30] sm:$0xff] %vm917_vm3, %v834_v24 }
  0xe1   : > { %1793 = vrot.lane.b32.xlu1 %v3283_v8, %s2996_s12  ;;  %1408 = vrot.lane.b32.xlu0 %v3426_v22, %s2994_s16 }
  0xe3   : > { %v832_v54 = vpop.permute.xlu1 %831  ;;  %v838_v1 = vpop.permute.xlu0 %837 }
  0xe4   : > { %923 = vst.msk [vmem:[#allocation3 + $0x28] sm:$0xff] %vm917_vm3, %v832_v54  ;;  %926 = vst.msk [vmem:[#allocation3 + $0x40] sm:$0xff] %vm917_vm3, %v838_v1 }
  0xe5   : > { %1217 = vrot.lane.b32.xlu1 %v3283_v8, %s2993_s11  ;;  %1410 = vrot.lane.b32.xlu0 %v3440_v32, %s2994_s16 }
  0xe7   : > { %v836_v30 = vpop.permute.xlu1 %835  ;;  %v842_v48 = vpop.permute.xlu0 %841 }
  0xe8   : > { %925 = vst.msk [vmem:[#allocation3 + $0x38] sm:$0xff] %vm917_vm3, %v836_v30  ;;  %928 = vst.msk [vmem:[#allocation3 + $0x50] sm:$0xff] %vm917_vm3, %v842_v48 }
  0xe9   : > { %1986 = vrot.lane.b32.xlu1 %v3440_v32, %s2997_s13  ;;  %1604 = vrot.lane.b32.xlu0 %v3325_v25, %s2995_s23 }
  0xeb   : > { %v840_v22 = vpop.permute.xlu1 %839  ;;  %v846_v18 = vpop.permute.xlu0 %845 }
  0xec   : > { %927 = vst.msk [vmem:[#allocation3 + $0x48] sm:$0xff] %vm917_vm3, %v840_v22  ;;  %930 = vst.msk [vmem:[#allocation3 + $0x60] sm:$0xff] %vm917_vm3, %v846_v18  ;;  %v1735_v22 = vld [vmem:[#allocation2 + $0xc1] sm:$0xff]  ;;  %v1736_v18 = vld [vmem:[#allocation2 + $0xc9] sm:$0xff] }
  0xed   : > { %1602 = vrot.lane.b32.xlu1 %v3291_v15, %s2995_s23  ;;  %1219 = vrot.lane.b32.xlu0 %v3256_v56, %s2993_s11 }
  0xef   : > { %v844_v8 = vpop.permute.xlu1 %843  ;;  %v850_v16 = vpop.permute.xlu0 %849 }
  0xf0   : > { %929 = vst.msk [vmem:[#allocation3 + $0x58] sm:$0xff] %vm917_vm3, %v844_v8  ;;  %932 = vst.msk [vmem:[#allocation3 + $0x70] sm:$0xff] %vm917_vm3, %v850_v16 }
  0xf1   : > { %1795 = vrot.lane.b32.xlu1 %v3256_v56, %s2996_s12  ;;  %1988 = vrot.lane.b32.xlu0 %v3434_v31, %s2997_s13 }
  0xf3   : > { %v848_v25 = vpop.permute.xlu1 %847  ;;  %v854_v32 = vpop.permute.xlu0 %853 }
  0xf4   : > { %931 = vst.msk [vmem:[#allocation3 + $0x68] sm:$0xff] %vm917_vm3, %v848_v25  ;;  %934 = vst.msk [vmem:[#allocation3 + $0x80] sm:$0xff] %vm917_vm3, %v854_v32 }
  0xf5   : > { %1797 = vrot.lane.b32.xlu1 %v3305_v2, %s2996_s12  ;;  %1412 = vrot.lane.b32.xlu0 %v3434_v31, %s2994_s16 }
  0xf7   : > { %v852_v15 = vpop.permute.xlu1 %851  ;;  %v858_v10 = vpop.permute.xlu0 %857 }
  0xf8   : > { %933 = vst.msk [vmem:[#allocation3 + $0x78] sm:$0xff] %vm917_vm3, %v852_v15  ;;  %936 = vst.msk [vmem:[#allocation3 + $0x90] sm:$0xff] %vm917_vm3, %v858_v10 }
  0xf9   : > { %1221 = vrot.lane.b32.xlu1 %v3305_v2, %s2993_s11  ;;  %1414 = vrot.lane.b32.xlu0 %v3448_v45, %s2994_s16 }
  0xfb   : > { %v856_v56 = vpop.permute.xlu1 %855  ;;  %v862_v12 = vpop.permute.xlu0 %861 }
  0xfc   : > { %935 = vst.msk [vmem:[#allocation3 + $0x88] sm:$0xff] %vm917_vm3, %v856_v56  ;;  %938 = vst.msk [vmem:[#allocation3 + $0xa0] sm:$0xff] %vm917_vm3, %v862_v12 }
  0xfd   : > { %1990 = vrot.lane.b32.xlu1 %v3448_v45, %s2997_s13  ;;  %1608 = vrot.lane.b32.xlu0 %v3331_v27, %s2995_s23 }
  0xff   : > { %v860_v31 = vpop.permute.xlu1 %859  ;;  %v866_v59 = vpop.permute.xlu0 %865 }
 0x100   : > { %937 = vst.msk [vmem:[#allocation3 + $0x98] sm:$0xff] %vm917_vm3, %v860_v31  ;;  %940 = vst.msk [vmem:[#allocation3 + $0xb0] sm:$0xff] %vm917_vm3, %v866_v59 }
 0x101   : > { %1606 = vrot.lane.b32.xlu1 %v3312_v20, %s2995_s23  ;;  %1223 = vrot.lane.b32.xlu0 %v3285_v9, %s2993_s11 }
 0x103   : > { %v864_v2 = vpop.permute.xlu1 %863  ;;  %v870_v11 = vpop.permute.xlu0 %869 }
 0x104   : > { %939 = vst.msk [vmem:[#allocation3 + $0xa8] sm:$0xff] %vm917_vm3, %v864_v2  ;;  %942 = vst.msk [vmem:[#allocation3 + $0xc0] sm:$0xff] %vm917_vm3, %v870_v11  ;;  %v1737_v2 = vld [vmem:[#allocation2 + $0xd9] sm:$0xff]  ;;  %v1738_v11 = vld [vmem:[#allocation2 + $0xe1] sm:$0xff] }
 0x105   : > { %1799 = vrot.lane.b32.xlu1 %v3285_v9, %s2996_s12  ;;  %1992 = vrot.lane.b32.xlu0 %v3442_v44, %s2997_s13 }
 0x107   : > { %v868_v27 = vpop.permute.xlu1 %867  ;;  %v874_v45 = vpop.permute.xlu0 %873 }
 0x108   : > { %941 = vst.msk [vmem:[#allocation3 + $0xb8] sm:$0xff] %vm917_vm3, %v868_v27  ;;  %944 = vst.msk [vmem:[#allocation3 + $0xd0] sm:$0xff] %vm917_vm3, %v874_v45 }
 0x109   : > { %1801 = vrot.lane.b32.xlu1 %v3314_v21, %s2996_s12  ;;  %1416 = vrot.lane.b32.xlu0 %v3442_v44, %s2994_s16 }
 0x10b   : > { %v872_v20 = vpop.permute.xlu1 %871  ;;  %v878_v14 = vpop.permute.xlu0 %877 }
 0x10c   : > { %943 = vst.msk [vmem:[#allocation3 + $0xc8] sm:$0xff] %vm917_vm3, %v872_v20  ;;  %946 = vst.msk [vmem:[#allocation3 + $0xe0] sm:$0xff] %vm917_vm3, %v878_v14 }
 0x10d   : > { %1225 = vrot.lane.b32.xlu1 %v3314_v21, %s2993_s11  ;;  %1418 = vrot.lane.b32.xlu0 %v3456_v49, %s2994_s16  ;;  %v1731_v21 = vld [vmem:[#allocation2 + $0x91] sm:$0xff] }
 0x10f   : > { %v876_v9 = vpop.permute.xlu1 %875  ;;  %v882_v53 = vpop.permute.xlu0 %881 }
 0x110   : > { %945 = vst.msk [vmem:[#allocation3 + $0xd8] sm:$0xff] %vm917_vm3, %v876_v9  ;;  %948 = vst.msk [vmem:[#allocation3 + $0xf0] sm:$0xff] %vm917_vm3, %v882_v53 }
 0x111   : > { %1994 = vrot.lane.b32.xlu1 %v3456_v49, %s2997_s13  ;;  %1612 = vrot.lane.b32.xlu0 %v3341_v33, %s2995_s23  ;;  %v1154_v49 = vld [vmem:[#allocation2 + $0x99] sm:$0xff] }
 0x113   : > { %v880_v44 = vpop.permute.xlu1 %879  ;;  %v1015_v61 = vpop.permute.xlu0 %1014 }
 0x114   : > { %947 = vst.msk [vmem:[#allocation3 + $0xe8] sm:$0xff] %vm917_vm3, %v880_v44 }
 0x115   : > { %1111 = vst.msk [vmem:[#allocation3] sm:$0xff] %vm1110_vm4, %v1015_v61  ;;  %1610 = vrot.lane.b32.xlu1 %v3329_v26, %s2995_s23  ;;  %1036 = vrot.lane.b32.xlu0 %v3341_v33, %s2992_s10 }
 0x117   : > { %v884_v62 = vpop.permute.xlu1 %883  ;;  %v1019_v52 = vpop.permute.xlu0 %1018 }
 0x118   : > { %949 = vst.msk [vmem:[#allocation3 + $0xf8] sm:$0xff] %vm917_vm3, %v884_v62 }
 0x119   : > { %1113 = vst.msk [vmem:[#allocation3 + $0x10] sm:$0xff] %vm1110_vm4, %v1019_v52  ;;  %1803 = vrot.lane.b32.xlu1 %v1731_v21, %s2996_s12  ;;  %1805 = vrot.lane.b32.xlu0 %v3323_v23, %s2996_s12 }
 0x11b   : > { %v1017_v63 = vpop.permute.xlu1 %1016  ;;  %v1023_v0 = vpop.permute.xlu0 %1022 }
 0x11c   : > { %1112 = vst.msk [vmem:[#allocation3 + $0x8] sm:$0xff] %vm1110_vm4, %v1017_v63  ;;  %1115 = vst.msk [vmem:[#allocation3 + $0x20] sm:$0xff] %vm1110_vm4, %v1023_v0  ;;  %v2979_v63 = vld [vmem:[%s4253_s2] ss:$0 sm:$0xff] }
 0x11d   : > { %1227 = vrot.lane.b32.xlu1 %v1731_v21, %s2993_s11  ;;  %1229 = vrot.lane.b32.xlu0 %v1154_v49, %s2993_s11  ;;  %v299_v49 = vld [vmem:[%s3118_s29 + $0xf0] sm:$0xff] }
 0x11e   : > { %v338_v0 = vmul.f32 %v2979_v63, %v299_v49  ;;  %v1552_v49 = vld [vmem:[#allocation2 + $0x138] sm:$0xff] }
 0x11f   : > { %v1021_v26 = vpop.permute.xlu1 %1020  ;;  %v1027_v33 = vpop.permute.xlu0 %1026 }
 0x120   : > { %1114 = vst.msk [vmem:[#allocation3 + $0x18] sm:$0xff] %vm1110_vm4, %v1021_v26  ;;  %1117 = vst.msk [vmem:[#allocation3 + $0x30] sm:$0xff] %vm1110_vm4, %v1027_v33  ;;  %v2980_v26 = vld [vmem:[%s4254_s3] ss:$0 sm:$0xff] }
 0x121   : > { %1996 = vrot.lane.b32.xlu1 %v3450_v46, %s2997_s13  ;;  %1998 = vrot.lane.b32.xlu0 %v3464_v51, %s2997_s13  ;;  %v377_v33 = vadd.f32 %v2980_v26, %v338_v0 }
 0x123   : > { %v1025_v23 = vpop.permute.xlu1 %1024  ;;  %v1031_v19 = vpop.permute.xlu0 %1030 }
 0x124   : > { %1116 = vst.msk [vmem:[#allocation3 + $0x28] sm:$0xff] %vm1110_vm4, %v1025_v23  ;;  %1119 = vst.msk [vmem:[#allocation3 + $0x40] sm:$0xff] %vm1110_vm4, %v1031_v19 }
 0x125   : > { %1420 = vrot.lane.b32.xlu1 %v3450_v46, %s2994_s16  ;;  %1614 = vrot.lane.b32.xlu0 %v3333_v28, %s2995_s23  ;;  %v1733_v46 = vld [vmem:[#allocation2 + $0xa9] sm:$0xff] }
 0x127   : > { %v1029_v3 = vpop.permute.xlu1 %1028  ;;  %v1035_v4 = vpop.permute.xlu0 %1034 }
 0x128   : > { %1118 = vst.msk [vmem:[#allocation3 + $0x38] sm:$0xff] %vm1110_vm4, %v1029_v3  ;;  %1121 = vst.msk [vmem:[#allocation3 + $0x50] sm:$0xff] %vm1110_vm4, %v1035_v4  ;;  %v300_v3 = vld [vmem:[%s3118_s29 + $0xf8] sm:$0xff]  ;;  %v409_v4 = vmax.f32 %v377_v33, 0.0 }
 0x129   : > { %1422 = vrot.lane.b32.xlu1 %v3464_v51, %s2994_s16  ;;  %1616 = vrot.lane.b32.xlu0 %v3345_v35, %s2995_s23 }
 0x12a   : > { %498 = vst.msk [vmem:[#allocation2 + $0x181] sm:$0xff] %vm411_vm0, %v409_v4 }
 0x12b   : > { %v1033_v13 = vpop.permute.xlu1 %1032  ;;  %v1210_v5 = vpop.permute.xlu0 %1209 }
 0x12c   : > { %1120 = vst.msk [vmem:[#allocation3 + $0x48] sm:$0xff] %vm1110_vm4, %v1033_v13  ;;  %v339_v13 = vmul.f32 %v2979_v63, %v300_v3 }
 0x12d   : > { %1305 = vst.msk [vmem:[#allocation3 + $0x8] sm:$0xff] %vm1303_vm5, %v1210_v5  ;;  %1038 = vrot.lane.b32.xlu1 %v3333_v28, %s2992_s10  ;;  %1040 = vrot.lane.b32.xlu0 %v3345_v35, %s2992_s10  ;;  %v1739_v5 = vld [vmem:[#allocation2 + $0xf1] sm:$0xff] }
 0x12f   : > { %v1208_v29 = vpop.permute.xlu1 %1207  ;;  %v1403_v51 = vpop.permute.xlu0 %1402 }
 0x130   : > { %1304 = vst.msk [vmem:[#allocation3] sm:$0xff] %vm1303_vm5, %v1208_v29 }
 0x131   : > { %1498 = vst.msk [vmem:[#allocation3 + $0x8] sm:$0xff] %vm1496_vm6, %v1403_v51  ;;  %1807 = vrot.lane.b32.xlu1 %v1733_v46, %s2996_s12  ;;  %1809 = vrot.lane.b32.xlu0 %v1734_v6, %s2996_s12 }
 0x133   : > { %v1401_v55 = vpop.permute.xlu1 %1400  ;;  %v1597_v7 = vpop.permute.xlu0 %1596 }
 0x134   : > { %1497 = vst.msk [vmem:[#allocation3] sm:$0xff] %vm1496_vm6, %v1401_v55 }
 0x135   : > { %1692 = vst.msk [vmem:[#allocation3 + $0x8] sm:$0xff] %vm1690_vm7, %v1597_v7  ;;  %1231 = vrot.lane.b32.xlu1 %v1733_v46, %s2993_s11  ;;  %1233 = vrot.lane.b32.xlu0 %v1734_v6, %s2993_s11  ;;  %v1740_v46 = vld [vmem:[#allocation2 + $0xf9] sm:$0xff]  ;;  %v378_v6 = vadd.f32 %v2980_v26, %v339_v13  ;;  %v1746_v13 = vld [vmem:[#allocation2 + $0x141] sm:$0xff] }
 0x136   : > { %v1553_v26 = vld [vmem:[#allocation2 + $0x140] sm:$0xff] }
 0x137   : > { %v1595_v28 = vpop.permute.xlu1 %1594  ;;  %v1212_v35 = vpop.permute.xlu0 %1211  ;;  %v410_v7 = vmax.f32 %v378_v6, 0.0  ;;  %v1938_v6 = vld [vmem:[#allocation2 + $0x13a] sm:$0xff] }
 0x138   : > { %1691 = vst.msk [vmem:[#allocation3] sm:$0xff] %vm1690_vm7, %v1595_v28  ;;  %v1932_v28 = vld [vmem:[#allocation2 + $0xf2] sm:$0xff] }
 0x139   : > { %1306 = vst.msk [vmem:[#allocation3 + $0x10] sm:$0xff] %vm1303_vm5, %v1212_v35  ;;  %2000 = vrot.lane.b32.xlu1 %v3458_v50, %s2997_s13  ;;  %2002 = vrot.lane.b32.xlu0 %v3472_v58, %s2997_s13  ;;  %v1933_v35 = vld [vmem:[#allocation2 + $0xfa] sm:$0xff] }
 0x13a   : > { %499 = vst.msk [vmem:[#allocation2 + $0x189] sm:$0xff] %vm411_vm0, %v410_v7 }
 0x13b   : > { %v1788_v17 = vpop.permute.xlu1 %1787  ;;  %v1981_v24 = vpop.permute.xlu0 %1980 }
 0x13c   : > { %1884 = vst.msk [vmem:[#allocation3] sm:$0xff] %vm1883_vm8, %v1788_v17 }
 0x13d   : > { %2077 = vst.msk [vmem:[#allocation3] sm:$0xff] %vm2076_vm9, %v1981_v24  ;;  %1424 = vrot.lane.b32.xlu1 %v3458_v50, %s2994_s16  ;;  %1618 = vrot.lane.b32.xlu0 %v3343_v34, %s2995_s23 }
 0x13f   : > { %v1790_v54 = vpop.permute.xlu1 %1789  ;;  %v1405_v1 = vpop.permute.xlu0 %1404 }
 0x140   : > { %1885 = vst.msk [vmem:[#allocation3 + $0x8] sm:$0xff] %vm1883_vm8, %v1790_v54 }
 0x141   : > { %1499 = vst.msk [vmem:[#allocation3 + $0x10] sm:$0xff] %vm1496_vm6, %v1405_v1  ;;  %1426 = vrot.lane.b32.xlu1 %v3472_v58, %s2994_s16  ;;  %1620 = vrot.lane.b32.xlu0 %v3358_v37, %s2995_s23 }
 0x143   : > { %v1214_v30 = vpop.permute.xlu1 %1213  ;;  %v1407_v48 = vpop.permute.xlu0 %1406 }
 0x144   : > { %1307 = vst.msk [vmem:[#allocation3 + $0x18] sm:$0xff] %vm1303_vm5, %v1214_v30  ;;  %v2109_v50 = vld [vmem:[#allocation3] sm:$0xff] }
 0x145   : > { %1500 = vst.msk [vmem:[#allocation3 + $0x18] sm:$0xff] %vm1496_vm6, %v1407_v48  ;;  %1042 = vrot.lane.b32.xlu1 %v3343_v34, %s2992_s10  ;;  %1044 = vrot.lane.b32.xlu0 %v3358_v37, %s2992_s10 }
 0x146   : > { %2888 = vmatprep.mubr.msk.f32.mxu0 %vm2150_vm10, %v2109_v50 }
 0x147   : > { %v1983_v58 = vpop.permute.xlu1 %1982  ;;  %v1601_v8 = vpop.permute.xlu0 %1600 }
 0x148   : > { %2078 = vst.msk [vmem:[#allocation3 + $0x8] sm:$0xff] %vm2076_vm9, %v1983_v58 }
 0x149   : > { %1694 = vst.msk [vmem:[#allocation3 + $0x18] sm:$0xff] %vm1690_vm7, %v1601_v8  ;;  %1811 = vrot.lane.b32.xlu1 %v1735_v22, %s2996_s12  ;;  %1813 = vrot.lane.b32.xlu0 %v1736_v18, %s2996_s12  ;;  %v1741_v8 = vld [vmem:[#allocation2 + $0x109] sm:$0xff] }
 0x14b   : > { %v1599_v16 = vpop.permute.xlu1 %1598  ;;  %v1216_v25 = vpop.permute.xlu0 %1215 }
 0x14c   : > { %1693 = vst.msk [vmem:[#allocation3 + $0x10] sm:$0xff] %vm1690_vm7, %v1599_v16  ;;  %v1742_v16 = vld [vmem:[#allocation2 + $0x111] sm:$0xff] }
 0x14d   : > { %1308 = vst.msk [vmem:[#allocation3 + $0x20] sm:$0xff] %vm1303_vm5, %v1216_v25  ;;  %1235 = vrot.lane.b32.xlu1 %v1735_v22, %s2993_s11  ;;  %1237 = vrot.lane.b32.xlu0 %v1736_v18, %s2993_s11 }
 0x14f   : > { %v1792_v34 = vpop.permute.xlu1 %1791  ;;  %v1985_v37 = vpop.permute.xlu0 %1984  ;;  %v2110_v32 = vld [vmem:[#allocation3 + $0x8] sm:$0xff] }
 0x150   : > { %1886 = vst.msk [vmem:[#allocation3 + $0x10] sm:$0xff] %vm1883_vm8, %v1792_v34  ;;  %2889 = vmatmul.mubr.msk.f32.vlgmr.msra.gmra.mrb[0].mxu0 %vm2150_vm10, %v2110_v32 }
 0x151   : > { %2079 = vst.msk [vmem:[#allocation3 + $0x10] sm:$0xff] %vm2076_vm9, %v1985_v37  ;;  %2004 = vrot.lane.b32.xlu1 %v3466_v57, %s2997_s13  ;;  %2006 = vrot.lane.b32.xlu0 %v3477_v60, %s2997_s13 }
 0x153   : > { %v1794_v15 = vpop.permute.xlu1 %1793  ;;  %v1409_v10 = vpop.permute.xlu0 %1408 }
 0x154   : > { %1887 = vst.msk [vmem:[#allocation3 + $0x18] sm:$0xff] %vm1883_vm8, %v1794_v15 }
 0x155   : > { %1501 = vst.msk [vmem:[#allocation3 + $0x20] sm:$0xff] %vm1496_vm6, %v1409_v10  ;;  %1428 = vrot.lane.b32.xlu1 %v3466_v57, %s2994_s16  ;;  %1622 = vrot.lane.b32.xlu0 %v3356_v36, %s2995_s23 }
 0x157   : > { %v1218_v56 = vpop.permute.xlu1 %1217  ;;  %v1411_v12 = vpop.permute.xlu0 %1410 }
 0x158   : > { %1309 = vst.msk [vmem:[#allocation3 + $0x28] sm:$0xff] %vm1303_vm5, %v1218_v56  ;;  %v2111_v31 = vld [vmem:[#allocation3 + $0x10] sm:$0xff] }
 0x159   : > { %1502 = vst.msk [vmem:[#allocation3 + $0x28] sm:$0xff] %vm1496_vm6, %v1411_v12  ;;  %1430 = vrot.lane.b32.xlu1 %v3477_v60, %s2994_s16  ;;  %1624 = vrot.lane.b32.xlu0 %v3368_v39, %s2995_s23 }
 0x15a   : > { %2891 = vmatprep.mubr.msk.f32.mxu0 %vm2150_vm10, %v2111_v31 }
 0x15b   : > { %v1987_v59 = vpop.permute.xlu1 %1986  ;;  %v1605_v57 = vpop.permute.xlu0 %1604 }
 0x15c   : > { %2080 = vst.msk [vmem:[#allocation3 + $0x18] sm:$0xff] %vm2076_vm9, %v1987_v59 }
 0x15d   : > { %1696 = vst.msk [vmem:[#allocation3 + $0x28] sm:$0xff] %vm1690_vm7, %v1605_v57  ;;  %1046 = vrot.lane.b32.xlu1 %v3356_v36, %s2992_s10  ;;  %1048 = vrot.lane.b32.xlu0 %v3368_v39, %s2992_s10  ;;  %v1930_v36 = vld [vmem:[#allocation2 + $0xda] sm:$0xff]  ;;  %v1931_v39 = vld [vmem:[#allocation2 + $0xe2] sm:$0xff] }
 0x15f   : > { %v1603_v60 = vpop.permute.xlu1 %1602  ;;  %v1220_v27 = vpop.permute.xlu0 %1219 }
 0x160   : > { %1695 = vst.msk [vmem:[#allocation3 + $0x20] sm:$0xff] %vm1690_vm7, %v1603_v60 }
 0x161   : > { %1310 = vst.msk [vmem:[#allocation3 + $0x30] sm:$0xff] %vm1303_vm5, %v1220_v27  ;;  %1815 = vrot.lane.b32.xlu1 %v1737_v2, %s2996_s12  ;;  %1817 = vrot.lane.b32.xlu0 %v1738_v11, %s2996_s12 }
 0x163   : > { %v1796_v45 = vpop.permute.xlu1 %1795  ;;  %v1989_v20 = vpop.permute.xlu0 %1988  ;;  %v2112_v14 = vld [vmem:[#allocation3 + $0x18] sm:$0xff] }
 0x164   : > { %1888 = vst.msk [vmem:[#allocation3 + $0x20] sm:$0xff] %vm1883_vm8, %v1796_v45  ;;  %2892 = vmatmul.mubr.msk.f32.gmra.mrb[2].mxu0 %vm2150_vm10, %v2112_v14  ;;  %v1744_v14 = vld [vmem:[#allocation2 + $0x129] sm:$0xff] }
 0x165   : > { %2081 = vst.msk [vmem:[#allocation3 + $0x20] sm:$0xff] %vm2076_vm9, %v1989_v20  ;;  %1239 = vrot.lane.b32.xlu1 %v1737_v2, %s2993_s11  ;;  %1241 = vrot.lane.b32.xlu0 %v1738_v11, %s2993_s11  ;;  %v972_v11 = vld [vmem:[#allocation2 + $0x120] sm:$0xff] }
 0x167   : > { %v1798_v9 = vpop.permute.xlu1 %1797  ;;  %v1413_v53 = vpop.permute.xlu0 %1412 }
 0x168   : > { %1889 = vst.msk [vmem:[#allocation3 + $0x28] sm:$0xff] %vm1883_vm8, %v1798_v9 }
 0x169   : > { %1503 = vst.msk [vmem:[#allocation3 + $0x30] sm:$0xff] %vm1496_vm6, %v1413_v53  ;;  %2008 = vrot.lane.b32.xlu1 %v1930_v36, %s2997_s13  ;;  %2010 = vrot.lane.b32.xlu0 %v1931_v39, %s2997_s13 }
 0x16b   : > { %v1222_v44 = vpop.permute.xlu1 %1221  ;;  %v1415_v61 = vpop.permute.xlu0 %1414 }
 0x16c   : > { %1311 = vst.msk [vmem:[#allocation3 + $0x38] sm:$0xff] %vm1303_vm5, %v1222_v44  ;;  %v2113_v21 = vld [vmem:[#allocation3 + $0x20] sm:$0xff] }
 0x16d   : > { %1504 = vst.msk [vmem:[#allocation3 + $0x38] sm:$0xff] %vm1496_vm6, %v1415_v61  ;;  %1432 = vrot.lane.b32.xlu1 %v1930_v36, %s2994_s16  ;;  %1626 = vrot.lane.b32.xlu0 %v3360_v38, %s2995_s23  ;;  %v1937_v44 = vld [vmem:[#allocation2 + $0x12a] sm:$0xff] }
 0x16e   : > { %2894 = vmatprep.mubr.msk.f32.mxu0 %vm2150_vm10, %v2113_v21 }
 0x16f   : > { %v1991_v62 = vpop.permute.xlu1 %1990  ;;  %v1609_v52 = vpop.permute.xlu0 %1608 }
 0x170   : > { %2082 = vst.msk [vmem:[#allocation3 + $0x28] sm:$0xff] %vm2076_vm9, %v1991_v62 }
 0x171   : > { %1698 = vst.msk [vmem:[#allocation3 + $0x38] sm:$0xff] %vm1690_vm7, %v1609_v52  ;;  %1434 = vrot.lane.b32.xlu1 %v1931_v39, %s2994_s16  ;;  %1628 = vrot.lane.b32.xlu0 %v3372_v41, %s2995_s23 }
 0x173   : > { %v1607_v23 = vpop.permute.xlu1 %1606  ;;  %v1224_v19 = vpop.permute.xlu0 %1223 }
 0x174   : > { %1697 = vst.msk [vmem:[#allocation3 + $0x30] sm:$0xff] %vm1690_vm7, %v1607_v23 }
 0x175   : > { %1312 = vst.msk [vmem:[#allocation3 + $0x40] sm:$0xff] %vm1303_vm5, %v1224_v19  ;;  %1050 = vrot.lane.b32.xlu1 %v3360_v38, %s2992_s10  ;;  %1052 = vrot.lane.b32.xlu0 %v3372_v41, %s2992_s10  ;;  %v1745_v19 = vld [vmem:[#allocation2 + $0x139] sm:$0xff] }
 0x177   : > { %v1800_v29 = vpop.permute.xlu1 %1799  ;;  %v1993_v51 = vpop.permute.xlu0 %1992  ;;  %v2114_v55 = vld [vmem:[#allocation3 + $0x28] sm:$0xff] }
 0x178   : > { %1890 = vst.msk [vmem:[#allocation3 + $0x30] sm:$0xff] %vm1883_vm8, %v1800_v29  ;;  %2895 = vmatmul.mubr.msk.f32.gmra.mrb[4].mxu0 %vm2150_vm10, %v2114_v55  ;;  %v1939_v55 = vld [vmem:[#allocation2 + $0x142] sm:$0xff] }
 0x179   : > { %2083 = vst.msk [vmem:[#allocation3 + $0x30] sm:$0xff] %vm2076_vm9, %v1993_v51  ;;  %1819 = vrot.lane.b32.xlu1 %v1739_v5, %s2996_s12  ;;  %1821 = vrot.lane.b32.xlu0 %v1740_v46, %s2996_s12 }
 0x17b   : > { %v1802_v38 = vpop.permute.xlu1 %1801  ;;  %v1417_v41 = vpop.permute.xlu0 %1416 }
 0x17c   : > { %1891 = vst.msk [vmem:[#allocation3 + $0x38] sm:$0xff] %vm1883_vm8, %v1802_v38 }
 0x17d   : > { %1505 = vst.msk [vmem:[#allocation3 + $0x40] sm:$0xff] %vm1496_vm6, %v1417_v41  ;;  %1243 = vrot.lane.b32.xlu1 %v1739_v5, %s2993_s11  ;;  %1245 = vrot.lane.b32.xlu0 %v1740_v46, %s2993_s11 }
 0x17f   : > { %v1226_v17 = vpop.permute.xlu1 %1225  ;;  %v1419_v24 = vpop.permute.xlu0 %1418 }
 0x180   : > { %1313 = vst.msk [vmem:[#allocation3 + $0x48] sm:$0xff] %vm1303_vm5, %v1226_v17  ;;  %v2115_v54 = vld [vmem:[#allocation3 + $0x30] sm:$0xff] }
 0x181   : > { %1506 = vst.msk [vmem:[#allocation3 + $0x48] sm:$0xff] %vm1496_vm6, %v1419_v24  ;;  %2012 = vrot.lane.b32.xlu1 %v1932_v28, %s2997_s13  ;;  %2014 = vrot.lane.b32.xlu0 %v1933_v35, %s2997_s13 }
 0x182   : > { %2897 = vmatprep.mubr.msk.f32.mxu0 %vm2150_vm10, %v2115_v54  ;;  %v1555_v54 = vld [vmem:[#allocation2 + $0x158] sm:$0xff] }
 0x183   : > { %v1995_v1 = vpop.permute.xlu1 %1994  ;;  %v1613_v30 = vpop.permute.xlu0 %1612 }
 0x184   : > { %2084 = vst.msk [vmem:[#allocation3 + $0x38] sm:$0xff] %vm2076_vm9, %v1995_v1 }
 0x185   : > { %1700 = vst.msk [vmem:[#allocation3 + $0x48] sm:$0xff] %vm1690_vm7, %v1613_v30  ;;  %1436 = vrot.lane.b32.xlu1 %v1932_v28, %s2994_s16  ;;  %1630 = vrot.lane.b32.xlu0 %v3370_v40, %s2995_s23 }
 0x187   : > { %v1611_v48 = vpop.permute.xlu1 %1610  ;;  %v1037_v50 = vpop.permute.xlu0 %1036 }
 0x188   : > { %1699 = vst.msk [vmem:[#allocation3 + $0x40] sm:$0xff] %vm1690_vm7, %v1611_v48  ;;  %v1747_v48 = vld [vmem:[#allocation2 + $0x151] sm:$0xff] }
 0x189   : > { %1122 = vst.msk [vmem:[#allocation3 + $0x58] sm:$0xff] %vm1110_vm4, %v1037_v50  ;;  %1438 = vrot.lane.b32.xlu1 %v1933_v35, %s2994_s16  ;;  %1632 = vrot.lane.b32.xlu0 %v3386_v43, %s2995_s23  ;;  %v1554_v35 = vld [vmem:[#allocation2 + $0x150] sm:$0xff] }
 0x18b   : > { %v1804_v22 = vpop.permute.xlu1 %1803  ;;  %v1806_v18 = vpop.permute.xlu0 %1805  ;;  %v2116_v58 = vld [vmem:[#allocation3 + $0x38] sm:$0xff] }
 0x18c   : > { %1892 = vst.msk [vmem:[#allocation3 + $0x40] sm:$0xff] %vm1883_vm8, %v1804_v22  ;;  %1893 = vst.msk [vmem:[#allocation3 + $0x48] sm:$0xff] %vm1883_vm8, %v1806_v18  ;;  %2898 = vmatmul.mubr.msk.f32.gmra.mrb[6].mxu0 %vm2150_vm10, %v2116_v58  ;;  %v1748_v18 = vld [vmem:[#allocation2 + $0x159] sm:$0xff] }
 0x18d   : > { %1054 = vrot.lane.b32.xlu1 %v3370_v40, %s2992_s10  ;;  %1056 = vrot.lane.b32.xlu0 %v3386_v43, %s2992_s10  ;;  %v1934_v40 = vld [vmem:[#allocation2 + $0x10a] sm:$0xff]  ;;  %v1935_v43 = vld [vmem:[#allocation2 + $0x112] sm:$0xff] }
 0x18f   : > { %v1228_v25 = vpop.permute.xlu1 %1227  ;;  %v1230_v34 = vpop.permute.xlu0 %1229 }
 0x190   : > { %1314 = vst.msk [vmem:[#allocation3 + $0x50] sm:$0xff] %vm1303_vm5, %v1228_v25  ;;  %1315 = vst.msk [vmem:[#allocation3 + $0x58] sm:$0xff] %vm1303_vm5, %v1230_v34 }
 0x191   : > { %1823 = vrot.lane.b32.xlu1 %v1741_v8, %s2996_s12  ;;  %1825 = vrot.lane.b32.xlu0 %v1742_v16, %s2996_s12 }
 0x193   : > { %v1997_v37 = vpop.permute.xlu1 %1996  ;;  %v1999_v32 = vpop.permute.xlu0 %1998 }
 0x194   : > { %2085 = vst.msk [vmem:[#allocation3 + $0x40] sm:$0xff] %vm2076_vm9, %v1997_v37  ;;  %2086 = vst.msk [vmem:[#allocation3 + $0x48] sm:$0xff] %vm2076_vm9, %v1999_v32  ;;  %v1941_v37 = vld [vmem:[#allocation2 + $0x15a] sm:$0xff] }
 0x195   : > { %1247 = vrot.lane.b32.xlu1 %v1741_v8, %s2993_s11  ;;  %1249 = vrot.lane.b32.xlu0 %v1742_v16, %s2993_s11  ;;  %v1940_v16 = vld [vmem:[#allocation2 + $0x152] sm:$0xff] }
 0x197   : > { %v1421_v15 = vpop.permute.xlu1 %1420  ;;  %v1615_v10 = vpop.permute.xlu0 %1614 }
 0x198   : > { %1507 = vst.msk [vmem:[#allocation3 + $0x50] sm:$0xff] %vm1496_vm6, %v1421_v15 }
 0x199   : > { %1701 = vst.msk [vmem:[#allocation3 + $0x50] sm:$0xff] %vm1690_vm7, %v1615_v10  ;;  %2016 = vrot.lane.b32.xlu1 %v1934_v40, %s2997_s13  ;;  %2018 = vrot.lane.b32.xlu0 %v1935_v43, %s2997_s13  ;;  %v1556_v10 = vld [vmem:[#allocation2 + $0x168] sm:$0xff] }
 0x19b   : > { %v1423_v56 = vpop.permute.xlu1 %1422  ;;  %v1617_v12 = vpop.permute.xlu0 %1616  ;;  %v2117_v31 = vld [vmem:[#allocation3 + $0x40] sm:$0xff]  ;;  %v2118_v59 = vld [vmem:[#allocation3 + $0x48] sm:$0xff] }
 0x19c   : > { %1508 = vst.msk [vmem:[#allocation3 + $0x58] sm:$0xff] %vm1496_vm6, %v1423_v56  ;;  %2900 = vmatprep.mubr.msk.f32.mxu0 %vm2150_vm10, %v2117_v31  ;;  %v1557_v31 = vld [vmem:[#allocation2 + $0x170] sm:$0xff] }
 0x19d   : > { %1702 = vst.msk [vmem:[#allocation3 + $0x58] sm:$0xff] %vm1690_vm7, %v1617_v12  ;;  %1440 = vrot.lane.b32.xlu1 %v1934_v40, %s2994_s16  ;;  %2901 = vmatmul.mubr.msk.f32.gmra.mrb[8].mxu0 %vm2150_vm10, %v2118_v59 }
 0x19e   : > { %1634 = vrot.lane.b32.xlu0 %v3380_v42, %s2995_s23  ;;  %v1743_v42 = vld [vmem:[#allocation2 + $0x121] sm:$0xff] }
 0x19f   : > { %v1039_v57 = vpop.permute.xlu1 %1038  ;;  %v1041_v2 = vpop.permute.xlu0 %1040 }
 0x1a0   : > { %1123 = vst.msk [vmem:[#allocation3 + $0x60] sm:$0xff] %vm1110_vm4, %v1039_v57  ;;  %1124 = vst.msk [vmem:[#allocation3 + $0x68] sm:$0xff] %vm1110_vm4, %v1041_v2  ;;  %v1749_v2 = vld [vmem:[#allocation2 + $0x169] sm:$0xff] }
 0x1a1   : > { %1442 = vrot.lane.b32.xlu1 %v1935_v43, %s2994_s16 }
 0x1a2   : > { %1636 = vrot.lane.b32.xlu0 %v3393_v47, %s2995_s23 }
 0x1a3   : > { %v1808_v60 = vpop.permute.xlu1 %1807  ;;  %v1810_v27 = vpop.permute.xlu0 %1809 }
 0x1a4   : > { %1894 = vst.msk [vmem:[#allocation3 + $0x50] sm:$0xff] %vm1883_vm8, %v1808_v60  ;;  %1895 = vst.msk [vmem:[#allocation3 + $0x58] sm:$0xff] %vm1883_vm8, %v1810_v27  ;;  %v1750_v27 = vld [vmem:[#allocation2 + $0x171] sm:$0xff] }
 0x1a5   : > { %1058 = vrot.lane.b32.xlu1 %v972_v11, %s2992_s10 }
 0x1a6   : > { %1060 = vrot.lane.b32.xlu0 %v3393_v47, %s2992_s10  ;;  %v1936_v47 = vld [vmem:[#allocation2 + $0x122] sm:$0xff] }
 0x1a7   : > { %v1232_v45 = vpop.permute.xlu1 %1231  ;;  %v1234_v20 = vpop.permute.xlu0 %1233 }
 0x1a8   : > { %1316 = vst.msk [vmem:[#allocation3 + $0x60] sm:$0xff] %vm1303_vm5, %v1232_v45  ;;  %1317 = vst.msk [vmem:[#allocation3 + $0x68] sm:$0xff] %vm1303_vm5, %v1234_v20  ;;  %v1942_v20 = vld [vmem:[#allocation2 + $0x16a] sm:$0xff] }
 0x1a9   : > { %1827 = vrot.lane.b32.xlu1 %v1743_v42, %s2996_s12 }
 0x1aa   : > { %1829 = vrot.lane.b32.xlu0 %v1744_v14, %s2996_s12 }
 0x1ab   : > { %v2001_v36 = vpop.permute.xlu1 %2000  ;;  %v2003_v39 = vpop.permute.xlu0 %2002 }
 0x1ac   : > { %2087 = vst.msk [vmem:[#allocation3 + $0x50] sm:$0xff] %vm2076_vm9, %v2001_v36  ;;  %2088 = vst.msk [vmem:[#allocation3 + $0x58] sm:$0xff] %vm2076_vm9, %v2003_v39  ;;  %v1943_v39 = vld [vmem:[#allocation2 + $0x172] sm:$0xff] }
 0x1ad   : > { %1251 = vrot.lane.b32.xlu1 %v1743_v42, %s2993_s11 }
 0x1ae   : > { %1253 = vrot.lane.b32.xlu0 %v1744_v14, %s2993_s11 }
 0x1af   : > { %v1425_v9 = vpop.permute.xlu1 %1424  ;;  %v1619_v53 = vpop.permute.xlu0 %1618 }
 0x1b0   : > { %1509 = vst.msk [vmem:[#allocation3 + $0x60] sm:$0xff] %vm1496_vm6, %v1425_v9 }
 0x1b1   : > { %1703 = vst.msk [vmem:[#allocation3 + $0x60] sm:$0xff] %vm1690_vm7, %v1619_v53  ;;  %2020 = vrot.lane.b32.xlu1 %v1936_v47, %s2997_s13 }
 0x1b2   : > { %2022 = vrot.lane.b32.xlu0 %v1937_v44, %s2997_s13 }
 0x1b3   : > { %v1427_v61 = vpop.permute.xlu1 %1426  ;;  %v1621_v21 = vpop.permute.xlu0 %1620  ;;  %v2119_v62 = vld [vmem:[#allocation3 + $0x50] sm:$0xff]  ;;  %v2120_v52 = vld [vmem:[#allocation3 + $0x58] sm:$0xff] }
 0x1b4   : > { %1510 = vst.msk [vmem:[#allocation3 + $0x68] sm:$0xff] %vm1496_vm6, %v1427_v61  ;;  %2903 = vmatprep.mubr.msk.f32.mxu0 %vm2150_vm10, %v2119_v62  ;;  %v1558_v61 = vld [vmem:[#allocation2 + $0x180] sm:$0xff] }
 0x1b5   : > { %1704 = vst.msk [vmem:[#allocation3 + $0x68] sm:$0xff] %vm1690_vm7, %v1621_v21  ;;  %1444 = vrot.lane.b32.xlu1 %v1936_v47, %s2994_s16  ;;  %2904 = vmatmul.mubr.msk.f32.gmra.mrb[10].mxu0 %vm2150_vm10, %v2120_v52  ;;  %v1559_v52 = vld [vmem:[#allocation2 + $0x188] sm:$0xff] }
 0x1b6   : > { %1638 = vrot.lane.b32.xlu0 %v1552_v49, %s2995_s23 }
 0x1b7   : > { %v1043_v63 = vpop.permute.xlu1 %1042  ;;  %v1045_v0 = vpop.permute.xlu0 %1044 }
 0x1b8   : > { %1125 = vst.msk [vmem:[#allocation3 + $0x70] sm:$0xff] %vm1110_vm4, %v1043_v63  ;;  %1126 = vst.msk [vmem:[#allocation3 + $0x78] sm:$0xff] %vm1110_vm4, %v1045_v0  ;;  %v1751_v0 = vld [vmem:[#allocation2 + $0x181] sm:$0xff] }
 0x1b9   : > { %1446 = vrot.lane.b32.xlu1 %v1937_v44, %s2994_s16 }
 0x1ba   : > { %1640 = vrot.lane.b32.xlu0 %v1553_v26, %s2995_s23 }
 0x1bb   : > { %v1812_v33 = vpop.permute.xlu1 %1811  ;;  %v1814_v23 = vpop.permute.xlu0 %1813 }
 0x1bc   : > { %1896 = vst.msk [vmem:[#allocation3 + $0x60] sm:$0xff] %vm1883_vm8, %v1812_v33  ;;  %1897 = vst.msk [vmem:[#allocation3 + $0x68] sm:$0xff] %vm1883_vm8, %v1814_v23  ;;  %v1752_v23 = vld [vmem:[#allocation2 + $0x189] sm:$0xff] }
 0x1bd   : > { %1062 = vrot.lane.b32.xlu1 %v1552_v49, %s2992_s10 }
 0x1be   : > { %1064 = vrot.lane.b32.xlu0 %v1553_v26, %s2992_s10 }
 0x1bf   : > { %v1236_v3 = vpop.permute.xlu1 %1235  ;;  %v1238_v4 = vpop.permute.xlu0 %1237 }
 0x1c0   : > { %1318 = vst.msk [vmem:[#allocation3 + $0x70] sm:$0xff] %vm1303_vm5, %v1236_v3  ;;  %1319 = vst.msk [vmem:[#allocation3 + $0x78] sm:$0xff] %vm1303_vm5, %v1238_v4  ;;  %v1944_v4 = vld [vmem:[#allocation2 + $0x182] sm:$0xff] }
 0x1c1   : > { %1831 = vrot.lane.b32.xlu1 %v1745_v19, %s2996_s12 }
 0x1c2   : > { %1833 = vrot.lane.b32.xlu0 %v1746_v13, %s2996_s12 }
 0x1c3   : > { %v2005_v5 = vpop.permute.xlu1 %2004  ;;  %v2007_v46 = vpop.permute.xlu0 %2006 }
 0x1c4   : > { %2089 = vst.msk [vmem:[#allocation3 + $0x60] sm:$0xff] %vm2076_vm9, %v2005_v5  ;;  %2090 = vst.msk [vmem:[#allocation3 + $0x68] sm:$0xff] %vm2076_vm9, %v2007_v46  ;;  %v1945_v5 = vld [vmem:[#allocation2 + $0x18a] sm:$0xff] }
 0x1c5   : > { %1255 = vrot.lane.b32.xlu1 %v1745_v19, %s2993_s11 }
 0x1c6   : > { %1257 = vrot.lane.b32.xlu0 %v1746_v13, %s2993_s11 }
 0x1c7   : > { %v1429_v29 = vpop.permute.xlu1 %1428  ;;  %v1623_v51 = vpop.permute.xlu0 %1622 }
 0x1c8   : > { %1511 = vst.msk [vmem:[#allocation3 + $0x70] sm:$0xff] %vm1496_vm6, %v1429_v29 }
 0x1c9   : > { %1705 = vst.msk [vmem:[#allocation3 + $0x70] sm:$0xff] %vm1690_vm7, %v1623_v51  ;;  %2024 = vrot.lane.b32.xlu1 %v1938_v6, %s2997_s13 }
 0x1ca   : > { %2026 = vrot.lane.b32.xlu0 %v1939_v55, %s2997_s13 }
 0x1cb   : > { %v1431_v7 = vpop.permute.xlu1 %1430  ;;  %v1625_v38 = vpop.permute.xlu0 %1624  ;;  %v2121_v41 = vld [vmem:[#allocation3 + $0x60] sm:$0xff]  ;;  %v2122_v28 = vld [vmem:[#allocation3 + $0x68] sm:$0xff] }
 0x1cc   : > { %1512 = vst.msk [vmem:[#allocation3 + $0x78] sm:$0xff] %vm1496_vm6, %v1431_v7  ;;  %2906 = vmatprep.mubr.msk.f32.mxu0 %vm2150_vm10, %v2121_v41  ;;  %v1753_v41 = vld [vmem:[#allocation2 + $0x199] sm:$0xff] }
 0x1cd   : > { %1706 = vst.msk [vmem:[#allocation3 + $0x78] sm:$0xff] %vm1690_vm7, %v1625_v38  ;;  %1448 = vrot.lane.b32.xlu1 %v1938_v6, %s2994_s16  ;;  %2907 = vmatmul.mubr.msk.f32.gmra.mrb[12].mxu0 %vm2150_vm10, %v2122_v28 }
 0x1ce   : > { %1642 = vrot.lane.b32.xlu0 %v1554_v35, %s2995_s23 }
 0x1cf   : > { %v1047_v17 = vpop.permute.xlu1 %1046  ;;  %v1049_v24 = vpop.permute.xlu0 %1048 }
 0x1d0   : > { %1127 = vst.msk [vmem:[#allocation3 + $0x80] sm:$0xff] %vm1110_vm4, %v1047_v17  ;;  %1128 = vst.msk [vmem:[#allocation3 + $0x88] sm:$0xff] %vm1110_vm4, %v1049_v24  ;;  %v1946_v24 = vld [vmem:[#allocation2 + $0x19a] sm:$0xff] }
 0x1d1   : > { %1450 = vrot.lane.b32.xlu1 %v1939_v55, %s2994_s16  ;;  %v1560_v55 = vld [vmem:[#allocation2 + $0x198] sm:$0xff] }
 0x1d2   : > { %1644 = vrot.lane.b32.xlu0 %v1555_v54, %s2995_s23 }
 0x1d3   : > { %v1816_v1 = vpop.permute.xlu1 %1815  ;;  %v1818_v30 = vpop.permute.xlu0 %1817 }
 0x1d4   : > { %1898 = vst.msk [vmem:[#allocation3 + $0x70] sm:$0xff] %vm1883_vm8, %v1816_v1  ;;  %1899 = vst.msk [vmem:[#allocation3 + $0x78] sm:$0xff] %vm1883_vm8, %v1818_v30  ;;  %v1754_v1 = vld [vmem:[#allocation2 + $0x1a1] sm:$0xff] }
 0x1d5   : > { %1066 = vrot.lane.b32.xlu1 %v1554_v35, %s2992_s10  ;;  %v1561_v35 = vld [vmem:[#allocation2 + $0x1a0] sm:$0xff] }
 0x1d6   : > { %1068 = vrot.lane.b32.xlu0 %v1555_v54, %s2992_s10 }
 0x1d7   : > { %v1240_v50 = vpop.permute.xlu1 %1239  ;;  %v1242_v22 = vpop.permute.xlu0 %1241 }
 0x1d8   : > { %1320 = vst.msk [vmem:[#allocation3 + $0x80] sm:$0xff] %vm1303_vm5, %v1240_v50  ;;  %1321 = vst.msk [vmem:[#allocation3 + $0x88] sm:$0xff] %vm1303_vm5, %v1242_v22  ;;  %v1947_v50 = vld [vmem:[#allocation2 + $0x1a2] sm:$0xff] }
 0x1d9   : > { %1835 = vrot.lane.b32.xlu1 %v1747_v48, %s2996_s12 }
 0x1da   : > { %1837 = vrot.lane.b32.xlu0 %v1748_v18, %s2996_s12 }
 0x1db   : > { %v2009_v58 = vpop.permute.xlu1 %2008  ;;  %v2011_v8 = vpop.permute.xlu0 %2010 }
 0x1dc   : > { %2091 = vst.msk [vmem:[#allocation3 + $0x70] sm:$0xff] %vm2076_vm9, %v2009_v58  ;;  %2092 = vst.msk [vmem:[#allocation3 + $0x78] sm:$0xff] %vm2076_vm9, %v2011_v8 }
 0x1dd   : > { %1259 = vrot.lane.b32.xlu1 %v1747_v48, %s2993_s11 }
 0x1de   : > { %1261 = vrot.lane.b32.xlu0 %v1748_v18, %s2993_s11 }
 0x1df   : > { %v1433_v25 = vpop.permute.xlu1 %1432  ;;  %v1627_v34 = vpop.permute.xlu0 %1626 }
 0x1e0   : > { %1513 = vst.msk [vmem:[#allocation3 + $0x80] sm:$0xff] %vm1496_vm6, %v1433_v25 }
 0x1e1   : > { %1707 = vst.msk [vmem:[#allocation3 + $0x80] sm:$0xff] %vm1690_vm7, %v1627_v34  ;;  %2028 = vrot.lane.b32.xlu1 %v1940_v16, %s2997_s13 }
 0x1e2   : > { %2030 = vrot.lane.b32.xlu0 %v1941_v37, %s2997_s13 }
 0x1e3   : > { %v1435_v32 = vpop.permute.xlu1 %1434  ;;  %v1629_v40 = vpop.permute.xlu0 %1628  ;;  %v2123_v43 = vld [vmem:[#allocation3 + $0x70] sm:$0xff]  ;;  %v2124_v15 = vld [vmem:[#allocation3 + $0x78] sm:$0xff] }
 0x1e4   : > { %1514 = vst.msk [vmem:[#allocation3 + $0x88] sm:$0xff] %vm1496_vm6, %v1435_v32  ;;  %2909 = vmatprep.mubr.msk.f32.mxu0 %vm2150_vm10, %v2123_v43 }
 0x1e5   : > { %1708 = vst.msk [vmem:[#allocation3 + $0x88] sm:$0xff] %vm1690_vm7, %v1629_v40  ;;  %1452 = vrot.lane.b32.xlu1 %v1940_v16, %s2994_s16  ;;  %2910 = vmatmul.mubr.msk.f32.gmra.mrb[14].mxu0 %vm2150_vm10, %v2124_v15 }
 0x1e6   : > { %1646 = vrot.lane.b32.xlu0 %v1556_v10, %s2995_s23 }
 0x1e7   : > { %v1051_v56 = vpop.permute.xlu1 %1050  ;;  %v1053_v12 = vpop.permute.xlu0 %1052 }
 0x1e8   : > { %1129 = vst.msk [vmem:[#allocation3 + $0x90] sm:$0xff] %vm1110_vm4, %v1051_v56  ;;  %1130 = vst.msk [vmem:[#allocation3 + $0x98] sm:$0xff] %vm1110_vm4, %v1053_v12 }
 0x1e9   : > { %1454 = vrot.lane.b32.xlu1 %v1941_v37, %s2994_s16 }
 0x1ea   : > { %1648 = vrot.lane.b32.xlu0 %v1557_v31, %s2995_s23 }
 0x1eb   : > { %v1820_v59 = vpop.permute.xlu1 %1819  ;;  %v1822_v57 = vpop.permute.xlu0 %1821 }
 0x1ec   : > { %1900 = vst.msk [vmem:[#allocation3 + $0x80] sm:$0xff] %vm1883_vm8, %v1820_v59  ;;  %1901 = vst.msk [vmem:[#allocation3 + $0x88] sm:$0xff] %vm1883_vm8, %v1822_v57 }
 0x1ed   : > { %1070 = vrot.lane.b32.xlu1 %v1556_v10, %s2992_s10 }
 0x1ee   : > { %1072 = vrot.lane.b32.xlu0 %v1557_v31, %s2992_s10 }
 0x1ef   : > { %v1244_v11 = vpop.permute.xlu1 %1243  ;;  %v1246_v60 = vpop.permute.xlu0 %1245 }
 0x1f0   : > { %1322 = vst.msk [vmem:[#allocation3 + $0x90] sm:$0xff] %vm1303_vm5, %v1244_v11  ;;  %1323 = vst.msk [vmem:[#allocation3 + $0x98] sm:$0xff] %vm1303_vm5, %v1246_v60 }
 0x1f1   : > { %1839 = vrot.lane.b32.xlu1 %v1749_v2, %s2996_s12 }
 0x1f2   : > { %1841 = vrot.lane.b32.xlu0 %v1750_v27, %s2996_s12 }
 0x1f3   : > { %v2013_v42 = vpop.permute.xlu1 %2012  ;;  %v2015_v45 = vpop.permute.xlu0 %2014 }
 0x1f4   : > { %2093 = vst.msk [vmem:[#allocation3 + $0x80] sm:$0xff] %vm2076_vm9, %v2013_v42  ;;  %2094 = vst.msk [vmem:[#allocation3 + $0x88] sm:$0xff] %vm2076_vm9, %v2015_v45 }
 0x1f5   : > { %1263 = vrot.lane.b32.xlu1 %v1749_v2, %s2993_s11 }
 0x1f6   : > { %1265 = vrot.lane.b32.xlu0 %v1750_v27, %s2993_s11 }
 0x1f7   : > { %v1437_v14 = vpop.permute.xlu1 %1436  ;;  %v1631_v36 = vpop.permute.xlu0 %1630 }
 0x1f8   : > { %1515 = vst.msk [vmem:[#allocation3 + $0x90] sm:$0xff] %vm1496_vm6, %v1437_v14 }
 0x1f9   : > { %1709 = vst.msk [vmem:[#allocation3 + $0x90] sm:$0xff] %vm1690_vm7, %v1631_v36  ;;  %2032 = vrot.lane.b32.xlu1 %v1942_v20, %s2997_s13 }
 0x1fa   : > { %2034 = vrot.lane.b32.xlu0 %v1943_v39, %s2997_s13 }
 0x1fb   : > { %v1439_v47 = vpop.permute.xlu1 %1438  ;;  %v1633_v9 = vpop.permute.xlu0 %1632  ;;  %v2125_v53 = vld [vmem:[#allocation3 + $0x80] sm:$0xff]  ;;  %v2126_v44 = vld [vmem:[#allocation3 + $0x88] sm:$0xff] }
 0x1fc   : > { %1516 = vst.msk [vmem:[#allocation3 + $0x98] sm:$0xff] %vm1496_vm6, %v1439_v47  ;;  %2912 = vmatprep.mubr.msk.f32.mxu1 %vm2150_vm10, %v2125_v53 }
 0x1fd   : > { %1710 = vst.msk [vmem:[#allocation3 + $0x98] sm:$0xff] %vm1690_vm7, %v1633_v9  ;;  %1456 = vrot.lane.b32.xlu1 %v1942_v20, %s2994_s16  ;;  %2913 = vmatmul.mubr.msk.f32.vlgmr.msra.gmra.mrb[0].mxu1 %vm2150_vm10, %v2126_v44 }
 0x1fe   : > { %1650 = vrot.lane.b32.xlu0 %v1558_v61, %s2995_s23 }
 0x1ff   : > { %v1055_v21 = vpop.permute.xlu1 %1054  ;;  %v1057_v62 = vpop.permute.xlu0 %1056 }
 0x200   : > { %1131 = vst.msk [vmem:[#allocation3 + $0xa0] sm:$0xff] %vm1110_vm4, %v1055_v21  ;;  %1132 = vst.msk [vmem:[#allocation3 + $0xa8] sm:$0xff] %vm1110_vm4, %v1057_v62 }
 0x201   : > { %1458 = vrot.lane.b32.xlu1 %v1943_v39, %s2994_s16 }
 0x202   : > { %1652 = vrot.lane.b32.xlu0 %v1559_v52, %s2995_s23 }
 0x203   : > { %v1824_v49 = vpop.permute.xlu1 %1823  ;;  %v1826_v63 = vpop.permute.xlu0 %1825 }
 0x204   : > { %1902 = vst.msk [vmem:[#allocation3 + $0x90] sm:$0xff] %vm1883_vm8, %v1824_v49  ;;  %1903 = vst.msk [vmem:[#allocation3 + $0x98] sm:$0xff] %vm1883_vm8, %v1826_v63 }
 0x205   : > { %1074 = vrot.lane.b32.xlu1 %v1558_v61, %s2992_s10 }
 0x206   : > { %1076 = vrot.lane.b32.xlu0 %v1559_v52, %s2992_s10 }
 0x207   : > { %v1248_v26 = vpop.permute.xlu1 %1247  ;;  %v1250_v33 = vpop.permute.xlu0 %1249 }
 0x208   : > { %1324 = vst.msk [vmem:[#allocation3 + $0xa0] sm:$0xff] %vm1303_vm5, %v1248_v26  ;;  %1325 = vst.msk [vmem:[#allocation3 + $0xa8] sm:$0xff] %vm1303_vm5, %v1250_v33 }
 0x209   : > { %1843 = vrot.lane.b32.xlu1 %v1751_v0, %s2996_s12 }
 0x20a   : > { %1845 = vrot.lane.b32.xlu0 %v1752_v23, %s2996_s12 }
 0x20b   : > { %v2017_v19 = vpop.permute.xlu1 %2016  ;;  %v2019_v3 = vpop.permute.xlu0 %2018 }
 0x20c   : > { %2095 = vst.msk [vmem:[#allocation3 + $0x90] sm:$0xff] %vm2076_vm9, %v2017_v19  ;;  %2096 = vst.msk [vmem:[#allocation3 + $0x98] sm:$0xff] %vm2076_vm9, %v2019_v3 }
 0x20d   : > { %1267 = vrot.lane.b32.xlu1 %v1751_v0, %s2993_s11 }
 0x20e   : > { %1269 = vrot.lane.b32.xlu0 %v1752_v23, %s2993_s11  ;;  %s4039_s11 = scalar_lea.vmem %s4255_s4, %s2827_s24 }
 0x20f   : > { %v1441_v13 = vpop.permute.xlu1 %1440 }
 0x210   : > { %1517 = vst.msk [vmem:[#allocation3 + $0xa0] sm:$0xff] %vm1496_vm6, %v1441_v13  ;;  %v1635_v46 = vpop.permute.xlu0 %1634 }
 0x211   : > { %1711 = vst.msk [vmem:[#allocation3 + $0xa0] sm:$0xff] %vm1690_vm7, %v1635_v46  ;;  %2036 = vrot.lane.b32.xlu1 %v1944_v4, %s2997_s13 }
 0x212   : > { %2038 = vrot.lane.b32.xlu0 %v1945_v5, %s2997_s13 }
 0x213   : > { %v1443_v6 = vpop.permute.xlu1 %1442  ;;  %v2127_v29 = vld [vmem:[#allocation3 + $0x90] sm:$0xff]  ;;  %v2128_v51 = vld [vmem:[#allocation3 + $0x98] sm:$0xff] }
 0x214   : > { %1518 = vst.msk [vmem:[#allocation3 + $0xa8] sm:$0xff] %vm1496_vm6, %v1443_v6  ;;  %v1637_v7 = vpop.permute.xlu0 %1636  ;;  %2915 = vmatprep.mubr.msk.f32.mxu1 %vm2150_vm10, %v2127_v29 }
 0x215   : > { %1712 = vst.msk [vmem:[#allocation3 + $0xa8] sm:$0xff] %vm1690_vm7, %v1637_v7  ;;  %1460 = vrot.lane.b32.xlu1 %v1944_v4, %s2994_s16  ;;  %2916 = vmatmul.mubr.msk.f32.gmra.mrb[2].mxu1 %vm2150_vm10, %v2128_v51 }
 0x216   : > { %1654 = vrot.lane.b32.xlu0 %v1560_v55, %s2995_s23 }
 0x217   : > { %v1059_v38 = vpop.permute.xlu1 %1058 }
 0x218   : > { %1133 = vst.msk [vmem:[#allocation3 + $0xb0] sm:$0xff] %vm1110_vm4, %v1059_v38  ;;  %v1061_v28 = vpop.permute.xlu0 %1060 }
 0x219   : > { %1134 = vst.msk [vmem:[#allocation3 + $0xb8] sm:$0xff] %vm1110_vm4, %v1061_v28  ;;  %1462 = vrot.lane.b32.xlu1 %v1945_v5, %s2994_s16 }
 0x21a   : > { %1847 = vrot.lane.b32.xlu0 %v1753_v41, %s2996_s12 }
 0x21b   : > { %v1828_v17 = vpop.permute.xlu1 %1827 }
 0x21c   : > { %1904 = vst.msk [vmem:[#allocation3 + $0xa0] sm:$0xff] %vm1883_vm8, %v1828_v17  ;;  %v1830_v54 = vpop.permute.xlu0 %1829 }
 0x21d   : > { %1905 = vst.msk [vmem:[#allocation3 + $0xa8] sm:$0xff] %vm1883_vm8, %v1830_v54  ;;  %1656 = vrot.lane.b32.xlu1 %v1561_v35, %s2995_s23  ;;  %s265_s23 = scalar_lea.vmem %s4256_s5, %s4260_s22 }
 0x21e   : > { %2040 = vrot.lane.b32.xlu0 %v1946_v24, %s2997_s13 }
 0x21f   : > { %v1252_v30 = vpop.permute.xlu1 %1251 }
 0x220   : > { %1326 = vst.msk [vmem:[#allocation3 + $0xb0] sm:$0xff] %vm1303_vm5, %v1252_v30  ;;  %v1254_v48 = vpop.permute.xlu0 %1253 }
 0x221   : > { %1327 = vst.msk [vmem:[#allocation3 + $0xb8] sm:$0xff] %vm1303_vm5, %v1254_v48  ;;  %1849 = vrot.lane.b32.xlu1 %v1754_v1, %s2996_s12 }
 0x223   : > { %v2890_v22 = vpop.f32.mrb[0].mxu0  ;;  %v2021_v18 = vpop.permute.xlu1 %2020 }
 0x224   : > { %2473 = vst.msk [vmem:[%s4039_s11 + $0x8] sm:$0xff] %vm411_vm0, %v2890_v22  ;;  %v2505_v58 = vsel %vm411_vm0, %v2890_v22, 0.0  ;;  %v2576_v8 = vmul.f32 %v2890_v22, %v2890_v22  ;;  %v2023_v16 = vpop.permute.xlu0 %2022  ;;  %v2313_v25 = vpop.f32.mrb[1].mxu0 }
 0x225   : > { %2097 = vst.msk [vmem:[#allocation3 + $0xa0] sm:$0xff] %vm2076_vm9, %v2021_v18  ;;  %2098 = vst.msk [vmem:[#allocation3 + $0xa8] sm:$0xff] %vm2076_vm9, %v2023_v16  ;;  %v2504_v34 = vsel %vm411_vm0, %v2313_v25, 0.0  ;;  %v2575_v37 = vmul.f32 %v2313_v25, %v2313_v25  ;;  %2042 = vrot.lane.b32.xlu1 %v1947_v50, %s2997_s13 }
 0x226   : > { %2472 = vst.msk [vmem:[%s4039_s11] sm:$0xff] %vm411_vm0, %v2313_v25  ;;  %v2608_v32 = vsel %vm411_vm0, %v2576_v8, 0.0  ;;  %v2506_v40 = vadd.f32 %v2505_v58, %v2504_v34 }
 0x227   : > { %v2607_v43 = vsel %vm411_vm0, %v2575_v37, 0.0  ;;  %v1445_v15 = vpop.permute.xlu1 %1444 }
 0x228   : > { %v2609_v10 = vadd.f32 %v2608_v32, %v2607_v43  ;;  %1519 = vst.msk [vmem:[#allocation3 + $0xb0] sm:$0xff] %vm1496_vm6, %v1445_v15  ;;  %v1639_v56 = vpop.permute.xlu0 %1638 }
 0x229   : > { %1713 = vst.msk [vmem:[#allocation3 + $0xb0] sm:$0xff] %vm1690_vm7, %v1639_v56 }
 0x22b   : > { %v1447_v12 = vpop.permute.xlu1 %1446 }
 0x22c   : > { %v2129_v31 = vld [vmem:[#allocation3 + $0xa0] sm:$0xff]  ;;  %1520 = vst.msk [vmem:[#allocation3 + $0xb8] sm:$0xff] %vm1496_vm6, %v1447_v12  ;;  %v1641_v59 = vpop.permute.xlu0 %1640  ;;  %v2130_v57 = vld [vmem:[#allocation3 + $0xa8] sm:$0xff] }
 0x22d   : > { %2918 = vmatprep.mubr.msk.f32.mxu1 %vm2150_vm10, %v2129_v31  ;;  %1714 = vst.msk [vmem:[#allocation3 + $0xb8] sm:$0xff] %vm1690_vm7, %v1641_v59 }
 0x22e   : > { %2919 = vmatmul.mubr.msk.f32.gmra.mrb[4].mxu1 %vm2150_vm10, %v2130_v57 }
 0x22f   : > { %v1063_v2 = vpop.permute.xlu1 %1062 }
 0x230   : > { %1135 = vst.msk [vmem:[#allocation3 + $0xc0] sm:$0xff] %vm1110_vm4, %v1063_v2  ;;  %v1065_v11 = vpop.permute.xlu0 %1064 }
 0x231   : > { %1136 = vst.msk [vmem:[#allocation3 + $0xc8] sm:$0xff] %vm1110_vm4, %v1065_v11 }
 0x233   : > { %v1832_v60 = vpop.permute.xlu1 %1831 }
 0x234   : > { %1906 = vst.msk [vmem:[#allocation3 + $0xb0] sm:$0xff] %vm1883_vm8, %v1832_v60  ;;  %v1834_v27 = vpop.permute.xlu0 %1833 }
 0x235   : > { %1907 = vst.msk [vmem:[#allocation3 + $0xb8] sm:$0xff] %vm1883_vm8, %v1834_v27 }
 0x237   : > { %v1256_v42 = vpop.permute.xlu1 %1255  ;;  %v2893_v45 = vpop.f32.mrb[2].mxu0 }
 0x238   : > { %1328 = vst.msk [vmem:[#allocation3 + $0xc0] sm:$0xff] %vm1303_vm5, %v1256_v42  ;;  %v1258_v20 = vpop.permute.xlu0 %1257  ;;  %v2323_v14 = vpop.f32.mrb[3].mxu0  ;;  %v2578_v36 = vmul.f32 %v2893_v45, %v2893_v45  ;;  %v2509_v53 = vsel %vm411_vm0, %v2893_v45, 0.0 }
 0x239   : > { %2475 = vst.msk [vmem:[%s4039_s11 + $0x18] sm:$0xff] %vm411_vm0, %v2893_v45  ;;  %2474 = vst.msk [vmem:[%s4039_s11 + $0x10] sm:$0xff] %vm411_vm0, %v2323_v14  ;;  %v2507_v39 = vsel %vm411_vm0, %v2323_v14, 0.0  ;;  %v2577_v47 = vmul.f32 %v2323_v14, %v2323_v14 }
 0x23a   : > { %1329 = vst.msk [vmem:[#allocation3 + $0xc8] sm:$0xff] %vm1303_vm5, %v1258_v20  ;;  %v2508_v9 = vadd.f32 %v2507_v39, %v2506_v40  ;;  %v2612_v49 = vsel %vm411_vm0, %v2578_v36, 0.0 }
 0x23b   : > { %v2610_v44 = vsel %vm411_vm0, %v2577_v47, 0.0  ;;  %v2025_v61 = vpop.permute.xlu1 %2024 }
 0x23c   : > { %v2611_v21 = vadd.f32 %v2610_v44, %v2609_v10  ;;  %2099 = vst.msk [vmem:[#allocation3 + $0xb0] sm:$0xff] %vm2076_vm9, %v2025_v61  ;;  %v2027_v62 = vpop.permute.xlu0 %2026  ;;  %v2510_v52 = vadd.f32 %v2509_v53, %v2508_v9 }
 0x23d   : > { %2100 = vst.msk [vmem:[#allocation3 + $0xb8] sm:$0xff] %vm2076_vm9, %v2027_v62 }
 0x23e   : > { %v2613_v63 = vadd.f32 %v2612_v49, %v2611_v21 }
 0x23f   : > { %v1449_v0 = vpop.permute.xlu1 %1448 }
 0x240   : > { %1521 = vst.msk [vmem:[#allocation3 + $0xc0] sm:$0xff] %vm1496_vm6, %v1449_v0  ;;  %v1643_v26 = vpop.permute.xlu0 %1642 }
 0x241   : > { %1715 = vst.msk [vmem:[#allocation3 + $0xc0] sm:$0xff] %vm1690_vm7, %v1643_v26 }
 0x243   : > { %v1451_v33 = vpop.permute.xlu1 %1450  ;;  %v2131_v23 = vld [vmem:[#allocation3 + $0xb0] sm:$0xff] }
 0x244   : > { %1522 = vst.msk [vmem:[#allocation3 + $0xc8] sm:$0xff] %vm1496_vm6, %v1451_v33  ;;  %v1645_v19 = vpop.permute.xlu0 %1644  ;;  %2921 = vmatprep.mubr.msk.f32.mxu1 %vm2150_vm10, %v2131_v23  ;;  %v2132_v3 = vld [vmem:[#allocation3 + $0xb8] sm:$0xff] }
 0x245   : > { %1716 = vst.msk [vmem:[#allocation3 + $0xc8] sm:$0xff] %vm1690_vm7, %v1645_v19  ;;  %2922 = vmatmul.mubr.msk.f32.gmra.mrb[6].mxu1 %vm2150_vm10, %v2132_v3 }
 0x247   : > { %v1067_v4 = vpop.permute.xlu1 %1066 }
 0x248   : > { %1137 = vst.msk [vmem:[#allocation3 + $0xd0] sm:$0xff] %vm1110_vm4, %v1067_v4  ;;  %v1069_v13 = vpop.permute.xlu0 %1068 }
 0x249   : > { %1138 = vst.msk [vmem:[#allocation3 + $0xd8] sm:$0xff] %vm1110_vm4, %v1069_v13 }
 0x24b   : > { %v1836_v5 = vpop.permute.xlu1 %1835  ;;  %v2896_v46 = vpop.f32.mrb[4].mxu0 }
 0x24c   : > { %1908 = vst.msk [vmem:[#allocation3 + $0xc0] sm:$0xff] %vm1883_vm8, %v1836_v5  ;;  %v1838_v6 = vpop.permute.xlu0 %1837  ;;  %v2333_v29 = vpop.f32.mrb[5].mxu0  ;;  %v2580_v51 = vmul.f32 %v2896_v46, %v2896_v46  ;;  %v2513_v41 = vsel %vm411_vm0, %v2896_v46, 0.0 }
 0x24d   : > { %2477 = vst.msk [vmem:[%s4039_s11 + $0x28] sm:$0xff] %vm411_vm0, %v2896_v46  ;;  %2476 = vst.msk [vmem:[%s4039_s11 + $0x20] sm:$0xff] %vm411_vm0, %v2333_v29  ;;  %v2511_v55 = vsel %vm411_vm0, %v2333_v29, 0.0  ;;  %v2579_v7 = vmul.f32 %v2333_v29, %v2333_v29 }
 0x24e   : > { %1909 = vst.msk [vmem:[#allocation3 + $0xc8] sm:$0xff] %vm1883_vm8, %v1838_v6  ;;  %v2512_v38 = vadd.f32 %v2511_v55, %v2510_v52  ;;  %v2616_v1 = vsel %vm411_vm0, %v2580_v51, 0.0 }
 0x24f   : > { %v2614_v28 = vsel %vm411_vm0, %v2579_v7, 0.0  ;;  %v1260_v35 = vpop.permute.xlu1 %1259 }
 0x250   : > { %v2615_v17 = vadd.f32 %v2614_v28, %v2613_v63  ;;  %1330 = vst.msk [vmem:[#allocation3 + $0xd0] sm:$0xff] %vm1303_vm5, %v1260_v35  ;;  %v1262_v24 = vpop.permute.xlu0 %1261  ;;  %v2514_v54 = vadd.f32 %v2513_v41, %v2512_v38 }
 0x251   : > { %1331 = vst.msk [vmem:[#allocation3 + $0xd8] sm:$0xff] %vm1303_vm5, %v1262_v24 }
 0x252   : > { %v2617_v30 = vadd.f32 %v2616_v1, %v2615_v17 }
 0x253   : > { %v2029_v48 = vpop.permute.xlu1 %2028 }
 0x254   : > { %2101 = vst.msk [vmem:[#allocation3 + $0xc0] sm:$0xff] %vm2076_vm9, %v2029_v48  ;;  %v2031_v50 = vpop.permute.xlu0 %2030 }
 0x255   : > { %2102 = vst.msk [vmem:[#allocation3 + $0xc8] sm:$0xff] %vm2076_vm9, %v2031_v50 }
 0x257   : > { %v1453_v22 = vpop.permute.xlu1 %1452 }
 0x258   : > { %1523 = vst.msk [vmem:[#allocation3 + $0xd0] sm:$0xff] %vm1496_vm6, %v1453_v22  ;;  %v1647_v18 = vpop.permute.xlu0 %1646 }
 0x259   : > { %1717 = vst.msk [vmem:[#allocation3 + $0xd0] sm:$0xff] %vm1690_vm7, %v1647_v18 }
 0x25b   : > { %v1455_v58 = vpop.permute.xlu1 %1454  ;;  %v2133_v8 = vld [vmem:[#allocation3 + $0xc0] sm:$0xff] }
 0x25c   : > { %1524 = vst.msk [vmem:[#allocation3 + $0xd8] sm:$0xff] %vm1496_vm6, %v1455_v58  ;;  %v1649_v16 = vpop.permute.xlu0 %1648  ;;  %2924 = vmatprep.mubr.msk.f32.mxu1 %vm2150_vm10, %v2133_v8  ;;  %v2134_v25 = vld [vmem:[#allocation3 + $0xc8] sm:$0xff] }
 0x25d   : > { %1718 = vst.msk [vmem:[#allocation3 + $0xd8] sm:$0xff] %vm1690_vm7, %v1649_v16  ;;  %2925 = vmatmul.mubr.msk.f32.gmra.mrb[8].mxu1 %vm2150_vm10, %v2134_v25 }
 0x25f   : > { %v1071_v34 = vpop.permute.xlu1 %1070  ;;  %v2899_v37 = vpop.f32.mrb[6].mxu0 }
 0x260   : > { %1139 = vst.msk [vmem:[#allocation3 + $0xe0] sm:$0xff] %vm1110_vm4, %v1071_v34  ;;  %v1073_v32 = vpop.permute.xlu0 %1072  ;;  %v2343_v40 = vpop.f32.mrb[7].mxu0  ;;  %v2582_v43 = vmul.f32 %v2899_v37, %v2899_v37  ;;  %v2517_v12 = vsel %vm411_vm0, %v2899_v37, 0.0 }
 0x261   : > { %2479 = vst.msk [vmem:[%s4039_s11 + $0x38] sm:$0xff] %vm411_vm0, %v2899_v37  ;;  %2478 = vst.msk [vmem:[%s4039_s11 + $0x30] sm:$0xff] %vm411_vm0, %v2343_v40  ;;  %v2515_v15 = vsel %vm411_vm0, %v2343_v40, 0.0  ;;  %v2581_v10 = vmul.f32 %v2343_v40, %v2343_v40 }
 0x262   : > { %1140 = vst.msk [vmem:[#allocation3 + $0xe8] sm:$0xff] %vm1110_vm4, %v1073_v32  ;;  %v2516_v56 = vadd.f32 %v2515_v15, %v2514_v54  ;;  %v2620_v60 = vsel %vm411_vm0, %v2582_v43, 0.0 }
 0x263   : > { %v2618_v31 = vsel %vm411_vm0, %v2581_v10, 0.0  ;;  %v1840_v59 = vpop.permute.xlu1 %1839 }
 0x264   : > { %v2619_v57 = vadd.f32 %v2618_v31, %v2617_v30  ;;  %1910 = vst.msk [vmem:[#allocation3 + $0xd0] sm:$0xff] %vm1883_vm8, %v1840_v59  ;;  %v1842_v2 = vpop.permute.xlu0 %1841  ;;  %v2518_v11 = vadd.f32 %v2517_v12, %v2516_v56 }
 0x265   : > { %1911 = vst.msk [vmem:[#allocation3 + $0xd8] sm:$0xff] %vm1883_vm8, %v1842_v2 }
 0x266   : > { %v2621_v27 = vadd.f32 %v2620_v60, %v2619_v57 }
 0x267   : > { %v1264_v42 = vpop.permute.xlu1 %1263 }
 0x268   : > { %1332 = vst.msk [vmem:[#allocation3 + $0xe0] sm:$0xff] %vm1303_vm5, %v1264_v42  ;;  %v1266_v45 = vpop.permute.xlu0 %1265 }
 0x269   : > { %1333 = vst.msk [vmem:[#allocation3 + $0xe8] sm:$0xff] %vm1303_vm5, %v1266_v45 }
 0x26b   : > { %v2033_v20 = vpop.permute.xlu1 %2032 }
 0x26c   : > { %2103 = vst.msk [vmem:[#allocation3 + $0xd0] sm:$0xff] %vm2076_vm9, %v2033_v20  ;;  %v2035_v14 = vpop.permute.xlu0 %2034 }
 0x26d   : > { %2104 = vst.msk [vmem:[#allocation3 + $0xd8] sm:$0xff] %vm2076_vm9, %v2035_v14 }
 0x26f   : > { %v1457_v36 = vpop.permute.xlu1 %1456 }
 0x270   : > { %1525 = vst.msk [vmem:[#allocation3 + $0xe0] sm:$0xff] %vm1496_vm6, %v1457_v36  ;;  %v1651_v39 = vpop.permute.xlu0 %1650  ;;  %v2902_v47 = vpop.f32.mrb[8].mxu0 }
 0x271   : > { %1719 = vst.msk [vmem:[#allocation3 + $0xe0] sm:$0xff] %vm1690_vm7, %v1651_v39  ;;  %v2584_v9 = vmul.f32 %v2902_v47, %v2902_v47  ;;  %v2353_v53 = vpop.f32.mrb[9].mxu0  ;;  %v2521_v44 = vsel %vm411_vm0, %v2902_v47, 0.0 }
 0x272   : > { %2481 = vst.msk [vmem:[%s4039_s11 + $0x48] sm:$0xff] %vm411_vm0, %v2902_v47  ;;  %2480 = vst.msk [vmem:[%s4039_s11 + $0x40] sm:$0xff] %vm411_vm0, %v2353_v53  ;;  %v2519_v61 = vsel %vm411_vm0, %v2353_v53, 0.0  ;;  %v2583_v21 = vmul.f32 %v2353_v53, %v2353_v53 }
 0x273   : > { %v2520_v62 = vadd.f32 %v2519_v61, %v2518_v11  ;;  %v1459_v52 = vpop.permute.xlu1 %1458  ;;  %v2135_v49 = vld [vmem:[#allocation3 + $0xd0] sm:$0xff]  ;;  %v2624_v63 = vsel %vm411_vm0, %v2584_v9, 0.0 }
 0x274   : > { %v2622_v0 = vsel %vm411_vm0, %v2583_v21, 0.0  ;;  %1526 = vst.msk [vmem:[#allocation3 + $0xe8] sm:$0xff] %vm1496_vm6, %v1459_v52  ;;  %v1653_v26 = vpop.permute.xlu0 %1652  ;;  %2927 = vmatprep.mubr.msk.f32.mxu1 %vm2150_vm10, %v2135_v49  ;;  %v2136_v33 = vld [vmem:[#allocation3 + $0xd8] sm:$0xff] }
 0x275   : > { %v2623_v23 = vadd.f32 %v2622_v0, %v2621_v27  ;;  %1720 = vst.msk [vmem:[#allocation3 + $0xe8] sm:$0xff] %vm1690_vm7, %v1653_v26  ;;  %2928 = vmatmul.mubr.msk.f32.gmra.mrb[10].mxu1 %vm2150_vm10, %v2136_v33  ;;  %v2522_v19 = vadd.f32 %v2521_v44, %v2520_v62 }
 0x277   : > { %v1075_v3 = vpop.permute.xlu1 %1074  ;;  %v2625_v4 = vadd.f32 %v2624_v63, %v2623_v23 }
 0x278   : > { %1141 = vst.msk [vmem:[#allocation3 + $0xf0] sm:$0xff] %vm1110_vm4, %v1075_v3  ;;  %v1077_v13 = vpop.permute.xlu0 %1076 }
 0x279   : > { %1142 = vst.msk [vmem:[#allocation3 + $0xf8] sm:$0xff] %vm1110_vm4, %v1077_v13 }
 0x27b   : > { %v1844_v5 = vpop.permute.xlu1 %1843 }
 0x27c   : > { %1912 = vst.msk [vmem:[#allocation3 + $0xe0] sm:$0xff] %vm1883_vm8, %v1844_v5  ;;  %v1846_v46 = vpop.permute.xlu0 %1845 }
 0x27d   : > { %1913 = vst.msk [vmem:[#allocation3 + $0xe8] sm:$0xff] %vm1883_vm8, %v1846_v46 }
 0x27f   : > { %v1268_v6 = vpop.permute.xlu1 %1267 }
 0x280   : > { %1334 = vst.msk [vmem:[#allocation3 + $0xf0] sm:$0xff] %vm1303_vm5, %v1268_v6  ;;  %v1270_v29 = vpop.permute.xlu0 %1269 }
 0x281   : > { %1335 = vst.msk [vmem:[#allocation3 + $0xf8] sm:$0xff] %vm1303_vm5, %v1270_v29 }
 0x283   : > { %v2037_v51 = vpop.permute.xlu1 %2036 }
 0x284   : > { %2105 = vst.msk [vmem:[#allocation3 + $0xe0] sm:$0xff] %vm2076_vm9, %v2037_v51  ;;  %v2039_v55 = vpop.permute.xlu0 %2038 }
 0x285   : > { %2106 = vst.msk [vmem:[#allocation3 + $0xe8] sm:$0xff] %vm2076_vm9, %v2039_v55 }
 0x287   : > { %v1461_v7 = vpop.permute.xlu1 %1460 }
 0x288   : > { %1527 = vst.msk [vmem:[#allocation3 + $0xf0] sm:$0xff] %vm1496_vm6, %v1461_v7  ;;  %v2905_v38 = vpop.f32.mrb[10].mxu0  ;;  %v1655_v41 = vpop.permute.xlu0 %1654 }
 0x289   : > { %2483 = vst.msk [vmem:[%s4039_s11 + $0x58] sm:$0xff] %vm411_vm0, %v2905_v38  ;;  %v2586_v28 = vmul.f32 %v2905_v38, %v2905_v38  ;;  %v2363_v35 = vpop.f32.mrb[11].mxu0  ;;  %v2525_v17 = vsel %vm411_vm0, %v2905_v38, 0.0 }
 0x28a   : > { %1721 = vst.msk [vmem:[#allocation3 + $0xf0] sm:$0xff] %vm1690_vm7, %v1655_v41  ;;  %v2523_v24 = vsel %vm411_vm0, %v2363_v35, 0.0  ;;  %v2585_v54 = vmul.f32 %v2363_v35, %v2363_v35 }
 0x28b   : > { %2482 = vst.msk [vmem:[%s4039_s11 + $0x50] sm:$0xff] %vm411_vm0, %v2363_v35  ;;  %v2524_v1 = vadd.f32 %v2523_v24, %v2522_v19  ;;  %v1463_v30 = vpop.permute.xlu1 %1462  ;;  %v2137_v48 = vld [vmem:[#allocation3 + $0xe0] sm:$0xff]  ;;  %v2628_v50 = vsel %vm411_vm0, %v2586_v28, 0.0 }
 0x28c   : > { %v2626_v22 = vsel %vm411_vm0, %v2585_v54, 0.0  ;;  %1528 = vst.msk [vmem:[#allocation3 + $0xf8] sm:$0xff] %vm1496_vm6, %v1463_v30  ;;  %2930 = vmatprep.mubr.msk.f32.mxu1 %vm2150_vm10, %v2137_v48  ;;  %v2138_v18 = vld [vmem:[#allocation3 + $0xe8] sm:$0xff]  ;;  %v1848_v58 = vpop.permute.xlu0 %1847 }
 0x28d   : > { %v2627_v8 = vadd.f32 %v2626_v22, %v2625_v4  ;;  %2931 = vmatmul.mubr.msk.f32.gmra.mrb[12].mxu1 %vm2150_vm10, %v2138_v18  ;;  %1914 = vst.msk [vmem:[#allocation3 + $0xf0] sm:$0xff] %vm1883_vm8, %v1848_v58  ;;  %v2526_v16 = vadd.f32 %v2525_v17, %v2524_v1 }
 0x28f   : > { %v1657_v25 = vpop.permute.xlu1 %1656  ;;  %v2629_v34 = vadd.f32 %v2628_v50, %v2627_v8 }
 0x290   : > { %1722 = vst.msk [vmem:[#allocation3 + $0xf8] sm:$0xff] %vm1690_vm7, %v1657_v25  ;;  %v2041_v37 = vpop.permute.xlu0 %2040 }
 0x291   : > { %2107 = vst.msk [vmem:[#allocation3 + $0xf0] sm:$0xff] %vm2076_vm9, %v2041_v37 }
 0x293   : > { %v1850_v32 = vpop.permute.xlu1 %1849 }
 0x294   : > { %1915 = vst.msk [vmem:[#allocation3 + $0xf8] sm:$0xff] %vm1883_vm8, %v1850_v32 }
 0x297   : > { %v2043_v40 = vpop.permute.xlu1 %2042 }
 0x298   : > { %2108 = vst.msk [vmem:[#allocation3 + $0xf8] sm:$0xff] %vm2076_vm9, %v2043_v40  ;;  %v2139_v43 = vld [vmem:[#allocation3 + $0xf0] sm:$0xff] }
 0x299   : > { %2933 = vmatprep.mubr.msk.f32.mxu1 %vm2150_vm10, %v2139_v43 }
 0x29f   : > { %v2140_v15 = vld [vmem:[#allocation3 + $0xf8] sm:$0xff] }
 0x2a0   : > { %v2908_v10 = vpop.f32.mrb[12].mxu0  ;;  %2934 = vmatmul.mubr.msk.f32.gmra.mrb[14].mxu1 %vm2150_vm10, %v2140_v15 }
 0x2a1   : > { %2485 = vst.msk [vmem:[%s4039_s11 + $0x68] sm:$0xff] %vm411_vm0, %v2908_v10  ;;  %v2588_v56 = vmul.f32 %v2908_v10, %v2908_v10  ;;  %v2373_v12 = vpop.f32.mrb[13].mxu0  ;;  %v2529_v31 = vsel %vm411_vm0, %v2908_v10, 0.0 }
 0x2a2   : > { %2484 = vst.msk [vmem:[%s4039_s11 + $0x60] sm:$0xff] %vm411_vm0, %v2373_v12  ;;  %v2527_v59 = vsel %vm411_vm0, %v2373_v12, 0.0  ;;  %v2587_v57 = vmul.f32 %v2373_v12, %v2373_v12 }
 0x2a3   : > { %v2528_v2 = vadd.f32 %v2527_v59, %v2526_v16  ;;  %v2632_v11 = vsel %vm411_vm0, %v2588_v56, 0.0 }
 0x2a4   : > { %v2630_v60 = vsel %vm411_vm0, %v2587_v57, 0.0 }
 0x2a5   : > { %v2631_v27 = vadd.f32 %v2630_v60, %v2629_v34  ;;  %v2530_v42 = vadd.f32 %v2529_v31, %v2528_v2 }
 0x2a7   : > { %v2633_v45 = vadd.f32 %v2632_v11, %v2631_v27 }
 0x2b8   : > { %v2911_v20 = vpop.f32.mrb[14].mxu0 }
 0x2b9   : > { %2487 = vst.msk [vmem:[%s4039_s11 + $0x78] sm:$0xff] %vm411_vm0, %v2911_v20  ;;  %v2590_v14 = vmul.f32 %v2911_v20, %v2911_v20  ;;  %v2383_v36 = vpop.f32.mrb[15].mxu0  ;;  %v2533_v39 = vsel %vm411_vm0, %v2911_v20, 0.0 }
 0x2ba   : > { %2486 = vst.msk [vmem:[%s4039_s11 + $0x70] sm:$0xff] %vm411_vm0, %v2383_v36  ;;  %v2531_v47 = vsel %vm411_vm0, %v2383_v36, 0.0  ;;  %v2589_v9 = vmul.f32 %v2383_v36, %v2383_v36 }
 0x2bb   : > { %v2532_v53 = vadd.f32 %v2531_v47, %v2530_v42  ;;  %v2636_v44 = vsel %vm411_vm0, %v2590_v14, 0.0 }
 0x2bc   : > { %v2634_v61 = vsel %vm411_vm0, %v2589_v9, 0.0 }
 0x2bd   : > { %v2534_v21 = vadd.f32 %v2533_v39, %v2532_v53  ;;  %v2635_v62 = vadd.f32 %v2634_v61, %v2633_v45 }
 0x2bf   : > { %v2637_v52 = vadd.f32 %v2636_v44, %v2635_v62 }
 0x2d0   : > { %v2914_v49 = vpop.f32.mrb[0].mxu1 }
 0x2d1   : > { %2489 = vst.msk [vmem:[%s4039_s11 + $0x88] sm:$0xff] %vm411_vm0, %v2914_v49  ;;  %v2592_v63 = vmul.f32 %v2914_v49, %v2914_v49  ;;  %v2393_v0 = vpop.f32.mrb[1].mxu1  ;;  %v2537_v26 = vsel %vm411_vm0, %v2914_v49, 0.0 }
 0x2d2   : > { %2488 = vst.msk [vmem:[%s4039_s11 + $0x80] sm:$0xff] %vm411_vm0, %v2393_v0  ;;  %v2535_v33 = vsel %vm411_vm0, %v2393_v0, 0.0  ;;  %v2591_v23 = vmul.f32 %v2393_v0, %v2393_v0 }
 0x2d3   : > { %v2536_v19 = vadd.f32 %v2535_v33, %v2534_v21  ;;  %v2640_v3 = vsel %vm411_vm0, %v2592_v63, 0.0 }
 0x2d4   : > { %v2638_v4 = vsel %vm411_vm0, %v2591_v23, 0.0 }
 0x2d5   : > { %v2639_v13 = vadd.f32 %v2638_v4, %v2637_v52  ;;  %v2538_v5 = vadd.f32 %v2537_v26, %v2536_v19 }
 0x2d7   : > { %v2641_v46 = vadd.f32 %v2640_v3, %v2639_v13 }
 0x2e8   : > { %v2917_v6 = vpop.f32.mrb[2].mxu1 }
 0x2e9   : > { %2491 = vst.msk [vmem:[%s4039_s11 + $0x98] sm:$0xff] %vm411_vm0, %v2917_v6  ;;  %v2594_v29 = vmul.f32 %v2917_v6, %v2917_v6  ;;  %v2403_v51 = vpop.f32.mrb[3].mxu1  ;;  %v2541_v55 = vsel %vm411_vm0, %v2917_v6, 0.0 }
 0x2ea   : > { %2490 = vst.msk [vmem:[%s4039_s11 + $0x90] sm:$0xff] %vm411_vm0, %v2403_v51  ;;  %v2539_v7 = vsel %vm411_vm0, %v2403_v51, 0.0  ;;  %v2593_v38 = vmul.f32 %v2403_v51, %v2403_v51 }
 0x2eb   : > { %v2540_v41 = vadd.f32 %v2539_v7, %v2538_v5  ;;  %v2644_v28 = vsel %vm411_vm0, %v2594_v29, 0.0 }
 0x2ec   : > { %v2642_v35 = vsel %vm411_vm0, %v2593_v38, 0.0 }
 0x2ed   : > { %v2643_v17 = vadd.f32 %v2642_v35, %v2641_v46  ;;  %v2542_v24 = vadd.f32 %v2541_v55, %v2540_v41 }
 0x2ef   : > { %v2645_v54 = vadd.f32 %v2644_v28, %v2643_v17 }
 0x301   : > { %v2920_v1 = vpop.f32.mrb[4].mxu1 }
 0x302   : > { %2493 = vst.msk [vmem:[%s4039_s11 + $0xa8] sm:$0xff] %vm411_vm0, %v2920_v1  ;;  %v2596_v30 = vmul.f32 %v2920_v1, %v2920_v1  ;;  %v2413_v48 = vpop.f32.mrb[5].mxu1  ;;  %v2545_v50 = vsel %vm411_vm0, %v2920_v1, 0.0 }
 0x303   : > { %2492 = vst.msk [vmem:[%s4039_s11 + $0xa0] sm:$0xff] %vm411_vm0, %v2413_v48  ;;  %v2543_v22 = vsel %vm411_vm0, %v2413_v48, 0.0  ;;  %v2595_v18 = vmul.f32 %v2413_v48, %v2413_v48 }
 0x304   : > { %v2544_v58 = vadd.f32 %v2543_v22, %v2542_v24  ;;  %v2648_v8 = vsel %vm411_vm0, %v2596_v30, 0.0 }
 0x305   : > { %v2646_v16 = vsel %vm411_vm0, %v2595_v18, 0.0 }
 0x306   : > { %v2647_v25 = vadd.f32 %v2646_v16, %v2645_v54  ;;  %v2546_v34 = vadd.f32 %v2545_v50, %v2544_v58 }
 0x308   : > { %v2649_v37 = vadd.f32 %v2648_v8, %v2647_v25 }
 0x318   : > { %v2923_v32 = vpop.f32.mrb[6].mxu1 }
 0x319   : > { %2495 = vst.msk [vmem:[%s4039_s11 + $0xb8] sm:$0xff] %vm411_vm0, %v2923_v32  ;;  %v2598_v40 = vmul.f32 %v2923_v32, %v2923_v32  ;;  %v2423_v43 = vpop.f32.mrb[7].mxu1  ;;  %v2549_v15 = vsel %vm411_vm0, %v2923_v32, 0.0 }
 0x31a   : > { %2494 = vst.msk [vmem:[%s4039_s11 + $0xb0] sm:$0xff] %vm411_vm0, %v2423_v43  ;;  %v2547_v10 = vsel %vm411_vm0, %v2423_v43, 0.0  ;;  %v2597_v56 = vmul.f32 %v2423_v43, %v2423_v43 }
 0x31b   : > { %v2548_v12 = vadd.f32 %v2547_v10, %v2546_v34  ;;  %v2652_v31 = vsel %vm411_vm0, %v2598_v40, 0.0 }
 0x31c   : > { %v2650_v59 = vsel %vm411_vm0, %v2597_v56, 0.0 }
 0x31d   : > { %v2651_v57 = vadd.f32 %v2650_v59, %v2649_v37  ;;  %v2550_v2 = vadd.f32 %v2549_v15, %v2548_v12 }
 0x31f   : > { %v2653_v11 = vadd.f32 %v2652_v31, %v2651_v57 }
 0x330   : > { %v2926_v60 = vpop.f32.mrb[8].mxu1 }
 0x331   : > { %2497 = vst.msk [vmem:[%s4039_s11 + $0xc8] sm:$0xff] %vm411_vm0, %v2926_v60  ;;  %v2600_v27 = vmul.f32 %v2926_v60, %v2926_v60  ;;  %v2433_v42 = vpop.f32.mrb[9].mxu1  ;;  %v2553_v45 = vsel %vm411_vm0, %v2926_v60, 0.0 }
 0x332   : > { %2496 = vst.msk [vmem:[%s4039_s11 + $0xc0] sm:$0xff] %vm411_vm0, %v2433_v42  ;;  %v2551_v20 = vsel %vm411_vm0, %v2433_v42, 0.0  ;;  %v2599_v14 = vmul.f32 %v2433_v42, %v2433_v42 }
 0x333   : > { %v2552_v36 = vadd.f32 %v2551_v20, %v2550_v2  ;;  %v2656_v39 = vsel %vm411_vm0, %v2600_v27, 0.0 }
 0x334   : > { %v2654_v47 = vsel %vm411_vm0, %v2599_v14, 0.0 }
 0x335   : > { %v2655_v9 = vadd.f32 %v2654_v47, %v2653_v11  ;;  %v2554_v53 = vadd.f32 %v2553_v45, %v2552_v36 }
 0x337   : > { %v2657_v44 = vadd.f32 %v2656_v39, %v2655_v9 }
 0x348   : > { %v2929_v61 = vpop.f32.mrb[10].mxu1 }
 0x349   : > { %2499 = vst.msk [vmem:[%s4039_s11 + $0xd8] sm:$0xff] %vm411_vm0, %v2929_v61  ;;  %v2602_v21 = vmul.f32 %v2929_v61, %v2929_v61  ;;  %v2443_v62 = vpop.f32.mrb[11].mxu1  ;;  %v2557_v52 = vsel %vm411_vm0, %v2929_v61, 0.0 }
 0x34a   : > { %2498 = vst.msk [vmem:[%s4039_s11 + $0xd0] sm:$0xff] %vm411_vm0, %v2443_v62  ;;  %v2555_v49 = vsel %vm411_vm0, %v2443_v62, 0.0  ;;  %v2601_v63 = vmul.f32 %v2443_v62, %v2443_v62 }
 0x34b   : > { %v2556_v0 = vadd.f32 %v2555_v49, %v2554_v53  ;;  %v2660_v26 = vsel %vm411_vm0, %v2602_v21, 0.0 }
 0x34c   : > { %v2658_v33 = vsel %vm411_vm0, %v2601_v63, 0.0 }
 0x34d   : > { %v2659_v23 = vadd.f32 %v2658_v33, %v2657_v44  ;;  %v2558_v19 = vadd.f32 %v2557_v52, %v2556_v0 }
 0x34f   : > { %v2661_v3 = vadd.f32 %v2660_v26, %v2659_v23 }
 0x360   : > { %v2932_v4 = vpop.f32.mrb[12].mxu1 }
 0x361   : > { %2501 = vst.msk [vmem:[%s4039_s11 + $0xe8] sm:$0xff] %vm411_vm0, %v2932_v4  ;;  %v2604_v13 = vmul.f32 %v2932_v4, %v2932_v4  ;;  %v2453_v5 = vpop.f32.mrb[13].mxu1  ;;  %v2561_v46 = vsel %vm411_vm0, %v2932_v4, 0.0 }
 0x362   : > { %2500 = vst.msk [vmem:[%s4039_s11 + $0xe0] sm:$0xff] %vm411_vm0, %v2453_v5  ;;  %v2559_v6 = vsel %vm411_vm0, %v2453_v5, 0.0  ;;  %v2603_v29 = vmul.f32 %v2453_v5, %v2453_v5 }
 0x363   : > { %v2560_v51 = vadd.f32 %v2559_v6, %v2558_v19  ;;  %v2664_v55 = vsel %vm411_vm0, %v2604_v13, 0.0 }
 0x364   : > { %v2662_v7 = vsel %vm411_vm0, %v2603_v29, 0.0 }
 0x365   : > { %v2663_v38 = vadd.f32 %v2662_v7, %v2661_v3  ;;  %v2562_v41 = vadd.f32 %v2561_v46, %v2560_v51 }
 0x367   : > { %v2665_v28 = vadd.f32 %v2664_v55, %v2663_v38 }
 0x373   : > { %v2935_v35 = vpop.f32.mrb[14].mxu1 }
 0x374   : > { %2503 = vst.msk [vmem:[%s4039_s11 + $0xf8] sm:$0xff] %vm411_vm0, %v2935_v35  ;;  %v2463_v17 = vpop.f32.mrb[15].mxu1  ;;  %v2606_v24 = vmul.f32 %v2935_v35, %v2935_v35  ;;  %v2565_v48 = vsel %vm411_vm0, %v2935_v35, 0.0 }
 0x375   : > { %2502 = vst.msk [vmem:[%s4039_s11 + $0xf0] sm:$0xff] %vm411_vm0, %v2463_v17  ;;  %v2563_v54 = vsel %vm411_vm0, %v2463_v17, 0.0  ;;  %v2605_v1 = vmul.f32 %v2463_v17, %v2463_v17 }
 0x376   : > { %v2564_v30 = vadd.f32 %v2563_v54, %v2562_v41  ;;  %v2668_v58 = vsel %vm411_vm0, %v2606_v24, 0.0 }
 0x377   : > { %v2666_v50 = vsel %vm411_vm0, %v2605_v1, 0.0 }
 0x378   : > { %v2566_v22 = vadd.f32 %v2565_v48, %v2564_v30  ;;  %v2667_v18 = vadd.f32 %v2666_v50, %v2665_v28 }
 0x37a   : > { %v2567_v8 = vrot.slane %v2566_v22, 4  ;;  %v2669_v16 = vadd.f32 %v2668_v58, %v2667_v18 }
 0x37c   : > { %v2568_v25 = vadd.f32 %v2567_v8, %v2566_v22  ;;  %v2670_v34 = vrot.slane %v2669_v16, 4 }
 0x37e   : > { %v2569_v37 = vrot.slane %v2568_v25, 2  ;;  %v2671_v32 = vadd.f32 %v2670_v34, %v2669_v16 }
 0x380   : > { %v2570_v40 = vadd.f32 %v2569_v37, %v2568_v25  ;;  %v2672_v43 = vrot.slane %v2671_v32, 2 }
 0x382   : > { %v2571_v15 = vrot.slane %v2570_v40, 1  ;;  %v2673_v10 = vadd.f32 %v2672_v43, %v2671_v32 }
 0x384   : > { %v2572_v56 = vadd.f32 %v2571_v15, %v2570_v40  ;;  %v2674_v12 = vrot.slane %v2673_v10, 1 }
 0x386   : > { %2574 = vst.msk [vmem:[%s265_s23] sm:$0x1] %vm2573_vm11, %v2572_v56  ;;  %v2675_v31 = vadd.f32 %v2674_v12, %v2673_v10 }
 0x388   : > { %2676 = vst.msk [vmem:[%s268_s27] sm:$0x1] %vm2573_vm11, %v2675_v31 }
 0x389 PF: > { %s17_s21 = sadd.s32 1, %s2987_s21  }
 0x38a   : > { %p14_p4 = scmp.ge.s32.totalorder %s17_s21, 4  }
 0x38c   :  { %16 = sbr.rel (!%p14_p4) target bundleno = 1 (0x1), region = 92 }

</bundles_post_ra>
